<compile_context>
chip_gen: v6e
topology: v6e:2x2x1
jax: 0.10.0
libtpu: 0.0.40
codegen_flags: <defaults>
</compile_context>

<pallas_src>
import functools

import jax
import jax.numpy as jnp
import numpy as np
from jax.experimental import pallas as pl
from jax.experimental.pallas import tpu as pltpu


def _round_up(n, m):
    return ((n + m - 1) // m) * m


# --------------------------------------------------------------------------
# Fully fused kernel: all temporal blocks + final Linear in one body.
# block_meta: tuple of dicts with STATIC python ints (K, dil, Ci, Co, down).
# --------------------------------------------------------------------------
def make_tcn_kernel(block_meta, T, Dout_p):

    def shift_t(v, s):
        # Causal forward shift along time: out[:, t] = v[:, t - s], zero fill.
        # pltpu.roll runs on the XLU slot; the mask is one cheap VALU select.
        if s == 0:
            return v
        rolled = pltpu.roll(v, shift=s, axis=1)
        t_idx = jax.lax.broadcasted_iota(jnp.int32, v.shape, 1)
        return jnp.where(t_idx >= s, rolled, 0.0)

    def kernel(*refs):
        x_ref = refs[0]
        pos = 1
        blk_refs = []
        for m in block_meta:
            n = 5 if m["down"] else 4
            blk_refs.append(refs[pos:pos + n])
            pos += n
        lw_ref, lb_ref = refs[pos], refs[pos + 1]
        o_ref = refs[pos + 2]

        f32 = jnp.float32
        h = x_ref[...].astype(f32)                      # (tm, T, Ci0), f32 math
        tm = h.shape[0]

        def wide_conv(hin, w_ref, b_ref, K, dil, Co, extra_cols):
            """Tap-stacked dilated causal conv as ONE wide matmul.

            w_ref: (Ci, K*Co [+ extra_cols]) -- taps stacked along columns,
            optionally followed by the fused 1x1 downsample projection.
            Returns (conv_out_pre_relu, residual_projection_or_None).
            """
            w = w_ref[...]                              # hoisted weight load
            Ci = w.shape[0]
            p = jnp.dot(hin.reshape(tm * T, Ci).astype(w.dtype), w,
                        preferred_element_type=f32).reshape(tm, T, -1)
            # tap K-1 has zero lookback -> no shift needed
            acc = p[:, :, (K - 1) * Co:K * Co]
            for j in range(K - 1):                      # static unroll over taps
                s = (K - 1 - j) * dil                   # static causal lookback
                if s >= T:
                    continue                            # tap entirely in zero-pad
                acc = acc + shift_t(p[:, :, j * Co:(j + 1) * Co], s)
            acc = acc + b_ref[...].astype(f32)[None]    # bias in f32
            extra = p[:, :, K * Co:K * Co + extra_cols] if extra_cols else None
            return acc, extra

        for m, r in zip(block_meta, blk_refs):
            K, dil, Co = m["K"], m["dil"], m["Co"]
            if m["down"]:
                w1_ref, b1_ref, bd_ref, w2_ref, b2_ref = r
            else:
                w1_ref, b1_ref, w2_ref, b2_ref = r

            c1, resp = wide_conv(h, w1_ref, b1_ref, K, dil, Co,
                                 Co if m["down"] else 0)
            h1 = jnp.maximum(c1, 0.0)                   # relu1 (dropout1 = id)
            c2, _ = wide_conv(h1, w2_ref, b2_ref, K, dil, Co, 0)
            h2 = jnp.maximum(c2, 0.0)                   # relu2 (dropout2 = id)

            if m["down"]:
                res = resp + bd_ref[...].astype(f32)[None]
            else:
                res = h                                 # identity residual
            h = jnp.maximum(h2 + res, 0.0)              # block output, f32

        # final Linear, fused into the same kernel
        lw = lw_ref[...]
        C = lw.shape[0]
        y = jnp.dot(h.reshape(tm * T, C).astype(lw.dtype), lw,
                    preferred_element_type=f32).reshape(tm, T, Dout_p)
        y = y + lb_ref[...].astype(f32)[None]
        o_ref[...] = y.astype(o_ref.dtype)

    return kernel


# --------------------------------------------------------------------------
# Per-chip tuning: VMEM budget + megacore grid rule.
# --------------------------------------------------------------------------
def _chip_config():
    kind = ""
    try:
        kind = jax.devices()[0].device_kind.lower()
    except Exception:
        pass
    if "v7" in kind:                       # 64 MiB VMEM, 2 TCs per chip
        return 40 * 2**20, 2
    if "v6" in kind:                       # 128 MiB VMEM, single TC
        return 80 * 2**20, 1
    if "v5e" in kind or "v5 lite" in kind or "v5lite" in kind:
        return 80 * 2**20, 1               # 128 MiB VMEM, single TC
    if "v5" in kind or "v4" in kind:       # megacore (2 TCs), 128 MiB VMEM
        return 64 * 2**20, 2
    return 32 * 2**20, 2                   # unknown: conservative


def _choose_tm(M, T, block_meta, Fp, Dout_p, act_itemsize, tm_max,
               vmem_budget, min_grid):
    # Peak live f32 columns per row inside the fused kernel (widest block):
    #   input h (Ci) + stacked matmul output p ((K [+1])*Co)
    #   + conv accumulator/h1 (Co) + h2 (Co) + res (Co)
    cols = max(m["Ci"] + (m["K"] + (1 if m["down"] else 0)) * m["Co"]
               + 3 * m["Co"] for m in block_meta)
    cols = max(cols, block_meta[-1]["Co"] + Dout_p)        # final linear
    # plus double-buffered input (compute dtype) and output (f32) DMA blocks
    per_row = T * (4 * cols + 2 * (Fp * act_itemsize + Dout_p * 4))
    tm = int((vmem_budget // 2) // max(per_row, 1))        # 50% headroom
    m8 = _round_up(M, 8)
    if m8 >= 8 * min_grid:                                 # keep >= min_grid steps
        tm = min(tm, _round_up(-(-m8 // min_grid), 8))
    tm = max(8, min(tm, tm_max, m8))
    return (tm // 8) * 8


def _cost_estimate(Mp, Tp, block_meta, Fp, Dout_p, act_itemsize):
    flops = 0
    wbytes = 0
    for m in block_meta:
        n1 = m["K"] * m["Co"] + (m["Co"] if m["down"] else 0)
        flops += 2 * Mp * Tp * m["Ci"] * n1
        flops += 2 * Mp * Tp * m["Co"] * (m["K"] * m["Co"])
        wbytes += (m["Ci"] * n1 + m["Co"] * m["K"] * m["Co"] + 3 * m["Co"]) * 4
    flops += 2 * Mp * Tp * block_meta[-1]["Co"] * Dout_p
    wbytes += (block_meta[-1]["Co"] * Dout_p + Dout_p) * 4
    bytes_accessed = Mp * Tp * (Fp * act_itemsize + Dout_p * 4) + wbytes
    return pl.CostEstimate(flops=int(flops), transcendentals=0,
                           bytes_accessed=int(bytes_accessed))


# --------------------------------------------------------------------------
# TCN2d forward: wrapper pads/stacks weights, then ONE pallas_call.
# --------------------------------------------------------------------------
def tcn2d_forward(x, params, *, tm_max=1024, compute_dtype=jnp.float32):
    """x: [B, N, F, T] (same as the PyTorch module input).
    Returns [B, output_size, N, T] (same as the PyTorch module output)."""
    B, N, F_, T = x.shape
    blocks = params["blocks"]
    out_sz = params["lin_w"].shape[1]

    act_itemsize = jnp.dtype(compute_dtype).itemsize
    t_align = 16 if act_itemsize < 4 else 8     # bf16 packs 2 rows / sublane
    Tp = _round_up(T, t_align)
    Fp = _round_up(F_, 8)
    Dout_p = _round_up(out_sz, 8)

    # [B, N, F, T] -> [B*N, T, F]; the node axis is pointwise for (1,k) convs.
    h = jnp.transpose(x, (0, 1, 3, 2)).reshape(B * N, T, F_)
    if Tp != T or Fp != F_:
        # trailing-time padding cannot affect real timesteps of a causal conv
        h = jnp.pad(h, ((0, 0), (0, Tp - T), (0, Fp - F_)))
    h = h.astype(compute_dtype)

    # ---- pad channels to 8-multiples, tap-stack conv weights, fold the
    #      downsample 1x1 into the conv1 matmul (tiny, done once in XLA) ----
    args, specs, block_meta = [], [], []
    Ci = Fp
    for i, blk in enumerate(blocks):
        K, cin, cout = blk["w1"].shape
        dil = 2 ** i                                        # static, as in module
        Co = _round_up(cout, 8)
        down = "wd" in blk

        w1 = jnp.pad(blk["w1"], ((0, 0), (0, Ci - cin), (0, Co - cout)))
        w1s = jnp.transpose(w1, (1, 0, 2)).reshape(Ci, K * Co)   # (Ci, K*Co)
        if down:
            wd = jnp.pad(blk["wd"], ((0, Ci - cin), (0, Co - cout)))
            w1s = jnp.concatenate([w1s, wd], axis=1)             # + residual proj
        w2 = jnp.pad(blk["w2"], ((0, 0), (0, Co - cout), (0, Co - cout)))
        w2s = jnp.transpose(w2, (1, 0, 2)).reshape(Co, K * Co)
        b1 = jnp.pad(blk["b1"], (0, Co - cout)).reshape(1, Co)
        b2 = jnp.pad(blk["b2"], (0, Co - cout)).reshape(1, Co)

        blk_args = [w1s.astype(compute_dtype), b1]
        if down:
            bd = jnp.pad(blk["bd"], (0, Co - cout)).reshape(1, Co)
            blk_args.append(bd)
        blk_args += [w2s.astype(compute_dtype), b2]

        args += blk_args
        specs += [pl.BlockSpec(a.shape, lambda i: (0, 0)) for a in blk_args]
        block_meta.append(dict(K=K, dil=dil, Ci=Ci, Co=Co, down=down))
        Ci = Co

    C_last = Ci
    lw = jnp.pad(params["lin_w"],
                 ((0, C_last - params["lin_w"].shape[0]), (0, Dout_p - out_sz)))
    lb = jnp.pad(params["lin_b"], (0, Dout_p - out_sz)).reshape(1, Dout_p)
    args += [lw.astype(compute_dtype), lb]
    specs += [pl.BlockSpec(lw.shape, lambda i: (0, 0)),
              pl.BlockSpec(lb.shape, lambda i: (0, 0))]

    # ---- row-tile selection (per-chip VMEM budget / megacore rule) ----
    M = B * N
    vmem_budget, min_grid = _chip_config()
    tm = _choose_tm(M, Tp, block_meta, Fp, Dout_p, act_itemsize, tm_max,
                    vmem_budget, min_grid)
    Mp = _round_up(M, tm)
    if Mp != M:
        h = jnp.pad(h, ((0, Mp - M), (0, 0), (0, 0)))

    kernel = make_tcn_kernel(tuple(block_meta), Tp, Dout_p)
    y = pl.pallas_call(
        kernel,
        out_shape=jax.ShapeDtypeStruct((Mp, Tp, Dout_p), jnp.float32),
        grid=(Mp // tm,),
        in_specs=[pl.BlockSpec((tm, Tp, Fp), lambda i: (i, 0, 0))] + specs,
        out_specs=pl.BlockSpec((tm, Tp, Dout_p), lambda i: (i, 0, 0)),
        compiler_params=pltpu.CompilerParams(
            dimension_semantics=("parallel",),
            vmem_limit_bytes=vmem_budget),
        cost_estimate=_cost_estimate(Mp, Tp, block_meta, Fp, Dout_p,
                                     act_itemsize),
    )(h, *args)

    y = y[:M, :T, :out_sz].reshape(B, N, T, out_sz)
    # PyTorch: linear output permuted (0, 3, 1, 2) -> [B, Dout, N, T]
    return jnp.transpose(y, (0, 3, 1, 2))


# --------------------------------------------------------------------------
# Deterministic parameter init (shapes follow the PyTorch module __init__).
# Only jnp arrays go in the pytree -- dilation/kernel_size stay static ints.
# --------------------------------------------------------------------------
def init_params(key, input_size, num_channels, output_size, kernel_size):
    blocks = []
    in_ch = input_size
    for out_ch in num_channels:
        key, k1, k2, k3, k4, k5, k6 = jax.random.split(key, 7)
        blk = dict(
            w1=0.1 * jax.random.normal(k1, (kernel_size, in_ch, out_ch), jnp.float32),
            b1=0.1 * jax.random.normal(k2, (out_ch,), jnp.float32),
            w2=0.1 * jax.random.normal(k3, (kernel_size, out_ch, out_ch), jnp.float32),
            b2=0.1 * jax.random.normal(k4, (out_ch,), jnp.float32),
        )
        if in_ch != out_ch:     # downsample 1x1 conv, exactly as in the module
            blk["wd"] = 0.1 * jax.random.normal(k5, (in_ch, out_ch), jnp.float32)
            blk["bd"] = 0.1 * jax.random.normal(k6, (out_ch,), jnp.float32)
        blocks.append(blk)
        in_ch = out_ch
    key, k7, k8 = jax.random.split(key, 3)
    return dict(
        blocks=blocks,
        lin_w=0.1 * jax.random.normal(k7, (in_ch, output_size), jnp.float32),
        lin_b=0.1 * jax.random.normal(k8, (output_size,), jnp.float32),
    )


# --------------------------------------------------------------------------
# Pure-JAX reference (same math, no Pallas) for the correctness checks.
# --------------------------------------------------------------------------
def _ref_causal_conv(x, w, b, d):
    M, T, _ = x.shape
    K, _, Cout = w.shape
    acc = jnp.zeros((M, T, Cout), jnp.float32)
    for j in range(K):
        s = (K - 1 - j) * d
        if s >= T:
            continue
        xs = jnp.pad(x, ((0, 0), (s, 0), (0, 0)))[:, :T, :]
        acc = acc + jnp.einsum("mtc,cd->mtd", xs, w[j])
    return acc + b


def tcn2d_reference(x, params):
    B, N, F_, T = x.shape
    h = jnp.transpose(x, (0, 1, 3, 2)).reshape(B * N, T, F_).astype(jnp.float32)
    for i, blk in enumerate(params["blocks"]):
        d = 2 ** i
        inp = h
        h1 = jnp.maximum(_ref_causal_conv(inp, blk["w1"], blk["b1"], d), 0.0)
        h2 = jnp.maximum(_ref_causal_conv(h1, blk["w2"], blk["b2"], d), 0.0)
        if "wd" in blk:
            res = jnp.einsum("mtc,cd->mtd", inp, blk["wd"]) + blk["bd"]
        else:
            res = inp
        h = jnp.maximum(h2 + res, 0.0)
    y = jnp.einsum("mtc,cd->mtd", h, params["lin_w"]) + params["lin_b"]
    Dout = y.shape[-1]
    return jnp.transpose(y.reshape(B, N, T, Dout), (0, 3, 1, 2))


# --------------------------------------------------------------------------
if __name__ == "__main__":
    # Small shapes consistent with the module's forward:
    #   x: [batch, num_nodes, num_features, num_timesteps]
    batch, num_nodes, num_features, num_timesteps = 2, 8, 10, 16
    num_channels = [16, 32, 64]
    kernel_size = 3
    output_size = 64

    key = jax.random.PRNGKey(0)
    key, kx, kp, kp2 = jax.random.split(key, 4)
    x = jax.random.normal(kx, (batch, num_nodes, num_features, num_timesteps),
                          jnp.float32)
    params = init_params(kp, num_features, num_channels, output_size, kernel_size)

    # 1) f32 compute path vs. pure-JAX reference.
    fwd = jax.jit(functools.partial(tcn2d_forward, compute_dtype=jnp.float32))
    out = jax.block_until_ready(fwd(x, params))
    assert out.shape == (batch, output_size, num_nodes, num_timesteps), out.shape
    ref = jax.block_until_ready(tcn2d_reference(x, params))
    np.testing.assert_allclose(np.asarray(out), np.asarray(ref),
                               rtol=2e-2, atol=1e-4)

    # 2) bf16 matmul-operand path (halves weight/input DMA; f32 accumulation
    #    and f32 elementwise math) -- tolerance-checked, not just a smoke test.
    fwd_bf16 = jax.jit(functools.partial(tcn2d_forward, compute_dtype=jnp.bfloat16))
    out_bf16 = jax.block_until_ready(fwd_bf16(x, params))
    np.testing.assert_allclose(np.asarray(out_bf16), np.asarray(ref),
                               rtol=1e-1, atol=1e-1)

    # 3) identity-residual block (n_inputs == n_outputs, no downsample conv).
    params_id = init_params(kp2, num_features, [16, 16], output_size, kernel_size)
    out_id = jax.block_until_ready(jax.jit(tcn2d_forward)(x, params_id))
    ref_id = jax.block_until_ready(tcn2d_reference(x, params_id))
    assert out_id.shape == (batch, output_size, num_nodes, num_timesteps)
    np.testing.assert_allclose(np.asarray(out_id), np.asarray(ref_id),
                               rtol=2e-2, atol=1e-4)

    print("KERNEL_OK")
</pallas_src>

<mosaic_0001>
module attributes {stable_mosaic.version = 11 : i64} {
  func.func @kernel(%arg0: i32, %arg1: memref<8x16x16xf32, #tpu.memory_space<vmem>>, %arg2: memref<16x64xf32, #tpu.memory_space<vmem>>, %arg3: memref<1x16xf32, #tpu.memory_space<vmem>>, %arg4: memref<1x16xf32, #tpu.memory_space<vmem>>, %arg5: memref<16x48xf32, #tpu.memory_space<vmem>>, %arg6: memref<1x16xf32, #tpu.memory_space<vmem>>, %arg7: memref<16x128xf32, #tpu.memory_space<vmem>>, %arg8: memref<1x32xf32, #tpu.memory_space<vmem>>, %arg9: memref<1x32xf32, #tpu.memory_space<vmem>>, %arg10: memref<32x96xf32, #tpu.memory_space<vmem>>, %arg11: memref<1x32xf32, #tpu.memory_space<vmem>>, %arg12: memref<32x256xf32, #tpu.memory_space<vmem>>, %arg13: memref<1x64xf32, #tpu.memory_space<vmem>>, %arg14: memref<1x64xf32, #tpu.memory_space<vmem>>, %arg15: memref<64x192xf32, #tpu.memory_space<vmem>>, %arg16: memref<1x64xf32, #tpu.memory_space<vmem>>, %arg17: memref<64x64xf32, #tpu.memory_space<vmem>>, %arg18: memref<1x64xf32, #tpu.memory_space<vmem>>, %arg19: memref<8x16x64xf32, #tpu.memory_space<vmem>>) attributes {dimension_semantics = [#tpu.dimension_semantics<parallel>], iteration_bounds = array<i64: 2>, scalar_prefetch = 0 : i64, scratch_operands = 0 : i64, tpu.core_type = #tpu.core_type<tc>, window_params = [{transform_indices = @transform_0, window_bounds = array<i64: 8, 16, 16>}, {pipeline_mode = #tpu.pipeline_mode<synchronous>, transform_indices = @transform_1, window_bounds = array<i64: 16, 64>}, {pipeline_mode = #tpu.pipeline_mode<synchronous>, transform_indices = @transform_2, window_bounds = array<i64: 1, 16>}, {pipeline_mode = #tpu.pipeline_mode<synchronous>, transform_indices = @transform_3, window_bounds = array<i64: 1, 16>}, {pipeline_mode = #tpu.pipeline_mode<synchronous>, transform_indices = @transform_4, window_bounds = array<i64: 16, 48>}, {pipeline_mode = #tpu.pipeline_mode<synchronous>, transform_indices = @transform_5, window_bounds = array<i64: 1, 16>}, {pipeline_mode = #tpu.pipeline_mode<synchronous>, transform_indices = @transform_6, window_bounds = array<i64: 16, 128>}, {pipeline_mode = #tpu.pipeline_mode<synchronous>, transform_indices = @transform_7, window_bounds = array<i64: 1, 32>}, {pipeline_mode = #tpu.pipeline_mode<synchronous>, transform_indices = @transform_8, window_bounds = array<i64: 1, 32>}, {pipeline_mode = #tpu.pipeline_mode<synchronous>, transform_indices = @transform_9, window_bounds = array<i64: 32, 96>}, {pipeline_mode = #tpu.pipeline_mode<synchronous>, transform_indices = @transform_10, window_bounds = array<i64: 1, 32>}, {pipeline_mode = #tpu.pipeline_mode<synchronous>, transform_indices = @transform_11, window_bounds = array<i64: 32, 256>}, {pipeline_mode = #tpu.pipeline_mode<synchronous>, transform_indices = @transform_12, window_bounds = array<i64: 1, 64>}, {pipeline_mode = #tpu.pipeline_mode<synchronous>, transform_indices = @transform_13, window_bounds = array<i64: 1, 64>}, {pipeline_mode = #tpu.pipeline_mode<synchronous>, transform_indices = @transform_14, window_bounds = array<i64: 64, 192>}, {pipeline_mode = #tpu.pipeline_mode<synchronous>, transform_indices = @transform_15, window_bounds = array<i64: 1, 64>}, {pipeline_mode = #tpu.pipeline_mode<synchronous>, transform_indices = @transform_16, window_bounds = array<i64: 64, 64>}, {pipeline_mode = #tpu.pipeline_mode<synchronous>, transform_indices = @transform_17, window_bounds = array<i64: 1, 64>}, {transform_indices = @transform_18, window_bounds = array<i64: 8, 16, 64>}]} {
    %c0 = arith.constant 0 : index
    %c0_0 = arith.constant 0 : index
    %c0_1 = arith.constant 0 : index
    %0 = vector.load %arg1[%c0, %c0_0, %c0_1] : memref<8x16x16xf32, #tpu.memory_space<vmem>>, vector<8x16x16xf32>
    %c0_2 = arith.constant 0 : index
    %c0_3 = arith.constant 0 : index
    %1 = vector.load %arg2[%c0_2, %c0_3] : memref<16x64xf32, #tpu.memory_space<vmem>>, vector<16x64xf32>
    %2 = vector.shape_cast %0 : vector<8x16x16xf32> to vector<128x16xf32>
    %cst = arith.constant dense<0.000000e+00> : vector<128x64xf32>
    %3 = tpu.matmul %2, %1, %cst {dimension_numbers = #tpu.dot_dimension_numbers<[1], [0], [0], [1], [0, 0, 1, 1], [], []>} : vector<128x16xf32>, vector<16x64xf32>, vector<128x64xf32> -> vector<128x64xf32>
    %4 = vector.shape_cast %3 : vector<128x64xf32> to vector<8x16x64xf32>
    %5 = vector.extract_strided_slice %4 {offsets = [0, 0, 32], sizes = [8, 16, 16], strides = [1, 1, 1]} : vector<8x16x64xf32> to vector<8x16x16xf32>
    %6 = vector.extract_strided_slice %4 {offsets = [0, 0, 0], sizes = [8, 16, 16], strides = [1, 1, 1]} : vector<8x16x64xf32> to vector<8x16x16xf32>
    %c2_i32 = arith.constant 2 : i32
    %7 = tpu.dynamic_rotate %6 by %c2_i32 dim 1 : vector<8x16x16xf32>, i32 -> vector<8x16x16xf32>
    %8 = tpu.iota {dimensions = array<i32: 1>} : vector<8x16x16xi32>
    %c2_i32_4 = arith.constant 2 : i32
    %9 = vector.broadcast %c2_i32_4 : i32 to vector<8x16x16xi32>
    %10 = arith.cmpi sge, %8, %9 : vector<8x16x16xi32>
    %cst_5 = arith.constant 0.000000e+00 : f32
    %11 = vector.broadcast %cst_5 : f32 to vector<8x16x16xf32>
    %12 = arith.select %10, %7, %11 : vector<8x16x16xi1>, vector<8x16x16xf32>
    %13 = arith.addf %5, %12 : vector<8x16x16xf32>
    %14 = vector.extract_strided_slice %4 {offsets = [0, 0, 16], sizes = [8, 16, 16], strides = [1, 1, 1]} : vector<8x16x64xf32> to vector<8x16x16xf32>
    %c1_i32 = arith.constant 1 : i32
    %15 = tpu.dynamic_rotate %14 by %c1_i32 dim 1 : vector<8x16x16xf32>, i32 -> vector<8x16x16xf32>
    %16 = tpu.iota {dimensions = array<i32: 1>} : vector<8x16x16xi32>
    %c1_i32_6 = arith.constant 1 : i32
    %17 = vector.broadcast %c1_i32_6 : i32 to vector<8x16x16xi32>
    %18 = arith.cmpi sge, %16, %17 : vector<8x16x16xi32>
    %cst_7 = arith.constant 0.000000e+00 : f32
    %19 = vector.broadcast %cst_7 : f32 to vector<8x16x16xf32>
    %20 = arith.select %18, %15, %19 : vector<8x16x16xi1>, vector<8x16x16xf32>
    %21 = arith.addf %13, %20 : vector<8x16x16xf32>
    %c0_8 = arith.constant 0 : index
    %c0_9 = arith.constant 0 : index
    %22 = vector.load %arg3[%c0_8, %c0_9] : memref<1x16xf32, #tpu.memory_space<vmem>>, vector<1x16xf32>
    %23 = vector.shape_cast %22 : vector<1x16xf32> to vector<1x1x16xf32>
    %24 = vector.broadcast %23 : vector<1x1x16xf32> to vector<8x16x16xf32>
    %25 = arith.addf %21, %24 : vector<8x16x16xf32>
    %26 = vector.extract_strided_slice %4 {offsets = [0, 0, 48], sizes = [8, 16, 16], strides = [1, 1, 1]} : vector<8x16x64xf32> to vector<8x16x16xf32>
    %cst_10 = arith.constant 0.000000e+00 : f32
    %27 = vector.broadcast %cst_10 : f32 to vector<8x16x16xf32>
    %28 = arith.maximumf %25, %27 : vector<8x16x16xf32>
    %c0_11 = arith.constant 0 : index
    %c0_12 = arith.constant 0 : index
    %29 = vector.load %arg5[%c0_11, %c0_12] : memref<16x48xf32, #tpu.memory_space<vmem>>, vector<16x48xf32>
    %30 = vector.shape_cast %28 : vector<8x16x16xf32> to vector<128x16xf32>
    %cst_13 = arith.constant dense<0.000000e+00> : vector<128x48xf32>
    %31 = tpu.matmul %30, %29, %cst_13 {dimension_numbers = #tpu.dot_dimension_numbers<[1], [0], [0], [1], [0, 0, 1, 1], [], []>} : vector<128x16xf32>, vector<16x48xf32>, vector<128x48xf32> -> vector<128x48xf32>
    %32 = vector.shape_cast %31 : vector<128x48xf32> to vector<8x16x48xf32>
    %33 = vector.extract_strided_slice %32 {offsets = [0, 0, 32], sizes = [8, 16, 16], strides = [1, 1, 1]} : vector<8x16x48xf32> to vector<8x16x16xf32>
    %34 = vector.extract_strided_slice %32 {offsets = [0, 0, 0], sizes = [8, 16, 16], strides = [1, 1, 1]} : vector<8x16x48xf32> to vector<8x16x16xf32>
    %c2_i32_14 = arith.constant 2 : i32
    %35 = tpu.dynamic_rotate %34 by %c2_i32_14 dim 1 : vector<8x16x16xf32>, i32 -> vector<8x16x16xf32>
    %36 = tpu.iota {dimensions = array<i32: 1>} : vector<8x16x16xi32>
    %c2_i32_15 = arith.constant 2 : i32
    %37 = vector.broadcast %c2_i32_15 : i32 to vector<8x16x16xi32>
    %38 = arith.cmpi sge, %36, %37 : vector<8x16x16xi32>
    %cst_16 = arith.constant 0.000000e+00 : f32
    %39 = vector.broadcast %cst_16 : f32 to vector<8x16x16xf32>
    %40 = arith.select %38, %35, %39 : vector<8x16x16xi1>, vector<8x16x16xf32>
    %41 = arith.addf %33, %40 : vector<8x16x16xf32>
    %42 = vector.extract_strided_slice %32 {offsets = [0, 0, 16], sizes = [8, 16, 16], strides = [1, 1, 1]} : vector<8x16x48xf32> to vector<8x16x16xf32>
    %c1_i32_17 = arith.constant 1 : i32
    %43 = tpu.dynamic_rotate %42 by %c1_i32_17 dim 1 : vector<8x16x16xf32>, i32 -> vector<8x16x16xf32>
    %44 = tpu.iota {dimensions = array<i32: 1>} : vector<8x16x16xi32>
    %c1_i32_18 = arith.constant 1 : i32
    %45 = vector.broadcast %c1_i32_18 : i32 to vector<8x16x16xi32>
    %46 = arith.cmpi sge, %44, %45 : vector<8x16x16xi32>
    %cst_19 = arith.constant 0.000000e+00 : f32
    %47 = vector.broadcast %cst_19 : f32 to vector<8x16x16xf32>
    %48 = arith.select %46, %43, %47 : vector<8x16x16xi1>, vector<8x16x16xf32>
    %49 = arith.addf %41, %48 : vector<8x16x16xf32>
    %c0_20 = arith.constant 0 : index
    %c0_21 = arith.constant 0 : index
    %50 = vector.load %arg6[%c0_20, %c0_21] : memref<1x16xf32, #tpu.memory_space<vmem>>, vector<1x16xf32>
    %51 = vector.shape_cast %50 : vector<1x16xf32> to vector<1x1x16xf32>
    %52 = vector.broadcast %51 : vector<1x1x16xf32> to vector<8x16x16xf32>
    %53 = arith.addf %49, %52 : vector<8x16x16xf32>
    %cst_22 = arith.constant 0.000000e+00 : f32
    %54 = vector.broadcast %cst_22 : f32 to vector<8x16x16xf32>
    %55 = arith.maximumf %53, %54 : vector<8x16x16xf32>
    %c0_23 = arith.constant 0 : index
    %c0_24 = arith.constant 0 : index
    %56 = vector.load %arg4[%c0_23, %c0_24] : memref<1x16xf32, #tpu.memory_space<vmem>>, vector<1x16xf32>
    %57 = vector.shape_cast %56 : vector<1x16xf32> to vector<1x1x16xf32>
    %58 = vector.broadcast %57 : vector<1x1x16xf32> to vector<8x16x16xf32>
    %59 = arith.addf %26, %58 : vector<8x16x16xf32>
    %60 = arith.addf %55, %59 : vector<8x16x16xf32>
    %cst_25 = arith.constant 0.000000e+00 : f32
    %61 = vector.broadcast %cst_25 : f32 to vector<8x16x16xf32>
    %62 = arith.maximumf %60, %61 : vector<8x16x16xf32>
    %c0_26 = arith.constant 0 : index
    %c0_27 = arith.constant 0 : index
    %63 = vector.load %arg7[%c0_26, %c0_27] : memref<16x128xf32, #tpu.memory_space<vmem>>, vector<16x128xf32>
    %64 = vector.shape_cast %62 : vector<8x16x16xf32> to vector<128x16xf32>
    %cst_28 = arith.constant dense<0.000000e+00> : vector<128x128xf32>
    %65 = tpu.matmul %64, %63, %cst_28 {dimension_numbers = #tpu.dot_dimension_numbers<[1], [0], [0], [1], [0, 0, 1, 1], [], []>} : vector<128x16xf32>, vector<16x128xf32>, vector<128x128xf32> -> vector<128x128xf32>
    %66 = vector.shape_cast %65 : vector<128x128xf32> to vector<8x16x128xf32>
    %67 = vector.extract_strided_slice %66 {offsets = [0, 0, 64], sizes = [8, 16, 32], strides = [1, 1, 1]} : vector<8x16x128xf32> to vector<8x16x32xf32>
    %68 = vector.extract_strided_slice %66 {offsets = [0, 0, 0], sizes = [8, 16, 32], strides = [1, 1, 1]} : vector<8x16x128xf32> to vector<8x16x32xf32>
    %c4_i32 = arith.constant 4 : i32
    %69 = tpu.dynamic_rotate %68 by %c4_i32 dim 1 : vector<8x16x32xf32>, i32 -> vector<8x16x32xf32>
    %70 = tpu.iota {dimensions = array<i32: 1>} : vector<8x16x32xi32>
    %c4_i32_29 = arith.constant 4 : i32
    %71 = vector.broadcast %c4_i32_29 : i32 to vector<8x16x32xi32>
    %72 = arith.cmpi sge, %70, %71 : vector<8x16x32xi32>
    %cst_30 = arith.constant 0.000000e+00 : f32
    %73 = vector.broadcast %cst_30 : f32 to vector<8x16x32xf32>
    %74 = arith.select %72, %69, %73 : vector<8x16x32xi1>, vector<8x16x32xf32>
    %75 = arith.addf %67, %74 : vector<8x16x32xf32>
    %76 = vector.extract_strided_slice %66 {offsets = [0, 0, 32], sizes = [8, 16, 32], strides = [1, 1, 1]} : vector<8x16x128xf32> to vector<8x16x32xf32>
    %c2_i32_31 = arith.constant 2 : i32
    %77 = tpu.dynamic_rotate %76 by %c2_i32_31 dim 1 : vector<8x16x32xf32>, i32 -> vector<8x16x32xf32>
    %78 = tpu.iota {dimensions = array<i32: 1>} : vector<8x16x32xi32>
    %c2_i32_32 = arith.constant 2 : i32
    %79 = vector.broadcast %c2_i32_32 : i32 to vector<8x16x32xi32>
    %80 = arith.cmpi sge, %78, %79 : vector<8x16x32xi32>
    %cst_33 = arith.constant 0.000000e+00 : f32
    %81 = vector.broadcast %cst_33 : f32 to vector<8x16x32xf32>
    %82 = arith.select %80, %77, %81 : vector<8x16x32xi1>, vector<8x16x32xf32>
    %83 = arith.addf %75, %82 : vector<8x16x32xf32>
    %c0_34 = arith.constant 0 : index
    %c0_35 = arith.constant 0 : index
    %84 = vector.load %arg8[%c0_34, %c0_35] : memref<1x32xf32, #tpu.memory_space<vmem>>, vector<1x32xf32>
    %85 = vector.shape_cast %84 : vector<1x32xf32> to vector<1x1x32xf32>
    %86 = vector.broadcast %85 : vector<1x1x32xf32> to vector<8x16x32xf32>
    %87 = arith.addf %83, %86 : vector<8x16x32xf32>
    %88 = vector.extract_strided_slice %66 {offsets = [0, 0, 96], sizes = [8, 16, 32], strides = [1, 1, 1]} : vector<8x16x128xf32> to vector<8x16x32xf32>
    %cst_36 = arith.constant 0.000000e+00 : f32
    %89 = vector.broadcast %cst_36 : f32 to vector<8x16x32xf32>
    %90 = arith.maximumf %87, %89 : vector<8x16x32xf32>
    %c0_37 = arith.constant 0 : index
    %c0_38 = arith.constant 0 : index
    %91 = vector.load %arg10[%c0_37, %c0_38] : memref<32x96xf32, #tpu.memory_space<vmem>>, vector<32x96xf32>
    %92 = vector.shape_cast %90 : vector<8x16x32xf32> to vector<128x32xf32>
    %cst_39 = arith.constant dense<0.000000e+00> : vector<128x96xf32>
    %93 = tpu.matmul %92, %91, %cst_39 {dimension_numbers = #tpu.dot_dimension_numbers<[1], [0], [0], [1], [0, 0, 1, 1], [], []>} : vector<128x32xf32>, vector<32x96xf32>, vector<128x96xf32> -> vector<128x96xf32>
    %94 = vector.shape_cast %93 : vector<128x96xf32> to vector<8x16x96xf32>
    %95 = vector.extract_strided_slice %94 {offsets = [0, 0, 64], sizes = [8, 16, 32], strides = [1, 1, 1]} : vector<8x16x96xf32> to vector<8x16x32xf32>
    %96 = vector.extract_strided_slice %94 {offsets = [0, 0, 0], sizes = [8, 16, 32], strides = [1, 1, 1]} : vector<8x16x96xf32> to vector<8x16x32xf32>
    %c4_i32_40 = arith.constant 4 : i32
    %97 = tpu.dynamic_rotate %96 by %c4_i32_40 dim 1 : vector<8x16x32xf32>, i32 -> vector<8x16x32xf32>
    %98 = tpu.iota {dimensions = array<i32: 1>} : vector<8x16x32xi32>
    %c4_i32_41 = arith.constant 4 : i32
    %99 = vector.broadcast %c4_i32_41 : i32 to vector<8x16x32xi32>
    %100 = arith.cmpi sge, %98, %99 : vector<8x16x32xi32>
    %cst_42 = arith.constant 0.000000e+00 : f32
    %101 = vector.broadcast %cst_42 : f32 to vector<8x16x32xf32>
    %102 = arith.select %100, %97, %101 : vector<8x16x32xi1>, vector<8x16x32xf32>
    %103 = arith.addf %95, %102 : vector<8x16x32xf32>
    %104 = vector.extract_strided_slice %94 {offsets = [0, 0, 32], sizes = [8, 16, 32], strides = [1, 1, 1]} : vector<8x16x96xf32> to vector<8x16x32xf32>
    %c2_i32_43 = arith.constant 2 : i32
    %105 = tpu.dynamic_rotate %104 by %c2_i32_43 dim 1 : vector<8x16x32xf32>, i32 -> vector<8x16x32xf32>
    %106 = tpu.iota {dimensions = array<i32: 1>} : vector<8x16x32xi32>
    %c2_i32_44 = arith.constant 2 : i32
    %107 = vector.broadcast %c2_i32_44 : i32 to vector<8x16x32xi32>
    %108 = arith.cmpi sge, %106, %107 : vector<8x16x32xi32>
    %cst_45 = arith.constant 0.000000e+00 : f32
    %109 = vector.broadcast %cst_45 : f32 to vector<8x16x32xf32>
    %110 = arith.select %108, %105, %109 : vector<8x16x32xi1>, vector<8x16x32xf32>
    %111 = arith.addf %103, %110 : vector<8x16x32xf32>
    %c0_46 = arith.constant 0 : index
    %c0_47 = arith.constant 0 : index
    %112 = vector.load %arg11[%c0_46, %c0_47] : memref<1x32xf32, #tpu.memory_space<vmem>>, vector<1x32xf32>
    %113 = vector.shape_cast %112 : vector<1x32xf32> to vector<1x1x32xf32>
    %114 = vector.broadcast %113 : vector<1x1x32xf32> to vector<8x16x32xf32>
    %115 = arith.addf %111, %114 : vector<8x16x32xf32>
    %cst_48 = arith.constant 0.000000e+00 : f32
    %116 = vector.broadcast %cst_48 : f32 to vector<8x16x32xf32>
    %117 = arith.maximumf %115, %116 : vector<8x16x32xf32>
    %c0_49 = arith.constant 0 : index
    %c0_50 = arith.constant 0 : index
    %118 = vector.load %arg9[%c0_49, %c0_50] : memref<1x32xf32, #tpu.memory_space<vmem>>, vector<1x32xf32>
    %119 = vector.shape_cast %118 : vector<1x32xf32> to vector<1x1x32xf32>
    %120 = vector.broadcast %119 : vector<1x1x32xf32> to vector<8x16x32xf32>
    %121 = arith.addf %88, %120 : vector<8x16x32xf32>
    %122 = arith.addf %117, %121 : vector<8x16x32xf32>
    %cst_51 = arith.constant 0.000000e+00 : f32
    %123 = vector.broadcast %cst_51 : f32 to vector<8x16x32xf32>
    %124 = arith.maximumf %122, %123 : vector<8x16x32xf32>
    %c0_52 = arith.constant 0 : index
    %c0_53 = arith.constant 0 : index
    %125 = vector.load %arg12[%c0_52, %c0_53] : memref<32x256xf32, #tpu.memory_space<vmem>>, vector<32x256xf32>
    %126 = vector.shape_cast %124 : vector<8x16x32xf32> to vector<128x32xf32>
    %cst_54 = arith.constant dense<0.000000e+00> : vector<128x256xf32>
    %127 = tpu.matmul %126, %125, %cst_54 {dimension_numbers = #tpu.dot_dimension_numbers<[1], [0], [0], [1], [0, 0, 1, 1], [], []>} : vector<128x32xf32>, vector<32x256xf32>, vector<128x256xf32> -> vector<128x256xf32>
    %128 = vector.shape_cast %127 : vector<128x256xf32> to vector<8x16x256xf32>
    %129 = vector.extract_strided_slice %128 {offsets = [0, 0, 128], sizes = [8, 16, 64], strides = [1, 1, 1]} : vector<8x16x256xf32> to vector<8x16x64xf32>
    %130 = vector.extract_strided_slice %128 {offsets = [0, 0, 0], sizes = [8, 16, 64], strides = [1, 1, 1]} : vector<8x16x256xf32> to vector<8x16x64xf32>
    %c8_i32 = arith.constant 8 : i32
    %131 = tpu.dynamic_rotate %130 by %c8_i32 dim 1 : vector<8x16x64xf32>, i32 -> vector<8x16x64xf32>
    %132 = tpu.iota {dimensions = array<i32: 1>} : vector<8x16x64xi32>
    %c8_i32_55 = arith.constant 8 : i32
    %133 = vector.broadcast %c8_i32_55 : i32 to vector<8x16x64xi32>
    %134 = arith.cmpi sge, %132, %133 : vector<8x16x64xi32>
    %cst_56 = arith.constant 0.000000e+00 : f32
    %135 = vector.broadcast %cst_56 : f32 to vector<8x16x64xf32>
    %136 = arith.select %134, %131, %135 : vector<8x16x64xi1>, vector<8x16x64xf32>
    %137 = arith.addf %129, %136 : vector<8x16x64xf32>
    %138 = vector.extract_strided_slice %128 {offsets = [0, 0, 64], sizes = [8, 16, 64], strides = [1, 1, 1]} : vector<8x16x256xf32> to vector<8x16x64xf32>
    %c4_i32_57 = arith.constant 4 : i32
    %139 = tpu.dynamic_rotate %138 by %c4_i32_57 dim 1 : vector<8x16x64xf32>, i32 -> vector<8x16x64xf32>
    %140 = tpu.iota {dimensions = array<i32: 1>} : vector<8x16x64xi32>
    %c4_i32_58 = arith.constant 4 : i32
    %141 = vector.broadcast %c4_i32_58 : i32 to vector<8x16x64xi32>
    %142 = arith.cmpi sge, %140, %141 : vector<8x16x64xi32>
    %cst_59 = arith.constant 0.000000e+00 : f32
    %143 = vector.broadcast %cst_59 : f32 to vector<8x16x64xf32>
    %144 = arith.select %142, %139, %143 : vector<8x16x64xi1>, vector<8x16x64xf32>
    %145 = arith.addf %137, %144 : vector<8x16x64xf32>
    %c0_60 = arith.constant 0 : index
    %c0_61 = arith.constant 0 : index
    %146 = vector.load %arg13[%c0_60, %c0_61] : memref<1x64xf32, #tpu.memory_space<vmem>>, vector<1x64xf32>
    %147 = vector.shape_cast %146 : vector<1x64xf32> to vector<1x1x64xf32>
    %148 = vector.broadcast %147 : vector<1x1x64xf32> to vector<8x16x64xf32>
    %149 = arith.addf %145, %148 : vector<8x16x64xf32>
    %150 = vector.extract_strided_slice %128 {offsets = [0, 0, 192], sizes = [8, 16, 64], strides = [1, 1, 1]} : vector<8x16x256xf32> to vector<8x16x64xf32>
    %cst_62 = arith.constant 0.000000e+00 : f32
    %151 = vector.broadcast %cst_62 : f32 to vector<8x16x64xf32>
    %152 = arith.maximumf %149, %151 : vector<8x16x64xf32>
    %c0_63 = arith.constant 0 : index
    %c0_64 = arith.constant 0 : index
    %153 = vector.load %arg15[%c0_63, %c0_64] : memref<64x192xf32, #tpu.memory_space<vmem>>, vector<64x192xf32>
    %154 = vector.shape_cast %152 : vector<8x16x64xf32> to vector<128x64xf32>
    %cst_65 = arith.constant dense<0.000000e+00> : vector<128x192xf32>
    %155 = tpu.matmul %154, %153, %cst_65 {dimension_numbers = #tpu.dot_dimension_numbers<[1], [0], [0], [1], [0, 0, 1, 1], [], []>} : vector<128x64xf32>, vector<64x192xf32>, vector<128x192xf32> -> vector<128x192xf32>
    %156 = vector.shape_cast %155 : vector<128x192xf32> to vector<8x16x192xf32>
    %157 = vector.extract_strided_slice %156 {offsets = [0, 0, 128], sizes = [8, 16, 64], strides = [1, 1, 1]} : vector<8x16x192xf32> to vector<8x16x64xf32>
    %158 = vector.extract_strided_slice %156 {offsets = [0, 0, 0], sizes = [8, 16, 64], strides = [1, 1, 1]} : vector<8x16x192xf32> to vector<8x16x64xf32>
    %c8_i32_66 = arith.constant 8 : i32
    %159 = tpu.dynamic_rotate %158 by %c8_i32_66 dim 1 : vector<8x16x64xf32>, i32 -> vector<8x16x64xf32>
    %160 = tpu.iota {dimensions = array<i32: 1>} : vector<8x16x64xi32>
    %c8_i32_67 = arith.constant 8 : i32
    %161 = vector.broadcast %c8_i32_67 : i32 to vector<8x16x64xi32>
    %162 = arith.cmpi sge, %160, %161 : vector<8x16x64xi32>
    %cst_68 = arith.constant 0.000000e+00 : f32
    %163 = vector.broadcast %cst_68 : f32 to vector<8x16x64xf32>
    %164 = arith.select %162, %159, %163 : vector<8x16x64xi1>, vector<8x16x64xf32>
    %165 = arith.addf %157, %164 : vector<8x16x64xf32>
    %166 = vector.extract_strided_slice %156 {offsets = [0, 0, 64], sizes = [8, 16, 64], strides = [1, 1, 1]} : vector<8x16x192xf32> to vector<8x16x64xf32>
    %c4_i32_69 = arith.constant 4 : i32
    %167 = tpu.dynamic_rotate %166 by %c4_i32_69 dim 1 : vector<8x16x64xf32>, i32 -> vector<8x16x64xf32>
    %168 = tpu.iota {dimensions = array<i32: 1>} : vector<8x16x64xi32>
    %c4_i32_70 = arith.constant 4 : i32
    %169 = vector.broadcast %c4_i32_70 : i32 to vector<8x16x64xi32>
    %170 = arith.cmpi sge, %168, %169 : vector<8x16x64xi32>
    %cst_71 = arith.constant 0.000000e+00 : f32
    %171 = vector.broadcast %cst_71 : f32 to vector<8x16x64xf32>
    %172 = arith.select %170, %167, %171 : vector<8x16x64xi1>, vector<8x16x64xf32>
    %173 = arith.addf %165, %172 : vector<8x16x64xf32>
    %c0_72 = arith.constant 0 : index
    %c0_73 = arith.constant 0 : index
    %174 = vector.load %arg16[%c0_72, %c0_73] : memref<1x64xf32, #tpu.memory_space<vmem>>, vector<1x64xf32>
    %175 = vector.shape_cast %174 : vector<1x64xf32> to vector<1x1x64xf32>
    %176 = vector.broadcast %175 : vector<1x1x64xf32> to vector<8x16x64xf32>
    %177 = arith.addf %173, %176 : vector<8x16x64xf32>
    %cst_74 = arith.constant 0.000000e+00 : f32
    %178 = vector.broadcast %cst_74 : f32 to vector<8x16x64xf32>
    %179 = arith.maximumf %177, %178 : vector<8x16x64xf32>
    %c0_75 = arith.constant 0 : index
    %c0_76 = arith.constant 0 : index
    %180 = vector.load %arg14[%c0_75, %c0_76] : memref<1x64xf32, #tpu.memory_space<vmem>>, vector<1x64xf32>
    %181 = vector.shape_cast %180 : vector<1x64xf32> to vector<1x1x64xf32>
    %182 = vector.broadcast %181 : vector<1x1x64xf32> to vector<8x16x64xf32>
    %183 = arith.addf %150, %182 : vector<8x16x64xf32>
    %184 = arith.addf %179, %183 : vector<8x16x64xf32>
    %cst_77 = arith.constant 0.000000e+00 : f32
    %185 = vector.broadcast %cst_77 : f32 to vector<8x16x64xf32>
    %186 = arith.maximumf %184, %185 : vector<8x16x64xf32>
    %c0_78 = arith.constant 0 : index
    %c0_79 = arith.constant 0 : index
    %187 = vector.load %arg17[%c0_78, %c0_79] : memref<64x64xf32, #tpu.memory_space<vmem>>, vector<64x64xf32>
    %188 = vector.shape_cast %186 : vector<8x16x64xf32> to vector<128x64xf32>
    %cst_80 = arith.constant dense<0.000000e+00> : vector<128x64xf32>
    %189 = tpu.matmul %188, %187, %cst_80 {dimension_numbers = #tpu.dot_dimension_numbers<[1], [0], [0], [1], [0, 0, 1, 1], [], []>} : vector<128x64xf32>, vector<64x64xf32>, vector<128x64xf32> -> vector<128x64xf32>
    %190 = vector.shape_cast %189 : vector<128x64xf32> to vector<8x16x64xf32>
    %c0_81 = arith.constant 0 : index
    %c0_82 = arith.constant 0 : index
    %191 = vector.load %arg18[%c0_81, %c0_82] : memref<1x64xf32, #tpu.memory_space<vmem>>, vector<1x64xf32>
    %192 = vector.shape_cast %191 : vector<1x64xf32> to vector<1x1x64xf32>
    %193 = vector.broadcast %192 : vector<1x1x64xf32> to vector<8x16x64xf32>
    %194 = arith.addf %190, %193 : vector<8x16x64xf32>
    %c0_83 = arith.constant 0 : index
    %c0_84 = arith.constant 0 : index
    %c0_85 = arith.constant 0 : index
    %195 = vector.load %arg19[%c0_83, %c0_84, %c0_85] : memref<8x16x64xf32, #tpu.memory_space<vmem>>, vector<8x16x64xf32>
    tpu.vector_store %arg19[%c0_83, %c0_84, %c0_85], %194 {strides = array<i32>} : memref<8x16x64xf32, #tpu.memory_space<vmem>>, vector<8x16x64xf32>,
    return
  }
  func.func @transform_0(%arg0: i32) -> (i32, i32, i32) {
    %c0_i32 = arith.constant 0 : i32
    %c0_i32_0 = arith.constant 0 : i32
    %c0_i32_1 = arith.constant 0 : i32
    return %arg0, %c0_i32, %c0_i32_0 : i32, i32, i32
  }
  func.func @transform_1(%arg0: i32) -> (i32, i32) {
    %c0_i32 = arith.constant 0 : i32
    %c0_i32_0 = arith.constant 0 : i32
    %c0_i32_1 = arith.constant 0 : i32
    return %c0_i32, %c0_i32_0 : i32, i32
  }
  func.func @transform_2(%arg0: i32) -> (i32, i32) {
    %c0_i32 = arith.constant 0 : i32
    %c0_i32_0 = arith.constant 0 : i32
    %c0_i32_1 = arith.constant 0 : i32
    return %c0_i32, %c0_i32_0 : i32, i32
  }
  func.func @transform_3(%arg0: i32) -> (i32, i32) {
    %c0_i32 = arith.constant 0 : i32
    %c0_i32_0 = arith.constant 0 : i32
    %c0_i32_1 = arith.constant 0 : i32
    return %c0_i32, %c0_i32_0 : i32, i32
  }
  func.func @transform_4(%arg0: i32) -> (i32, i32) {
    %c0_i32 = arith.constant 0 : i32
    %c0_i32_0 = arith.constant 0 : i32
    %c0_i32_1 = arith.constant 0 : i32
    return %c0_i32, %c0_i32_0 : i32, i32
  }
  func.func @transform_5(%arg0: i32) -> (i32, i32) {
    %c0_i32 = arith.constant 0 : i32
    %c0_i32_0 = arith.constant 0 : i32
    %c0_i32_1 = arith.constant 0 : i32
    return %c0_i32, %c0_i32_0 : i32, i32
  }
  func.func @transform_6(%arg0: i32) -> (i32, i32) {
    %c0_i32 = arith.constant 0 : i32
    %c0_i32_0 = arith.constant 0 : i32
    %c0_i32_1 = arith.constant 0 : i32
    return %c0_i32, %c0_i32_0 : i32, i32
  }
  func.func @transform_7(%arg0: i32) -> (i32, i32) {
    %c0_i32 = arith.constant 0 : i32
    %c0_i32_0 = arith.constant 0 : i32
    %c0_i32_1 = arith.constant 0 : i32
    return %c0_i32, %c0_i32_0 : i32, i32
  }
  func.func @transform_8(%arg0: i32) -> (i32, i32) {
    %c0_i32 = arith.constant 0 : i32
    %c0_i32_0 = arith.constant 0 : i32
    %c0_i32_1 = arith.constant 0 : i32
    return %c0_i32, %c0_i32_0 : i32, i32
  }
  func.func @transform_9(%arg0: i32) -> (i32, i32) {
    %c0_i32 = arith.constant 0 : i32
    %c0_i32_0 = arith.constant 0 : i32
    %c0_i32_1 = arith.constant 0 : i32
    return %c0_i32, %c0_i32_0 : i32, i32
  }
  func.func @transform_10(%arg0: i32) -> (i32, i32) {
    %c0_i32 = arith.constant 0 : i32
    %c0_i32_0 = arith.constant 0 : i32
    %c0_i32_1 = arith.constant 0 : i32
    return %c0_i32, %c0_i32_0 : i32, i32
  }
  func.func @transform_11(%arg0: i32) -> (i32, i32) {
    %c0_i32 = arith.constant 0 : i32
    %c0_i32_0 = arith.constant 0 : i32
    %c0_i32_1 = arith.constant 0 : i32
    return %c0_i32, %c0_i32_0 : i32, i32
  }
  func.func @transform_12(%arg0: i32) -> (i32, i32) {
    %c0_i32 = arith.constant 0 : i32
    %c0_i32_0 = arith.constant 0 : i32
    %c0_i32_1 = arith.constant 0 : i32
    return %c0_i32, %c0_i32_0 : i32, i32
  }
  func.func @transform_13(%arg0: i32) -> (i32, i32) {
    %c0_i32 = arith.constant 0 : i32
    %c0_i32_0 = arith.constant 0 : i32
    %c0_i32_1 = arith.constant 0 : i32
    return %c0_i32, %c0_i32_0 : i32, i32
  }
  func.func @transform_14(%arg0: i32) -> (i32, i32) {
    %c0_i32 = arith.constant 0 : i32
    %c0_i32_0 = arith.constant 0 : i32
    %c0_i32_1 = arith.constant 0 : i32
    return %c0_i32, %c0_i32_0 : i32, i32
  }
  func.func @transform_15(%arg0: i32) -> (i32, i32) {
    %c0_i32 = arith.constant 0 : i32
    %c0_i32_0 = arith.constant 0 : i32
    %c0_i32_1 = arith.constant 0 : i32
    return %c0_i32, %c0_i32_0 : i32, i32
  }
  func.func @transform_16(%arg0: i32) -> (i32, i32) {
    %c0_i32 = arith.constant 0 : i32
    %c0_i32_0 = arith.constant 0 : i32
    %c0_i32_1 = arith.constant 0 : i32
    return %c0_i32, %c0_i32_0 : i32, i32
  }
  func.func @transform_17(%arg0: i32) -> (i32, i32) {
    %c0_i32 = arith.constant 0 : i32
    %c0_i32_0 = arith.constant 0 : i32
    %c0_i32_1 = arith.constant 0 : i32
    return %c0_i32, %c0_i32_0 : i32, i32
  }
  func.func @transform_18(%arg0: i32) -> (i32, i32, i32) {
    %c0_i32 = arith.constant 0 : i32
    %c0_i32_0 = arith.constant 0 : i32
    %c0_i32_1 = arith.constant 0 : i32
    return %arg0, %c0_i32, %c0_i32_0 : i32, i32, i32
  }
}

</mosaic_0001>

<bundles_post_ra>
// kernel: tcn2d_forward.1
= control target key start
LH: loop header
LB: loop body
LE: loop exit
PB: predicated region body
PF: predicated region fallthrough
CT: control target
= control target key end

     0   :  { %s7118_s0 = inlined_call_operand.vmem [shape: f32[16,16,16], index: 0, kind: input, shape index: {}]   ;;  %s7119_s1 = inlined_call_operand.vmem [shape: f32[16,64], index: 1, kind: input, shape index: {}]   ;;  %s7120_s2 = inlined_call_operand.vmem [shape: f32[1,16], index: 2, kind: input, shape index: {}]   ;;  %s7121_s3 = inlined_call_operand.vmem [shape: f32[1,16], index: 3, kind: input, shape index: {}]   ;;  %s7122_s4 = inlined_call_operand.vmem [shape: f32[16,48], index: 4, kind: input, shape index: {}]   ;;  %s7123_s5 = inlined_call_operand.vmem [shape: f32[1,16], index: 5, kind: input, shape index: {}]   ;;  %s7124_s6 = inlined_call_operand.vmem [shape: f32[16,128], index: 6, kind: input, shape index: {}]   ;;  %s7125_s7 = inlined_call_operand.vmem [shape: f32[1,32], index: 7, kind: input, shape index: {}]   ;;  %s7126_s8 = inlined_call_operand.vmem [shape: f32[1,32], index: 8, kind: input, shape index: {}]   ;;  %s7127_s9 = inlined_call_operand.vmem [shape: f32[32,96], index: 9, kind: input, shape index: {}]   ;;  %s7128_s10 = inlined_call_operand.vmem [shape: f32[1,32], index: 10, kind: input, shape index: {}]   ;;  %s7129_s11 = inlined_call_operand.vmem [shape: f32[32,256], index: 11, kind: input, shape index: {}]   ;;  %s7130_s12 = inlined_call_operand.vmem [shape: f32[1,64], index: 12, kind: input, shape index: {}]   ;;  %s7131_s13 = inlined_call_operand.vmem [shape: f32[1,64], index: 13, kind: input, shape index: {}]   ;;  %s7132_s14 = inlined_call_operand.vmem [shape: f32[64,192], index: 14, kind: input, shape index: {}]   ;;  %s7133_s15 = inlined_call_operand.vmem [shape: f32[1,64], index: 15, kind: input, shape index: {}]   ;;  %s7134_s16 = inlined_call_operand.vmem [shape: f32[64,64], index: 16, kind: input, shape index: {}]   ;;  %s7135_s17 = inlined_call_operand.vmem [shape: f32[1,64], index: 17, kind: input, shape index: {}]   ;;  %s7136_s18 = inlined_call_operand.hbm [shape: f32[16,16,64], index: 18, kind: output, shape index: {}]  }
   0x1   :  { %7145 = sst [smem:[#allocation8_spill]] %s7118_s0 }
   0x2   :  { %7146 = sst [smem:[#allocation9_spill]] %s7119_s1 }
   0x3   :  { %7147 = sst [smem:[#allocation10_spill]] %s7120_s2 }
   0x4   :  { %7148 = sst [smem:[#allocation11_spill]] %s7121_s3 }
   0x5   :  { %7149 = sst [smem:[#allocation12_spill]] %s7122_s4 }
   0x6   :  { %7150 = sst [smem:[#allocation13_spill]] %s7123_s5 }
   0x7   :  { %23 = vsyncpa [#allocation3], 0 }
   0x8   :  { %25 = vsyncpa [#allocation3 + $0x1], 0  ;;  %s5097_s27 = smov 0   ;;  %s5099_s28 = smov 0  }
   0x9   :  { %s5101_s29 = smov 0   ;;  %s5103_s30 = smov 0  }
   0xa LB: > { %7151 = sst [smem:[#allocation5_spill]] %s4987_s29  ;;  %s5118_s0 = sadd.s32 4294967295, %s4991_s30   ;;  %s4991_s30 = sphi %s5103_s30, %s7164_s30   ;;  %s4987_s29 = sphi %s5101_s29, %s7166_s29   ;;  %s4983_s28 = sphi %s5099_s28, %s7168_s28   ;;  %s4979_s27 = sphi %s5097_s27, %s7167_s27  }
   0xb   : > { %s4487_s19 = sadd.s32 4294967294, %s4991_s30   ;;  %s5122_s1 = sadd.s32 1, %s4991_s30  }
   0xc   : > { %7152 = sst [smem:[#allocation6_spill]] %s5122_s1  ;;  %s421_s20 = sadd.s32 1, %s4987_s29 }
   0xd   : > { %s418_s21 = ssub.s32 %s4991_s30, %s5122_s1  ;;  %p431_p0 = scmp.ne.s32.totalorder %s4987_s29, %s4983_s28 }
   0xe   : > { %p419_p1 = scmp.eq.s32.totalorder %s418_s21, 0  ;;  %p432_p2 = scmp.eq.s32.totalorder %s5118_s0, 1 }
   0xf   : > { %p437_p3 = scmp.ne.s32.totalorder %s4983_s28, %s4979_s27  ;;  %p438_p4 = scmp.eq.s32.totalorder %s4487_s19, 1 }
  0x10   : > { %s5133_s22 = scalar_select %p419_p1, %s4987_s29, %s421_s20  }
  0x11   : > { %p5135_p5 = por %p432_p2, %p431_p0  ;;  %p5139_p6 = por %p438_p4, %p437_p3 }
  0x12   : > { %7153 = sst [smem:[#allocation7_spill]] %s5133_s22  ;;  %p4490_p7 = scmp.ge.s32.totalorder %s4991_s30, 1 }
  0x13   : > { %p517_p8 = scmp.lt.s32.totalorder %s4991_s30, 3 }
  0x15   : > { %p518_p9 = pnand %p4490_p7, %p517_p8 }
  0x16   : > { %s7156_s26 = sld [smem:[#allocation9_spill]] (!%p518_p9)  ;;  %s4492_s21 = sshll.u32 (!%p518_p9), %s5118_s0, 3 }
  0x17   : > { %521 = sbr.rel (%p518_p9) target bundleno = 3175 (0xc67), region = 92  ;;  %p573_p10 = scmp.lt.s32.totalorder (!%p518_p9), %s4492_s21, 15 }
  0x18   : > { %s7157_s29 = sld [smem:[#allocation8_spill]] (!%p518_p9)  ;;  %s7141_s19 = smov (!%p518_p9), 96  }
  0x19   : > { %s7158_s20 = sld [smem:[#allocation10_spill]] (!%p518_p9)  ;;  %s4996_s24 = smov (!%p518_p9), 48  }
  0x1a   : > { %s7159_s4 = sld [smem:[#allocation12_spill]] (!%p518_p9)  ;;  %s4625_s25 = sshll.u32 (!%p518_p9), %s5118_s0, 11 }
  0x1b   : > { %s7160_s3 = sld [smem:[#allocation11_spill]] (!%p518_p9) }
  0x1c   : > { %v597_v0 = vld [vmem:[%s7156_s26 + $0x8] sm:$0xff]  ;;  %v596_v1 = vld [vmem:[%s7156_s26] sm:$0xff]  ;;  %s7170_s21 = smov (!%p573_p10, %s4492_s21), 15  ;;  %vm598_vm0 = vcmask 130048   ;;  %v808_v30 = vlaneseq  ;;  %s7161_s5 = sld [smem:[#allocation13_spill]]  ;;  %vm2514_vm7 = vcmask 261120  }
  0x1d   : > { %4724 = vmatprep.subr.mxu0 %v597_v0  ;;  %4880 = vmatprep.subr.mxu1 %v597_v0  ;;  %s4623_s22 = sshll.u32 %s7170_s21, 4  ;;  %s7163_s21 = smov 64   ;;  %vm3640_vm8 = vcmask 523264  }
  0x1e   : > { %4725 = vmatpush3.msra.mxu0 %v597_v0  ;;  %4882 = vmatpush3.msra.mxu1 %v597_v0  ;;  %s577_s1 = scalar_lea.vmem %s7157_s29, %s4623_s22  ;;  %s4993_s29 = smov 112   ;;  %v5215_v32 = vshrl.u32 %v808_v30, 7 }
  0x1f   : > { %4726 = vmatprep.subr.mxu0 %v596_v1  ;;  %4881 = vmatprep.subr.mxu1 %v596_v1  ;;  %v580_v2 = vld [vmem:[%s577_s1] sm:$0xff]  ;;  %v581_v3 = vld [vmem:[%s577_s1 + $0x8] sm:$0xff]  ;;  %v582_v4 = vld [vmem:[%s577_s1 + $0x10] sm:$0xff]  ;;  %s4999_s22 = smov [#allocation2]  }
  0x20   : > { %4727 = vmatpush3.msra.mxu0 %v596_v1  ;;  %4883 = vmatpush3.msra.mxu1 %v596_v1  ;;  %v588_v5 = vld [vmem:[%s577_s1 + $0x40] sm:$0xff]  ;;  %v583_v6 = vld [vmem:[%s577_s1 + $0x18] sm:$0xff]  ;;  %v589_v7 = vld [vmem:[%s577_s1 + $0x48] sm:$0xff]  ;;  %vm810_vm1 = vcmp.lt.s32.totalorder %v5215_v32, 2  ;;  %vm828_vm2 = vcmp.ge.s32.totalorder %v5215_v32, 2  ;;  %vm1006_vm3 = vcmp.lt.s32.totalorder %v5215_v32, 1 }
  0x21   : > { %4728 = vmatprep.mubr.msk.f32.mxu0 %vm598_vm0, %v580_v2  ;;  %4740 = vmatprep.mubr.msk.f32.mxu1 %vm598_vm0, %v588_v5  ;;  %v590_v8 = vld [vmem:[%s577_s1 + $0x50] sm:$0xff]  ;;  %v584_v9 = vld [vmem:[%s577_s1 + $0x20] sm:$0xff]  ;;  %v591_v10 = vld [vmem:[%s577_s1 + $0x58] sm:$0xff]  ;;  %vm1023_vm4 = vcmp.ge.s32.totalorder %v5215_v32, 1  ;;  %vm2114_vm5 = vcmp.lt.s32.totalorder %v5215_v32, 4  ;;  %vm2131_vm6 = vcmp.ge.s32.totalorder %v5215_v32, 4 }
  0x22   : > { %4729 = vmatmul.mubr.msk.f32.vlgmr.msra.gmra.mxu0 %vm598_vm0, %v581_v3  ;;  %4741 = vmatmul.mubr.msk.f32.vlgmr.msra.gmra.mxu1 %vm598_vm0, %v589_v7  ;;  %v592_v11 = vld [vmem:[%s577_s1 + $0x60] sm:$0xff]  ;;  %v585_v12 = vld [vmem:[%s577_s1 + $0x28] sm:$0xff]  ;;  %v586_v13 = vld [vmem:[%s577_s1 + $0x30] sm:$0xff] }
  0x23   : > { %4731 = vmatprep.mubr.msk.f32.mxu0 %vm598_vm0, %v582_v4  ;;  %4743 = vmatprep.mubr.msk.f32.mxu1 %vm598_vm0, %v590_v8  ;;  %v593_v14 = vld [vmem:[%s577_s1 + $0x68] sm:$0xff]  ;;  %v594_v15 = vld [vmem:[%s577_s1 + $0x70] sm:$0xff]  ;;  %v587_v16 = vld [vmem:[%s577_s1 + $0x38] sm:$0xff] }
  0x24   : > { %v595_v17 = vld [vmem:[%s577_s1 + $0x78] sm:$0xff]  ;;  %s4994_s1 = smov 32   ;;  %v4511_v55 = vld [vmem:[%s7158_s20] ss:$0 sm:$0xff]  ;;  %s4935_s20 = sshll.u32 %s4999_s22, 4  ;;  %s4936_s20 = int_to_ptr.vmem [resolvable:$false] %s4935_s20 }
  0x26   : > { %4732 = vmatmul.mubr.msk.f32.gmra.mxu0 %vm598_vm0, %v583_v6  ;;  %4744 = vmatmul.mubr.msk.f32.gmra.mxu1 %vm598_vm0, %v591_v10 }
  0x27   : > { %4734 = vmatprep.mubr.msk.f32.mxu0 %vm598_vm0, %v584_v9  ;;  %4746 = vmatprep.mubr.msk.f32.mxu1 %vm598_vm0, %v592_v11 }
  0x2a   : > { %4735 = vmatmul.mubr.msk.f32.gmra.mxu0 %vm598_vm0, %v585_v12  ;;  %4747 = vmatmul.mubr.msk.f32.gmra.mxu1 %vm598_vm0, %v593_v14 }
  0x2b   : > { %4737 = vmatprep.mubr.msk.f32.mxu0 %vm598_vm0, %v586_v13  ;;  %4749 = vmatprep.mubr.msk.f32.mxu1 %vm598_vm0, %v594_v15 }
  0x2e   : > { %4738 = vmatmul.mubr.msk.f32.gmra.mxu0 %vm598_vm0, %v587_v16  ;;  %4750 = vmatmul.mubr.msk.f32.gmra.mxu1 %vm598_vm0, %v595_v17 }
  0xe2   : > { %v5171_v18 = vpop.f32.mrf.mxu0  ;;  %v5179_v21 = vpop.f32.mrf.mxu1 }
  0xe3   : > { %v800_v35 = vrot.slane %v5171_v18, 6  ;;  %v804_v17 = vrot.slane %v5179_v21, 6 }
  0xe4   : > { %v5173_v19 = vpop.f32.mrf.mxu0  ;;  %v5189_v24 = vpop.f32.mrf.mxu1 }
  0xe5   : > { %942 = vrot.lane.b32.xlu0 %v5173_v19, %s4993_s29  ;;  %v792_v33 = vrot.slane %v5173_v19, 6  ;;  %v796_v30 = vrot.slane %v5189_v24, 6 }
  0xe6   : > { %v5177_v20 = vpop.f32.mrf.mxu0  ;;  %v5199_v27 = vpop.f32.mrf.mxu1 }
  0xe7   : > { %v819_v36 = vsel %vm810_vm1, %v800_v35, %v792_v33  ;;  %v811_v40 = vsel %vm810_vm1, %v792_v33, %v800_v35  ;;  %v801_v42 = vrot.slane %v5177_v20, 6 }
  0xe8   : > { %v5181_v22 = vpop.f32.mrf.mxu0  ;;  %v5207_v29 = vpop.f32.mrf.mxu1  ;;  %v830_v37 = vsel %vm828_vm2, %v819_v36, 0.0 }
  0xe9   : > { %944 = vrot.lane.b32.xlu0 %v5171_v18, %s4993_s29  ;;  %946 = vrot.lane.b32.xlu1 %v5181_v22, %s4993_s29  ;;  %v793_v43 = vrot.slane %v5181_v22, 6 }
  0xea   : > { %v5187_v23 = vpop.f32.mrf.mxu0  ;;  %v5213_v31 = vpop.f32.mrf.mxu1 }
  0xeb   : > { %v820_v53 = vsel %vm810_vm1, %v801_v42, %v793_v43  ;;  %v802_v57 = vrot.slane %v5187_v23, 6  ;;  %v812_v1 = vsel %vm810_vm1, %v793_v43, %v801_v42  ;;  %v823_v43 = vsel %vm810_vm1, %v804_v17, %v796_v30 }
  0xec   : > { %v5191_v25 = vpop.f32.mrf.mxu0  ;;  %v5222_v34 = vpop.f32.mrf.mxu1  ;;  %v832_v56 = vsel %vm828_vm2, %v820_v53, 0.0 }
  0xed   : > { %948 = vrot.lane.b32.xlu1 %v5177_v20, %s4993_s29  ;;  %950 = vrot.lane.b32.xlu0 %v5191_v25, %s4993_s29  ;;  %v794_v58 = vrot.slane %v5191_v25, 6 }
  0xee   : > { %v5197_v26 = vpop.f32.mrf.mxu0  ;;  %v5235_v38 = vpop.f32.mrf.mxu1 }
  0xef   : > { %v821_v2 = vsel %vm810_vm1, %v802_v57, %v794_v58  ;;  %v803_v5 = vrot.slane %v5197_v26, 6  ;;  %v813_v13 = vsel %vm810_vm1, %v794_v58, %v802_v57 }
  0xf0   : > { %v5201_v28 = vpop.f32.mrf.mxu0  ;;  %v5240_v39 = vpop.f32.mrf.mxu1  ;;  %v834_v4 = vsel %vm828_vm2, %v821_v2, 0.0 }
  0xf1   : > { %952 = vrot.lane.b32.xlu1 %v5187_v23, %s4993_s29  ;;  %954 = vrot.lane.b32.xlu0 %v5201_v28, %s4993_s29  ;;  %v795_v6 = vrot.slane %v5201_v28, 6 }
  0xf3   : > { %v822_v14 = vsel %vm810_vm1, %v803_v5, %v795_v6  ;;  %v814_v42 = vsel %vm810_vm1, %v795_v6, %v803_v5 }
  0xf4   : > { %v836_v16 = vsel %vm828_vm2, %v822_v14, 0.0 }
  0xf5   : > { %956 = vrot.lane.b32.xlu1 %v5197_v26, %s4993_s29  ;;  %958 = vrot.lane.b32.xlu0 %v5189_v24, %s4993_s29 }
  0xf9   : > { %960 = vrot.lane.b32.xlu1 %v5179_v21, %s4993_s29  ;;  %962 = vrot.lane.b32.xlu0 %v5207_v29, %s4993_s29 }
  0xfd   : > { %964 = vrot.lane.b32.xlu1 %v5199_v27, %s4993_s29  ;;  %966 = vrot.lane.b32.xlu0 %v5222_v34, %s4993_s29 }
 0x101   : > { %968 = vrot.lane.b32.xlu1 %v5213_v31, %s4993_s29  ;;  %862 = vrot.lane.b32.xlu0 %v830_v37, %s4994_s1 }
 0x105   : > { %972 = vrot.lane.b32.xlu1 %v5235_v38, %s4993_s29  ;;  %970 = vrot.lane.b32.xlu0 %v5240_v39, %s4993_s29 }
 0x109   : > { %864 = vrot.lane.b32.xlu1 %v811_v40, %s4994_s1 }
 0x157   : > { %v943_v41 = vpop.permute.xlu0 %942 }
 0x158   : > { %v990_v46 = vrot.slane %v943_v41, 7 }
 0x15b   : > { %v945_v44 = vpop.permute.xlu0 %944  ;;  %v947_v45 = vpop.permute.xlu1 %946 }
 0x15c   : > { %v998_v47 = vrot.slane %v945_v44, 7  ;;  %v991_v50 = vrot.slane %v947_v45, 7 }
 0x15e   : > { %v1007_v48 = vsel %vm1006_vm3, %v990_v46, %v998_v47  ;;  %v1015_v49 = vsel %vm1006_vm3, %v998_v47, %v990_v46  ;;  %v838_v46 = vsel %vm828_vm2, %v823_v43, 0.0  ;;  %v805_v47 = vrot.slane %v5199_v27, 6 }
 0x15f   : > { %v949_v51 = vpop.permute.xlu1 %948  ;;  %1059 = vrot.lane.b32.xlu1 %v1007_v48, %s4994_s1  ;;  %v1025_v52 = vsel %vm1023_vm4, %v1015_v49, 0.0  ;;  %v951_v60 = vpop.permute.xlu0 %950  ;;  %v797_v48 = vrot.slane %v5207_v29, 6 }
 0x160   : > { %v999_v54 = vrot.slane %v949_v51, 7  ;;  %1057 = vrot.lane.b32.xlu0 %v1025_v52, %s4994_s1  ;;  %v992_v62 = vrot.slane %v951_v60, 7  ;;  %v798_v60 = vrot.slane %v5222_v34, 6 }
 0x162   : > { %v1016_v59 = vsel %vm1006_vm3, %v999_v54, %v991_v50  ;;  %v1008_v7 = vsel %vm1006_vm3, %v991_v50, %v999_v54  ;;  %v815_v54 = vsel %vm810_vm1, %v796_v30, %v804_v17 }
 0x163   : > { %866 = vrot.lane.b32.xlu1 %v832_v56, %s4994_s1  ;;  %v953_v61 = vpop.permute.xlu1 %952  ;;  %v1027_v0 = vsel %vm1023_vm4, %v1016_v59, 0.0  ;;  %v955_v8 = vpop.permute.xlu0 %954  ;;  %v806_v59 = vrot.slane %v5213_v31, 6 }
 0x164   : > { %1127 = vrot.lane.b32.xlu0 %v4511_v55, %s4994_s1  ;;  %v1000_v63 = vrot.slane %v953_v61, 7  ;;  %v993_v11 = vrot.slane %v955_v8, 7  ;;  %v824_v55 = vsel %vm810_vm1, %v805_v47, %v797_v48  ;;  %v807_v8 = vrot.slane %v5235_v38, 6 }
 0x165   : > { %v840_v58 = vsel %vm828_vm2, %v824_v55, 0.0 }
 0x166   : > { %v1017_v3 = vsel %vm1006_vm3, %v1000_v63, %v992_v62  ;;  %v1009_v33 = vsel %vm1006_vm3, %v992_v62, %v1000_v63 }
 0x167   : > { %1061 = vrot.lane.b32.xlu1 %v1027_v0, %s4994_s1  ;;  %v957_v9 = vpop.permute.xlu1 %956  ;;  %v1029_v10 = vsel %vm1023_vm4, %v1017_v3, 0.0  ;;  %v959_v35 = vpop.permute.xlu0 %958  ;;  %v816_v3 = vsel %vm810_vm1, %v797_v48, %v805_v47 }
 0x168   : > { %868 = vrot.lane.b32.xlu0 %v812_v1, %s4994_s1  ;;  %v1001_v12 = vrot.slane %v957_v9, 7  ;;  %v994_v40 = vrot.slane %v959_v35, 7  ;;  %v799_v9 = vrot.slane %v5240_v39, 6 }
 0x16a   : > { %v1018_v15 = vsel %vm1006_vm3, %v1001_v12, %v993_v11  ;;  %v1010_v49 = vsel %vm1006_vm3, %v993_v11, %v1001_v12 }
 0x16b   : > { %870 = vrot.lane.b32.xlu1 %v834_v4, %s4994_s1  ;;  %v961_v36 = vpop.permute.xlu1 %960  ;;  %v1031_v37 = vsel %vm1023_vm4, %v1018_v15, 0.0  ;;  %v963_v45 = vpop.permute.xlu0 %962  ;;  %v825_v4 = vsel %vm810_vm1, %v806_v59, %v798_v60  ;;  %v817_v15 = vsel %vm810_vm1, %v798_v60, %v806_v59 }
 0x16c   : > { %1063 = vrot.lane.b32.xlu0 %v1008_v7, %s4994_s1  ;;  %v1002_v41 = vrot.slane %v961_v36, 7  ;;  %v995_v52 = vrot.slane %v963_v45, 7  ;;  %v842_v6 = vsel %vm828_vm2, %v825_v4, 0.0  ;;  %v1163_v36 = vld [vmem:[%s7159_s4 + $0x8] sm:$0xff] }
 0x16d   : > { %4752 = vmatprep.subr.mxu1 %v1163_v36 }
 0x16e   : > { %v1019_v44 = vsel %vm1006_vm3, %v1002_v41, %v994_v40  ;;  %v1011_v61 = vsel %vm1006_vm3, %v994_v40, %v1002_v41  ;;  %v818_v40 = vsel %vm810_vm1, %v799_v9, %v807_v8  ;;  %4753 = vmatpush3.msra.mxu1 %v1163_v36 }
 0x16f   : > { %1065 = vrot.lane.b32.xlu1 %v1029_v10, %s4994_s1  ;;  %v965_v50 = vpop.permute.xlu1 %964  ;;  %v1033_v51 = vsel %vm1023_vm4, %v1019_v44, 0.0  ;;  %v967_v56 = vpop.permute.xlu0 %966 }
 0x170   : > { %872 = vrot.lane.b32.xlu0 %v813_v13, %s4994_s1  ;;  %v1003_v53 = vrot.slane %v965_v50, 7  ;;  %v996_v0 = vrot.slane %v967_v56, 7 }
 0x172   : > { %v1020_v57 = vsel %vm1006_vm3, %v1003_v53, %v995_v52  ;;  %v1012_v10 = vsel %vm1006_vm3, %v995_v52, %v1003_v53 }
 0x173   : > { %874 = vrot.lane.b32.xlu1 %v836_v16, %s4994_s1  ;;  %v969_v62 = vpop.permute.xlu1 %968  ;;  %v1035_v63 = vsel %vm1023_vm4, %v1020_v57, 0.0  ;;  %v863_v2 = vpop.permute.xlu0 %862  ;;  %v826_v16 = vsel %vm810_vm1, %v807_v8, %v799_v9 }
 0x174   : > { %1067 = vrot.lane.b32.xlu0 %v1009_v33, %s4994_s1  ;;  %v1004_v1 = vrot.slane %v969_v62, 7  ;;  %v844_v33 = vsel %vm828_vm2, %v826_v16, 0.0  ;;  %v910_v45 = vadd.f32 %v863_v2, %v5173_v19 }
 0x176   : > { %v1021_v5 = vsel %vm1006_vm3, %v1004_v1, %v996_v0  ;;  %v1013_v17 = vsel %vm1006_vm3, %v996_v0, %v1004_v1 }
 0x177   : > { %1069 = vrot.lane.b32.xlu1 %v1031_v37, %s4994_s1  ;;  %v971_v7 = vpop.permute.xlu0 %970  ;;  %v973_v11 = vpop.permute.xlu1 %972  ;;  %v1037_v12 = vsel %vm1023_vm4, %v1021_v5, 0.0  ;;  %v1162_v37 = vld [vmem:[%s7159_s4] sm:$0xff]  ;;  %s569_s4 = sand.u32 1, %s4983_s28  }
 0x178   : > { %876 = vrot.lane.b32.xlu0 %v814_v42, %s4994_s1  ;;  %v1005_v13 = vrot.slane %v973_v11, 7  ;;  %v997_v14 = vrot.slane %v971_v7, 7  ;;  %4754 = vmatprep.subr.mxu1 %v1162_v37  ;;  %s7078_s0 = scalar_lea.sflag [#allocation3], %s569_s4 }
 0x179   : > { %4755 = vmatpush3.msra.mxu1 %v1162_v37 }
 0x17a   : > { %v1022_v30 = vsel %vm1006_vm3, %v1005_v13, %v997_v14  ;;  %v1014_v41 = vsel %vm1006_vm3, %v997_v14, %v1005_v13 }
 0x17b   : > { %878 = vrot.lane.b32.xlu1 %v838_v46, %s4994_s1  ;;  %v1039_v35 = vsel %vm1023_vm4, %v1022_v30, 0.0  ;;  %v865_v42 = vpop.permute.xlu1 %864 }
 0x17c   : > { %1071 = vrot.lane.b32.xlu0 %v1010_v49, %s4994_s1  ;;  %v911_v46 = vadd.f32 %v5171_v18, %v865_v42 }
 0x17f   : > { %1073 = vrot.lane.b32.xlu1 %v1033_v51, %s4994_s1 }
 0x180   : > { %880 = vrot.lane.b32.xlu0 %v815_v54, %s4994_s1 }
 0x183   : > { %882 = vrot.lane.b32.xlu1 %v840_v58, %s4994_s1 }
 0x184   : > { %1075 = vrot.lane.b32.xlu0 %v1011_v61, %s4994_s1 }
 0x187   : > { %1077 = vrot.lane.b32.xlu1 %v1035_v63, %s4994_s1 }
 0x188   : > { %884 = vrot.lane.b32.xlu0 %v816_v3, %s4994_s1 }
 0x18b   : > { %886 = vrot.lane.b32.xlu1 %v842_v6, %s4994_s1 }
 0x18c   : > { %1079 = vrot.lane.b32.xlu0 %v1012_v10, %s4994_s1 }
 0x18f   : > { %1081 = vrot.lane.b32.xlu1 %v1037_v12, %s4994_s1 }
 0x190   : > { %888 = vrot.lane.b32.xlu0 %v817_v15, %s4994_s1 }
 0x193   : > { %890 = vrot.lane.b32.xlu1 %v844_v33, %s4994_s1 }
 0x194   : > { %1083 = vrot.lane.b32.xlu0 %v1013_v17, %s4994_s1 }
 0x197   : > { %1085 = vrot.lane.b32.xlu1 %v1039_v35, %s4994_s1 }
 0x198   : > { %892 = vrot.lane.b32.xlu0 %v818_v40, %s4994_s1 }
 0x19c   : > { %1087 = vrot.lane.b32.xlu0 %v1014_v41, %s4994_s1 }
 0x1d1   : > { %v1060_v43 = vpop.permute.xlu1 %1059 }
 0x1d2   : > { %v1058_v44 = vpop.permute.xlu0 %1057  ;;  %v1106_v47 = vadd.f32 %v1060_v43, %v911_v46 }
 0x1d3   : > { %v1105_v48 = vadd.f32 %v1058_v44, %v910_v45 }
 0x1d5   : > { %v867_v49 = vpop.permute.xlu1 %866 }
 0x1d6   : > { %v5397_v50 = vpop.permute.xlu0 %1127  ;;  %v912_v53 = vadd.f32 %v867_v49, %v5181_v22 }
 0x1d7   : > { %v1130_v51 = vadd.f32 %v5397_v50, %v1105_v48  ;;  %v1131_v52 = vadd.f32 %v5397_v50, %v1106_v47 }
 0x1d9   : > { %v1062_v54 = vpop.permute.xlu1 %1061  ;;  %v1146_v55 = vmax.f32 %v1130_v51, 0.0  ;;  %v1147_v56 = vmax.f32 %v1131_v52, 0.0 }
 0x1da   : > { %v1107_v57 = vadd.f32 %v1062_v54, %v912_v53  ;;  %v869_v58 = vpop.permute.xlu0 %868 }
 0x1db   : > { %1180 = vrot.lane.b32.xlu1 %v1146_v55, %s7141_s19  ;;  %1182 = vrot.lane.b32.xlu0 %v1147_v56, %s7141_s19  ;;  %v913_v60 = vadd.f32 %v5177_v20, %v869_v58 }
 0x1dc   : > { %v1132_v59 = vadd.f32 %v5397_v50, %v1107_v57 }
 0x1dd   : > { %v871_v61 = vpop.permute.xlu1 %870 }
 0x1de   : > { %v1064_v62 = vpop.permute.xlu0 %1063  ;;  %v1148_v63 = vmax.f32 %v1132_v59, 0.0  ;;  %v914_v1 = vadd.f32 %v871_v61, %v5191_v25 }
 0x1df   : > { %v1108_v0 = vadd.f32 %v1064_v62, %v913_v60 }
 0x1e0   : > { %1184 = vrot.lane.b32.xlu1 %v1148_v63, %s7141_s19 }
 0x1e1   : > { %v1133_v2 = vadd.f32 %v5397_v50, %v1108_v0  ;;  %v1066_v3 = vpop.permute.xlu1 %1065 }
 0x1e2   : > { %v1109_v4 = vadd.f32 %v1066_v3, %v914_v1  ;;  %v873_v5 = vpop.permute.xlu0 %872 }
 0x1e3   : > { %v1149_v6 = vmax.f32 %v1133_v2, 0.0  ;;  %v915_v8 = vadd.f32 %v5187_v23, %v873_v5 }
 0x1e4   : > { %v1134_v7 = vadd.f32 %v5397_v50, %v1109_v4 }
 0x1e5   : > { %v875_v9 = vpop.permute.xlu1 %874  ;;  %1186 = vrot.lane.b32.xlu0 %v1149_v6, %s7141_s19 }
 0x1e6   : > { %v1068_v10 = vpop.permute.xlu0 %1067  ;;  %v1150_v11 = vmax.f32 %v1134_v7, 0.0  ;;  %v916_v13 = vadd.f32 %v875_v9, %v5201_v28 }
 0x1e7   : > { %v1110_v12 = vadd.f32 %v1068_v10, %v915_v8 }
 0x1e8   : > { %1188 = vrot.lane.b32.xlu1 %v1150_v11, %s7141_s19 }
 0x1e9   : > { %v1135_v14 = vadd.f32 %v5397_v50, %v1110_v12  ;;  %v1070_v15 = vpop.permute.xlu1 %1069 }
 0x1ea   : > { %v1111_v16 = vadd.f32 %v1070_v15, %v916_v13  ;;  %v877_v17 = vpop.permute.xlu0 %876 }
 0x1eb   : > { %v1151_v30 = vmax.f32 %v1135_v14, 0.0  ;;  %v917_v35 = vadd.f32 %v5197_v26, %v877_v17 }
 0x1ec   : > { %v1136_v33 = vadd.f32 %v5397_v50, %v1111_v16 }
 0x1ed   : > { %v879_v36 = vpop.permute.xlu1 %878  ;;  %1190 = vrot.lane.b32.xlu0 %v1151_v30, %s7141_s19 }
 0x1ee   : > { %v1072_v37 = vpop.permute.xlu0 %1071  ;;  %v1152_v40 = vmax.f32 %v1136_v33, 0.0  ;;  %v918_v42 = vadd.f32 %v879_v36, %v5189_v24 }
 0x1ef   : > { %v1112_v41 = vadd.f32 %v1072_v37, %v917_v35 }
 0x1f0   : > { %1192 = vrot.lane.b32.xlu1 %v1152_v40, %s7141_s19 }
 0x1f1   : > { %v1137_v43 = vadd.f32 %v5397_v50, %v1112_v41  ;;  %v1074_v44 = vpop.permute.xlu1 %1073 }
 0x1f2   : > { %v1113_v45 = vadd.f32 %v1074_v44, %v918_v42  ;;  %v881_v46 = vpop.permute.xlu0 %880  ;;  %v4529_v44 = vld [vmem:[%s7160_s3] ss:$0 sm:$0xff]  ;;  %s7162_s3 = smov 96  }
 0x1f3   : > { %v1153_v47 = vmax.f32 %v1137_v43, 0.0  ;;  %v919_v49 = vadd.f32 %v5179_v21, %v881_v46  ;;  %v4528_v46 = vld [vmem:[%s7161_s5] ss:$0 sm:$0xff] }
 0x1f4   : > { %v1138_v48 = vadd.f32 %v5397_v50, %v1113_v45 }
 0x1f5   : > { %v883_v51 = vpop.permute.xlu1 %882  ;;  %1194 = vrot.lane.b32.xlu0 %v1153_v47, %s7141_s19 }
 0x1f6   : > { %v1076_v52 = vpop.permute.xlu0 %1075  ;;  %v1154_v53 = vmax.f32 %v1138_v48, 0.0  ;;  %v920_v55 = vadd.f32 %v883_v51, %v5207_v29 }
 0x1f7   : > { %v1114_v54 = vadd.f32 %v1076_v52, %v919_v49 }
 0x1f8   : > { %1196 = vrot.lane.b32.xlu1 %v1154_v53, %s7141_s19 }
 0x1f9   : > { %v1139_v56 = vadd.f32 %v5397_v50, %v1114_v54  ;;  %v1078_v57 = vpop.permute.xlu1 %1077 }
 0x1fa   : > { %v1115_v58 = vadd.f32 %v1078_v57, %v920_v55  ;;  %v885_v59 = vpop.permute.xlu0 %884 }
 0x1fb   : > { %v1155_v60 = vmax.f32 %v1139_v56, 0.0  ;;  %v921_v62 = vadd.f32 %v5199_v27, %v885_v59 }
 0x1fc   : > { %v1140_v61 = vadd.f32 %v5397_v50, %v1115_v58 }
 0x1fd   : > { %v887_v63 = vpop.permute.xlu1 %886  ;;  %1198 = vrot.lane.b32.xlu0 %v1155_v60, %s7141_s19 }
 0x1fe   : > { %v1080_v0 = vpop.permute.xlu0 %1079  ;;  %v1156_v1 = vmax.f32 %v1140_v61, 0.0  ;;  %v922_v3 = vadd.f32 %v887_v63, %v5222_v34 }
 0x1ff   : > { %v1116_v2 = vadd.f32 %v1080_v0, %v921_v62 }
 0x200   : > { %1200 = vrot.lane.b32.xlu1 %v1156_v1, %s7141_s19 }
 0x201   : > { %v1141_v4 = vadd.f32 %v5397_v50, %v1116_v2  ;;  %v1082_v5 = vpop.permute.xlu1 %1081 }
 0x202   : > { %v1117_v6 = vadd.f32 %v1082_v5, %v922_v3  ;;  %v889_v7 = vpop.permute.xlu0 %888 }
 0x203   : > { %v1157_v8 = vmax.f32 %v1141_v4, 0.0  ;;  %v923_v10 = vadd.f32 %v5213_v31, %v889_v7 }
 0x204   : > { %v1142_v9 = vadd.f32 %v5397_v50, %v1117_v6 }
 0x205   : > { %v891_v11 = vpop.permute.xlu1 %890  ;;  %1202 = vrot.lane.b32.xlu0 %v1157_v8, %s7141_s19 }
 0x206   : > { %v1084_v12 = vpop.permute.xlu0 %1083  ;;  %v1158_v13 = vmax.f32 %v1142_v9, 0.0  ;;  %v924_v15 = vadd.f32 %v891_v11, %v5240_v39 }
 0x207   : > { %v1118_v14 = vadd.f32 %v1084_v12, %v923_v10 }
 0x208   : > { %1204 = vrot.lane.b32.xlu1 %v1158_v13, %s7141_s19 }
 0x209   : > { %v1143_v16 = vadd.f32 %v5397_v50, %v1118_v14  ;;  %v1086_v17 = vpop.permute.xlu1 %1085 }
 0x20a   : > { %v1119_v30 = vadd.f32 %v1086_v17, %v924_v15  ;;  %v893_v33 = vpop.permute.xlu0 %892 }
 0x20b   : > { %v1159_v35 = vmax.f32 %v1143_v16, 0.0  ;;  %v925_v37 = vadd.f32 %v5235_v38, %v893_v33 }
 0x20c   : > { %v1144_v36 = vadd.f32 %v5397_v50, %v1119_v30 }
 0x20d   : > { %1206 = vrot.lane.b32.xlu0 %v1159_v35, %s7141_s19 }
 0x20e   : > { %v1088_v40 = vpop.permute.xlu0 %1087  ;;  %v1160_v41 = vmax.f32 %v1144_v36, 0.0 }
 0x20f   : > { %v1120_v42 = vadd.f32 %v1088_v40, %v925_v37 }
 0x210   : > { %1208 = vrot.lane.b32.xlu1 %v1160_v41, %s7141_s19 }
 0x211   : > { %v1145_v43 = vadd.f32 %v5397_v50, %v1120_v42 }
 0x213   : > { %v1161_v45 = vmax.f32 %v1145_v43, 0.0 }
 0x214   : > { %1756 = vrot.lane.b32.xlu1 %v4529_v44, %s4996_s24 }
 0x215   : > { %1210 = vrot.lane.b32.xlu0 %v1161_v45, %s7141_s19 }
 0x219   : > { %1715 = vrot.lane.b32.xlu0 %v4528_v46, %s4994_s1 }
 0x24d   : > { %v1181_v47 = vpop.permute.xlu1 %1180  ;;  %v1183_v48 = vpop.permute.xlu0 %1182 }
 0x24e   : > { %4756 = vmatprep.mubr.msk.f32.mxu1 %vm598_vm0, %v1181_v47 }
 0x24f   : > { %4757 = vmatmul.mubr.msk.f32.vlgmr.msra.gmra.mxu1 %vm598_vm0, %v1183_v48 }
 0x252   : > { %v1185_v50 = vpop.permute.xlu1 %1184 }
 0x253   : > { %4759 = vmatprep.mubr.msk.f32.mxu1 %vm598_vm0, %v1185_v50 }
 0x257   : > { %v1187_v49 = vpop.permute.xlu0 %1186 }
 0x258   : > { %4760 = vmatmul.mubr.msk.f32.gmra.mxu1 %vm598_vm0, %v1187_v49 }
 0x25a   : > { %v1189_v51 = vpop.permute.xlu1 %1188 }
 0x25b   : > { %4762 = vmatprep.mubr.msk.f32.mxu1 %vm598_vm0, %v1189_v51 }
 0x25f   : > { %v1191_v52 = vpop.permute.xlu0 %1190 }
 0x260   : > { %4763 = vmatmul.mubr.msk.f32.gmra.mxu1 %vm598_vm0, %v1191_v52 }
 0x262   : > { %v1193_v53 = vpop.permute.xlu1 %1192 }
 0x263   : > { %4765 = vmatprep.mubr.msk.f32.mxu1 %vm598_vm0, %v1193_v53 }
 0x267   : > { %v1195_v54 = vpop.permute.xlu0 %1194 }
 0x268   : > { %4766 = vmatmul.mubr.msk.f32.gmra.mxu1 %vm598_vm0, %v1195_v54 }
 0x26a   : > { %v1197_v55 = vpop.permute.xlu1 %1196 }
 0x26b   : > { %4768 = vmatprep.mubr.msk.f32.mxu1 %vm598_vm0, %v1197_v55 }
 0x26f   : > { %v1199_v56 = vpop.permute.xlu0 %1198 }
 0x270   : > { %4769 = vmatmul.mubr.msk.f32.gmra.mxu1 %vm598_vm0, %v1199_v56 }
 0x272   : > { %v1201_v57 = vpop.permute.xlu1 %1200 }
 0x273   : > { %4771 = vmatprep.mubr.msk.f32.mxu1 %vm598_vm0, %v1201_v57 }
 0x277   : > { %v1203_v58 = vpop.permute.xlu0 %1202 }
 0x278   : > { %4772 = vmatmul.mubr.msk.f32.gmra.mxu1 %vm598_vm0, %v1203_v58 }
 0x27a   : > { %v1205_v59 = vpop.permute.xlu1 %1204 }
 0x27b   : > { %4774 = vmatprep.mubr.msk.f32.mxu1 %vm598_vm0, %v1205_v59 }
 0x27f   : > { %v1207_v60 = vpop.permute.xlu0 %1206 }
 0x280   : > { %4775 = vmatmul.mubr.msk.f32.gmra.mxu1 %vm598_vm0, %v1207_v60 }
 0x282   : > { %v1209_v61 = vpop.permute.xlu1 %1208 }
 0x283   : > { %4777 = vmatprep.mubr.msk.f32.mxu1 %vm598_vm0, %v1209_v61 }
 0x286   : > { %v5468_v63 = vpop.permute.xlu1 %1756 }
 0x287   : > { %v1211_v62 = vpop.permute.xlu0 %1210  ;;  %v1759_v4 = vadd.f32 %v5468_v63, %v5173_v19  ;;  %v1760_v14 = vadd.f32 %v5171_v18, %v5468_v63  ;;  %v1761_v18 = vadd.f32 %v5468_v63, %v5181_v22  ;;  %v1762_v22 = vadd.f32 %v5177_v20, %v5468_v63 }
 0x288   : > { %4778 = vmatmul.mubr.msk.f32.gmra.mxu1 %vm598_vm0, %v1211_v62  ;;  %v1763_v20 = vadd.f32 %v5468_v63, %v5191_v25  ;;  %v1764_v25 = vadd.f32 %v5187_v23, %v5468_v63 }
 0x28b   : > { %v5599_v57 = vpop.permute.xlu0 %1715 }
 0x30f   : > { %v5470_v0 = vpop.f32.mrf.mxu1 }
 0x310   : > { %1535 = vrot.lane.b32.xlu0 %v5470_v0, %s4993_s29  ;;  %v1397_v2 = vrot.slane %v5470_v0, 6 }
 0x311   : > { %v5474_v1 = vpop.f32.mrf.mxu1 }
 0x312   : > { %v1389_v3 = vrot.slane %v5474_v1, 6  ;;  %1533 = vrot.lane.b32.xlu1 %v5474_v1, %s4993_s29 }
 0x314   : > { %1791 = vrot.lane.b32.xlu0 %v1759_v4, %s4993_s29  ;;  %v1405_v5 = vsel %vm810_vm1, %v1389_v3, %v1397_v2  ;;  %v1413_v7 = vsel %vm810_vm1, %v1397_v2, %v1389_v3 }
 0x315   : > { %v1421_v19 = vsel %vm828_vm2, %v1413_v7, 0.0 }
 0x316   : > { %1455 = vrot.lane.b32.xlu1 %v1405_v5, %s4994_s1 }
 0x318   : > { %v5486_v6 = vpop.f32.mrf.mxu1 }
 0x319   : > { %1539 = vrot.lane.b32.xlu0 %v5486_v6, %s4993_s29  ;;  %v1398_v11 = vrot.slane %v5486_v6, 6 }
 0x31a   : > { %v5492_v8 = vpop.f32.mrf.mxu1 }
 0x31b   : > { %1537 = vrot.lane.b32.xlu1 %v5492_v8, %s4993_s29  ;;  %v1390_v9 = vrot.slane %v5492_v8, 6 }
 0x31d   : > { %1453 = vrot.lane.b32.xlu0 %v1421_v19, %s4994_s1  ;;  %v1406_v13 = vsel %vm810_vm1, %v1390_v9, %v1398_v11  ;;  %v1414_v15 = vsel %vm810_vm1, %v1398_v11, %v1390_v9  ;;  %v1765_v9 = vadd.f32 %v5468_v63, %v5201_v28 }
 0x31e   : > { %v1423_v17 = vsel %vm828_vm2, %v1414_v15, 0.0 }
 0x320   : > { %v5500_v10 = vpop.f32.mrf.mxu1 }
 0x321   : > { %1543 = vrot.lane.b32.xlu1 %v5500_v10, %s4993_s29  ;;  %v1399_v35 = vrot.slane %v5500_v10, 6 }
 0x322   : > { %v5505_v12 = vpop.f32.mrf.mxu1 }
 0x323   : > { %1541 = vrot.lane.b32.xlu0 %v5505_v12, %s4993_s29  ;;  %v1391_v30 = vrot.slane %v5505_v12, 6 }
 0x325   : > { %1459 = vrot.lane.b32.xlu1 %v1406_v13, %s4994_s1  ;;  %v1415_v36 = vsel %vm810_vm1, %v1399_v35, %v1391_v30  ;;  %v1407_v43 = vsel %vm810_vm1, %v1391_v30, %v1399_v35 }
 0x326   : > { %v1425_v40 = vsel %vm828_vm2, %v1415_v36, 0.0 }
 0x327   : > { %1793 = vrot.lane.b32.xlu0 %v1760_v14, %s4993_s29 }
 0x328   : > { %v5517_v16 = vpop.f32.mrf.mxu1 }
 0x329   : > { %1457 = vrot.lane.b32.xlu1 %v1423_v17, %s4994_s1  ;;  %v1400_v46 = vrot.slane %v5517_v16, 6  ;;  %v1766_v17 = vadd.f32 %v5197_v26, %v5468_v63 }
 0x32a   : > { %v5523_v33 = vpop.f32.mrf.mxu1 }
 0x32b   : > { %1545 = vrot.lane.b32.xlu0 %v5523_v33, %s4993_s29  ;;  %v1392_v44 = vrot.slane %v5523_v33, 6 }
 0x32d   : > { %1547 = vrot.lane.b32.xlu1 %v5517_v16, %s4993_s29  ;;  %v1416_v47 = vsel %vm810_vm1, %v1400_v46, %v1392_v44  ;;  %v1408_v52 = vsel %vm810_vm1, %v1392_v44, %v1400_v46 }
 0x32e   : > { %v1427_v50 = vsel %vm828_vm2, %v1416_v47, 0.0  ;;  %v1767_v47 = vadd.f32 %v5468_v63, %v5189_v24 }
 0x32f   : > { %1795 = vrot.lane.b32.xlu0 %v1761_v18, %s4993_s29 }
 0x330   : > { %v5535_v37 = vpop.f32.mrf.mxu1 }
 0x331   : > { %1461 = vrot.lane.b32.xlu1 %v1425_v40, %s4994_s1  ;;  %v1401_v55 = vrot.slane %v5535_v37, 6 }
 0x332   : > { %v5540_v41 = vpop.f32.mrf.mxu1 }
 0x333   : > { %1549 = vrot.lane.b32.xlu0 %v5540_v41, %s4993_s29  ;;  %v1393_v53 = vrot.slane %v5540_v41, 6 }
 0x335   : > { %1551 = vrot.lane.b32.xlu1 %v5535_v37, %s4993_s29  ;;  %v1417_v23 = vsel %vm810_vm1, %v1401_v55, %v1393_v53  ;;  %v1409_v19 = vsel %vm810_vm1, %v1393_v53, %v1401_v55 }
 0x336   : > { %v1429_v56 = vsel %vm828_vm2, %v1417_v23, 0.0 }
 0x337   : > { %1797 = vrot.lane.b32.xlu0 %v1762_v22, %s4993_s29 }
 0x338   : > { %v5549_v42 = vpop.f32.mrf.mxu1 }
 0x339   : > { %1463 = vrot.lane.b32.xlu1 %v1407_v43, %s4994_s1  ;;  %v1402_v30 = vrot.slane %v5549_v42, 6 }
 0x33a   : > { %v5555_v45 = vpop.f32.mrf.mxu1 }
 0x33b   : > { %1553 = vrot.lane.b32.xlu0 %v5555_v45, %s4993_s29  ;;  %v1394_v13 = vrot.slane %v5555_v45, 6 }
 0x33d   : > { %1555 = vrot.lane.b32.xlu1 %v5549_v42, %s4993_s29  ;;  %v1418_v36 = vsel %vm810_vm1, %v1402_v30, %v1394_v13  ;;  %v1410_v23 = vsel %vm810_vm1, %v1394_v13, %v1402_v30 }
 0x33e   : > { %v1431_v43 = vsel %vm828_vm2, %v1418_v36, 0.0 }
 0x33f   : > { %1799 = vrot.lane.b32.xlu0 %v1763_v20, %s4993_s29 }
 0x340   : > { %v5567_v48 = vpop.f32.mrf.mxu1 }
 0x341   : > { %1465 = vrot.lane.b32.xlu1 %v1427_v50, %s4994_s1 }
 0x342   : > { %v5572_v49 = vpop.f32.mrf.mxu1 }
 0x343   : > { %1557 = vrot.lane.b32.xlu0 %v5572_v49, %s4993_s29 }
 0x345   : > { %1559 = vrot.lane.b32.xlu1 %v5567_v48, %s4993_s29 }
 0x347   : > { %1801 = vrot.lane.b32.xlu0 %v1764_v25, %s4993_s29 }
 0x348   : > { %v5581_v51 = vpop.f32.mrf.mxu1 }
 0x349   : > { %1467 = vrot.lane.b32.xlu1 %v1408_v52, %s4994_s1 }
 0x34a   : > { %v5587_v54 = vpop.f32.mrf.mxu1 }
 0x34b   : > { %1561 = vrot.lane.b32.xlu0 %v5587_v54, %s4993_s29 }
 0x34d   : > { %1563 = vrot.lane.b32.xlu1 %v5581_v51, %s4993_s29 }
 0x351   : > { %1469 = vrot.lane.b32.xlu1 %v1429_v56, %s4994_s1 }
 0x382   : > { %v1536_v58 = vpop.permute.xlu0 %1535 }
 0x383   : > { %v1589_v60 = vrot.slane %v1536_v58, 7  ;;  %v1768_v58 = vadd.f32 %v5179_v21, %v5468_v63 }
 0x384   : > { %v1534_v59 = vpop.permute.xlu1 %1533 }
 0x385   : > { %v1581_v61 = vrot.slane %v1534_v59, 7  ;;  %v1395_v59 = vrot.slane %v5572_v49, 6 }
 0x386   : > { %v5601_v62 = vpop.permute.xlu0 %1791 }
 0x387   : > { %v1597_v2 = vsel %vm1006_vm3, %v1581_v61, %v1589_v60  ;;  %v1605_v3 = vsel %vm1006_vm3, %v1589_v60, %v1581_v61 }
 0x388   : > { %v5607_v4 = vpop.permute.xlu1 %1455  ;;  %1647 = vrot.lane.b32.xlu1 %v1597_v2, %s4994_s1  ;;  %v1613_v5 = vsel %vm1023_vm4, %v1605_v3, 0.0  ;;  %v1403_v3 = vrot.slane %v5567_v48, 6 }
 0x389   : > { %1645 = vrot.lane.b32.xlu0 %v1613_v5, %s4994_s1 }
 0x38b   : > { %v1540_v7 = vpop.permute.xlu0 %1539 }
 0x38c   : > { %1471 = vrot.lane.b32.xlu1 %v1409_v19, %s4994_s1  ;;  %v1590_v14 = vrot.slane %v1540_v7, 7 }
 0x38d   : > { %v1538_v11 = vpop.permute.xlu1 %1537  ;;  %1803 = vrot.lane.b32.xlu0 %v1765_v9, %s4993_s29  ;;  %v1419_v9 = vsel %vm810_vm1, %v1403_v3, %v1395_v59 }
 0x38e   : > { %v1582_v15 = vrot.slane %v1538_v11, 7 }
 0x38f   : > { %v5625_v18 = vpop.permute.xlu0 %1453 }
 0x390   : > { %v1606_v35 = vsel %vm1006_vm3, %v1590_v14, %v1582_v15  ;;  %v1598_v26 = vsel %vm1006_vm3, %v1582_v15, %v1590_v14  ;;  %v1433_v14 = vsel %vm828_vm2, %v1419_v9, 0.0  ;;  %v1769_v15 = vadd.f32 %v5468_v63, %v5207_v29 }
 0x391   : > { %1805 = vrot.lane.b32.xlu0 %v1766_v17, %s4993_s29  ;;  %v1615_v28 = vsel %vm1023_vm4, %v1606_v35, 0.0 }
 0x392   : > { %1649 = vrot.lane.b32.xlu1 %v1615_v28, %s4994_s1 }
 0x393   : > { %v1544_v40 = vpop.permute.xlu1 %1543 }
 0x394   : > { %v1591_v44 = vrot.slane %v1544_v40, 7 }
 0x395   : > { %1651 = vrot.lane.b32.xlu0 %v1598_v26, %s4994_s1  ;;  %v1542_v22 = vpop.permute.xlu0 %1541 }
 0x396   : > { %v1583_v46 = vrot.slane %v1542_v22, 7  ;;  %1473 = vrot.lane.b32.xlu1 %v1431_v43, %s4994_s1  ;;  %v1411_v43 = vsel %vm810_vm1, %v1395_v59, %v1403_v3  ;;  %v1771_v3 = vadd.f32 %v5468_v63, %v5222_v34 }
 0x397   : > { %v5639_v20 = vpop.permute.xlu1 %1459 }
 0x398   : > { %v1607_v50 = vsel %vm1006_vm3, %v1591_v44, %v1583_v46  ;;  %v1599_v55 = vsel %vm1006_vm3, %v1583_v46, %v1591_v44  ;;  %v1770_v44 = vadd.f32 %v5199_v27, %v5468_v63  ;;  %v1396_v46 = vrot.slane %v5587_v54, 6 }
 0x399   : > { %1807 = vrot.lane.b32.xlu0 %v1767_v47, %s4993_s29  ;;  %v5646_v25 = vpop.permute.xlu0 %1793  ;;  %v1617_v52 = vsel %vm1023_vm4, %v1607_v50, 0.0 }
 0x39a   : > { %1653 = vrot.lane.b32.xlu1 %v1617_v52, %s4994_s1 }
 0x39b   : > { %v5651_v53 = vpop.permute.xlu1 %1457 }
 0x39d   : > { %1655 = vrot.lane.b32.xlu0 %v1599_v55, %s4994_s1  ;;  %v1546_v24 = vpop.permute.xlu0 %1545  ;;  %v1404_v55 = vrot.slane %v5581_v51, 6 }
 0x39e   : > { %1475 = vrot.lane.b32.xlu1 %v1410_v23, %s4994_s1  ;;  %v1584_v60 = vrot.slane %v1546_v24, 7 }
 0x39f   : > { %v1548_v56 = vpop.permute.xlu1 %1547 }
 0x3a0   : > { %v1592_v61 = vrot.slane %v1548_v56, 7 }
 0x3a1   : > { %1809 = vrot.lane.b32.xlu0 %v1768_v58, %s4993_s29  ;;  %v5663_v2 = vpop.permute.xlu0 %1795  ;;  %v1420_v58 = vsel %vm810_vm1, %v1404_v55, %v1396_v46 }
 0x3a2   : > { %v1608_v5 = vsel %vm1006_vm3, %v1592_v61, %v1584_v60  ;;  %v1600_v21 = vsel %vm1006_vm3, %v1584_v60, %v1592_v61  ;;  %v1435_v61 = vsel %vm828_vm2, %v1420_v58, 0.0 }
 0x3a3   : > { %v5668_v7 = vpop.permute.xlu1 %1461  ;;  %v1619_v19 = vsel %vm1023_vm4, %v1608_v5, 0.0 }
 0x3a4   : > { %1657 = vrot.lane.b32.xlu1 %v1619_v19, %s4994_s1 }
 0x3a5   : > { %1659 = vrot.lane.b32.xlu0 %v1600_v21, %s4994_s1  ;;  %v1550_v11 = vpop.permute.xlu0 %1549 }
 0x3a6   : > { %v1585_v17 = vrot.slane %v1550_v11, 7 }
 0x3a7   : > { %v1552_v13 = vpop.permute.xlu1 %1551 }
 0x3a8   : > { %v1593_v30 = vrot.slane %v1552_v13, 7  ;;  %1477 = vrot.lane.b32.xlu1 %v1433_v14, %s4994_s1 }
 0x3a9   : > { %1811 = vrot.lane.b32.xlu0 %v1769_v15, %s4993_s29  ;;  %v5684_v35 = vpop.permute.xlu0 %1797 }
 0x3aa   : > { %v1609_v28 = vsel %vm1006_vm3, %v1593_v30, %v1585_v17  ;;  %v1601_v29 = vsel %vm1006_vm3, %v1585_v17, %v1593_v30  ;;  %v1412_v17 = vsel %vm810_vm1, %v1396_v46, %v1404_v55  ;;  %v1772_v30 = vadd.f32 %v5213_v31, %v5468_v63 }
 0x3ab   : > { %v5688_v36 = vpop.permute.xlu1 %1463  ;;  %v1621_v40 = vsel %vm1023_vm4, %v1609_v28, 0.0  ;;  %v1774_v46 = vadd.f32 %v5235_v38, %v5468_v63  ;;  %v1501_v55 = vadd.f32 %v5625_v18, %v5474_v1 }
 0x3ac   : > { %1661 = vrot.lane.b32.xlu1 %v1621_v40, %s4994_s1 }
 0x3ad   : > { %1663 = vrot.lane.b32.xlu0 %v1601_v29, %s4994_s1  ;;  %v1554_v26 = vpop.permute.xlu0 %1553 }
 0x3ae   : > { %v1586_v47 = vrot.slane %v1554_v26, 7  ;;  %v1872_v26 = vld [vmem:[%s7124_s6 + $0x8] sm:$0xff] }
 0x3af   : > { %v1556_v22 = vpop.permute.xlu1 %1555  ;;  %4780 = vmatprep.subr.mxu0 %v1872_v26 }
 0x3b0   : > { %v1594_v50 = vrot.slane %v1556_v22, 7  ;;  %1479 = vrot.lane.b32.xlu1 %v1411_v43, %s4994_s1  ;;  %v1871_v22 = vld [vmem:[%s7124_s6] sm:$0xff]  ;;  %4781 = vmatpush3.msra.mxu0 %v1872_v26 }
 0x3b1   : > { %1813 = vrot.lane.b32.xlu0 %v1770_v44, %s4993_s29  ;;  %v5703_v52 = vpop.permute.xlu0 %1799  ;;  %4782 = vmatprep.subr.mxu0 %v1871_v22  ;;  %v1773_v44 = vadd.f32 %v5468_v63, %v5240_v39 }
 0x3b2   : > { %v1610_v24 = vsel %vm1006_vm3, %v1594_v50, %v1586_v47  ;;  %v1602_v56 = vsel %vm1006_vm3, %v1586_v47, %v1594_v50  ;;  %4783 = vmatpush3.msra.mxu0 %v1871_v22  ;;  %v1502_v50 = vadd.f32 %v5470_v0, %v5607_v4  ;;  %v1503_v0 = vadd.f32 %v5651_v53, %v5492_v8 }
 0x3b3   : > { %v5708_v23 = vpop.permute.xlu1 %1465  ;;  %v1623_v27 = vsel %vm1023_vm4, %v1610_v24, 0.0  ;;  %v1505_v53 = vadd.f32 %v5668_v7, %v5505_v12 }
 0x3b4   : > { %1665 = vrot.lane.b32.xlu1 %v1623_v27, %s4994_s1 }
 0x3b5   : > { %1667 = vrot.lane.b32.xlu0 %v1602_v56, %s4994_s1  ;;  %v1558_v59 = vpop.permute.xlu0 %1557 }
 0x3b6   : > { %v1587_v5 = vrot.slane %v1558_v59, 7 }
 0x3b7   : > { %v1560_v60 = vpop.permute.xlu1 %1559 }
 0x3b8   : > { %v1595_v19 = vrot.slane %v1560_v60, 7  ;;  %1481 = vrot.lane.b32.xlu1 %v1435_v61, %s4994_s1 }
 0x3b9   : > { %1815 = vrot.lane.b32.xlu0 %v1771_v3, %s4993_s29  ;;  %v5724_v21 = vpop.permute.xlu0 %1801 }
 0x3ba   : > { %v1611_v9 = vsel %vm1006_vm3, %v1595_v19, %v1587_v5  ;;  %v1603_v34 = vsel %vm1006_vm3, %v1587_v5, %v1595_v19 }
 0x3bb   : > { %v5728_v11 = vpop.permute.xlu1 %1467  ;;  %v1625_v13 = vsel %vm1023_vm4, %v1611_v9, 0.0 }
 0x3bc   : > { %1669 = vrot.lane.b32.xlu1 %v1625_v13, %s4994_s1  ;;  %v1504_v13 = vadd.f32 %v5486_v6, %v5639_v20  ;;  %v1506_v20 = vadd.f32 %v5500_v10, %v5688_v36  ;;  %v1507_v10 = vadd.f32 %v5708_v23, %v5523_v33  ;;  %v1508_v36 = vadd.f32 %v5517_v16, %v5728_v11 }
 0x3bd   : > { %1671 = vrot.lane.b32.xlu0 %v1603_v34, %s4994_s1  ;;  %v1562_v14 = vpop.permute.xlu0 %1561 }
 0x3be   : > { %v1588_v28 = vrot.slane %v1562_v14, 7 }
 0x3bf   : > { %v1564_v15 = vpop.permute.xlu1 %1563 }
 0x3c0   : > { %v1596_v40 = vrot.slane %v1564_v15, 7  ;;  %1483 = vrot.lane.b32.xlu1 %v1412_v17, %s4994_s1 }
 0x3c1   : > { %1817 = vrot.lane.b32.xlu0 %v1772_v30, %s4993_s29 }
 0x3c2   : > { %v1612_v29 = vsel %vm1006_vm3, %v1596_v40, %v1588_v28  ;;  %v1604_v43 = vsel %vm1006_vm3, %v1588_v28, %v1596_v40 }
 0x3c3   : > { %v1627_v31 = vsel %vm1023_vm4, %v1612_v29, 0.0  ;;  %v5762_v47 = vpop.permute.xlu1 %1469 }
 0x3c4   : > { %1673 = vrot.lane.b32.xlu1 %v1627_v31, %s4994_s1  ;;  %v1509_v16 = vadd.f32 %v5762_v47, %v5540_v41 }
 0x3c5   : > { %1675 = vrot.lane.b32.xlu0 %v1604_v43, %s4994_s1  ;;  %s7068_s1 = scalar_lea.hbm %s7136_s18, %s4625_s25  ;;  %s4937_s25 = scalar_lea.vmem %s4936_s20, 4096 }
 0x3c8   : > { %1819 = vrot.lane.b32.xlu1 %v1773_v44, %s4993_s29 }
 0x3c9   : > { %1821 = vrot.lane.b32.xlu0 %v1774_v46, %s4993_s29  ;;  %s7143_s29 = smov 64  }
 0x3fa   : > { %v1648_v24 = vpop.permute.xlu1 %1647 }
 0x3fb   : > { %v1694_v27 = vadd.f32 %v1648_v24, %v1502_v50  ;;  %v1646_v56 = vpop.permute.xlu0 %1645 }
 0x3fc   : > { %v1693_v39 = vadd.f32 %v1646_v56, %v1501_v55 }
 0x3fd   : > { %v1719_v58 = vadd.f32 %v5599_v57, %v1694_v27 }
 0x3fe   : > { %v1718_v38 = vadd.f32 %v5599_v57, %v1693_v39  ;;  %v1472_v61 = vpop.permute.xlu1 %1471 }
 0x3ff   : > { %v1735_v63 = vmax.f32 %v1719_v58, 0.0  ;;  %v1804_v59 = vpop.permute.xlu0 %1803  ;;  %v1510_v11 = vadd.f32 %v5535_v37, %v1472_v61 }
 0x400   : > { %v1734_v60 = vmax.f32 %v1718_v38, 0.0 }
 0x401   : > { %v1840_v3 = vadd.f32 %v5646_v25, %v1735_v63 }
 0x402   : > { %v1839_v5 = vadd.f32 %v5601_v62, %v1734_v60 }
 0x403   : > { %v1856_v1 = vmax.f32 %v1840_v3, 0.0  ;;  %v1806_v4 = vpop.permute.xlu0 %1805 }
 0x404   : > { %v1855_v18 = vmax.f32 %v1839_v5, 0.0  ;;  %v1650_v19 = vpop.permute.xlu1 %1649 }
 0x405   : > { %v1695_v9 = vadd.f32 %v1650_v19, %v1503_v0  ;;  %1891 = vrot.lane.b32.xlu0 %v1856_v1, %s7141_s19 }
 0x406   : > { %1889 = vrot.lane.b32.xlu1 %v1855_v18, %s7141_s19 }
 0x407   : > { %v1720_v34 = vadd.f32 %v5599_v57, %v1695_v9  ;;  %v1652_v25 = vpop.permute.xlu0 %1651 }
 0x408   : > { %v1696_v14 = vadd.f32 %v1652_v25, %v1504_v13  ;;  %v1474_v62 = vpop.permute.xlu1 %1473 }
 0x409   : > { %v1736_v15 = vmax.f32 %v1720_v34, 0.0  ;;  %v1511_v37 = vadd.f32 %v1474_v62, %v5555_v45 }
 0x40a   : > { %v1721_v8 = vadd.f32 %v5599_v57, %v1696_v14 }
 0x40b   : > { %v1841_v17 = vadd.f32 %v5663_v2, %v1736_v15  ;;  %v1808_v30 = vpop.permute.xlu0 %1807 }
 0x40c   : > { %v1737_v28 = vmax.f32 %v1721_v8, 0.0  ;;  %v1654_v40 = vpop.permute.xlu1 %1653 }
 0x40d   : > { %v1857_v29 = vmax.f32 %v1841_v17, 0.0  ;;  %v1697_v6 = vadd.f32 %v1654_v40, %v1505_v53 }
 0x40e   : > { %v1842_v26 = vadd.f32 %v5684_v35, %v1737_v28 }
 0x40f   : > { %v1722_v22 = vadd.f32 %v5599_v57, %v1697_v6  ;;  %1893 = vrot.lane.b32.xlu1 %v1857_v29, %s7141_s19  ;;  %v1656_v31 = vpop.permute.xlu0 %1655 }
 0x410   : > { %v1858_v43 = vmax.f32 %v1842_v26, 0.0  ;;  %v1698_v44 = vadd.f32 %v1656_v31, %v1506_v20  ;;  %v1476_v7 = vpop.permute.xlu1 %1475 }
 0x411   : > { %v1738_v12 = vmax.f32 %v1722_v22, 0.0 }
 0x412   : > { %v1723_v2 = vadd.f32 %v5599_v57, %v1698_v44  ;;  %1895 = vrot.lane.b32.xlu0 %v1858_v43, %s7141_s19 }
 0x413   : > { %v1843_v46 = vadd.f32 %v5703_v52, %v1738_v12  ;;  %v1810_v50 = vpop.permute.xlu0 %1809 }
 0x414   : > { %v1739_v55 = vmax.f32 %v1723_v2, 0.0 }
 0x415   : > { %v1859_v35 = vmax.f32 %v1843_v46, 0.0 }
 0x416   : > { %v1844_v24 = vadd.f32 %v5724_v21, %v1739_v55  ;;  %v1658_v27 = vpop.permute.xlu1 %1657 }
 0x417   : > { %v1699_v56 = vadd.f32 %v1658_v27, %v1507_v10  ;;  %1897 = vrot.lane.b32.xlu1 %v1859_v35, %s7141_s19  ;;  %v1660_v39 = vpop.permute.xlu0 %1659 }
 0x418   : > { %v1860_v58 = vmax.f32 %v1844_v24, 0.0  ;;  %v1700_v38 = vadd.f32 %v1660_v39, %v1508_v36 }
 0x419   : > { %v1724_v52 = vadd.f32 %v5599_v57, %v1699_v56 }
 0x41a   : > { %v1725_v63 = vadd.f32 %v5599_v57, %v1700_v38  ;;  %v1478_v60 = vpop.permute.xlu1 %1477  ;;  %1899 = vrot.lane.b32.xlu0 %v1860_v58, %s7141_s19 }
 0x41b   : > { %v1740_v33 = vmax.f32 %v1724_v52, 0.0  ;;  %v1812_v23 = vpop.permute.xlu0 %1811 }
 0x41c   : > { %v1741_v3 = vmax.f32 %v1725_v63, 0.0 }
 0x41d   : > { %v1845_v21 = vadd.f32 %v1804_v59, %v1740_v33 }
 0x41e   : > { %v1846_v5 = vadd.f32 %v1806_v4, %v1741_v3  ;;  %v1662_v0 = vpop.permute.xlu1 %1661  ;;  %v1512_v4 = vadd.f32 %v5549_v42, %v1476_v7  ;;  %v1513_v42 = vadd.f32 %v1478_v60, %v5572_v49 }
 0x41f   : > { %v1861_v1 = vmax.f32 %v1845_v21, 0.0  ;;  %v1701_v18 = vadd.f32 %v1662_v0, %v1509_v16  ;;  %v1664_v19 = vpop.permute.xlu0 %1663 }
 0x420   : > { %v1862_v9 = vmax.f32 %v1846_v5, 0.0  ;;  %v1702_v13 = vadd.f32 %v1664_v19, %v1510_v11 }
 0x421   : > { %v1726_v34 = vadd.f32 %v5599_v57, %v1701_v18  ;;  %1901 = vrot.lane.b32.xlu1 %v1861_v1, %s7141_s19 }
 0x422   : > { %v1727_v25 = vadd.f32 %v5599_v57, %v1702_v13  ;;  %v1480_v14 = vpop.permute.xlu1 %1479  ;;  %1903 = vrot.lane.b32.xlu0 %v1862_v9, %s7141_s19 }
 0x423   : > { %v1742_v41 = vmax.f32 %v1726_v34, 0.0  ;;  %v1814_v47 = vpop.permute.xlu0 %1813  ;;  %v1514_v31 = vadd.f32 %v5567_v48, %v1480_v14 }
 0x424   : > { %v1743_v59 = vmax.f32 %v1727_v25, 0.0 }
 0x425   : > { %v1847_v61 = vadd.f32 %v1808_v30, %v1742_v41 }
 0x426   : > { %v1848_v15 = vadd.f32 %v1810_v50, %v1743_v59  ;;  %v1666_v8 = vpop.permute.xlu1 %1665 }
 0x427   : > { %v1863_v53 = vmax.f32 %v1847_v61, 0.0  ;;  %v1703_v17 = vadd.f32 %v1666_v8, %v1511_v37  ;;  %v1668_v28 = vpop.permute.xlu0 %1667 }
 0x428   : > { %v1864_v40 = vmax.f32 %v1848_v15, 0.0  ;;  %v1704_v29 = vadd.f32 %v1668_v28, %v1512_v4 }
 0x429   : > { %v1728_v6 = vadd.f32 %v5599_v57, %v1703_v17  ;;  %1905 = vrot.lane.b32.xlu1 %v1863_v53, %s7141_s19 }
 0x42a   : > { %v1729_v20 = vadd.f32 %v5599_v57, %v1704_v29  ;;  %v1482_v26 = vpop.permute.xlu1 %1481  ;;  %1907 = vrot.lane.b32.xlu0 %v1864_v40, %s7141_s19 }
 0x42b   : > { %v1744_v45 = vmax.f32 %v1728_v6, 0.0  ;;  %v1816_v62 = vpop.permute.xlu0 %1815  ;;  %v1515_v48 = vadd.f32 %v1482_v26, %v5587_v54 }
 0x42c   : > { %v1745_v30 = vmax.f32 %v1729_v20, 0.0 }
 0x42d   : > { %v1849_v22 = vadd.f32 %v1812_v23, %v1744_v45 }
 0x42e   : > { %v1850_v43 = vadd.f32 %v1814_v47, %v1745_v30  ;;  %v1670_v44 = vpop.permute.xlu1 %1669 }
 0x42f   : > { %v1865_v12 = vmax.f32 %v1849_v22, 0.0  ;;  %v1705_v2 = vadd.f32 %v1670_v44, %v1513_v42  ;;  %v1672_v7 = vpop.permute.xlu0 %1671 }
 0x430   : > { %v1866_v46 = vmax.f32 %v1850_v43, 0.0  ;;  %v1706_v50 = vadd.f32 %v1672_v7, %v1514_v31 }
 0x431   : > { %v1730_v55 = vadd.f32 %v5599_v57, %v1705_v2  ;;  %1909 = vrot.lane.b32.xlu1 %v1865_v12, %s7141_s19 }
 0x432   : > { %v1731_v10 = vadd.f32 %v5599_v57, %v1706_v50  ;;  %v1484_v35 = vpop.permute.xlu1 %1483  ;;  %1911 = vrot.lane.b32.xlu0 %v1866_v46, %s7141_s19 }
 0x433   : > { %v1746_v49 = vmax.f32 %v1730_v55, 0.0  ;;  %v1818_v36 = vpop.permute.xlu0 %1817  ;;  %v1516_v56 = vadd.f32 %v5581_v51, %v1484_v35 }
 0x434   : > { %v1747_v24 = vmax.f32 %v1731_v10, 0.0 }
 0x435   : > { %v1851_v27 = vadd.f32 %v1816_v62, %v1746_v49 }
 0x436   : > { %v1852_v39 = vadd.f32 %v1818_v36, %v1747_v24  ;;  %v1674_v58 = vpop.permute.xlu1 %1673 }
 0x437   : > { %v1867_v38 = vmax.f32 %v1851_v27, 0.0  ;;  %v1707_v52 = vadd.f32 %v1674_v58, %v1515_v48  ;;  %v1676_v63 = vpop.permute.xlu0 %1675  ;;  %v4546_v58 = vld [vmem:[%s7125_s7] ss:$0 sm:$0xff] }
 0x438   : > { %v1868_v60 = vmax.f32 %v1852_v39, 0.0  ;;  %v1708_v33 = vadd.f32 %v1676_v63, %v1516_v56 }
 0x439   : > { %v1732_v23 = vadd.f32 %v5599_v57, %v1707_v52  ;;  %1913 = vrot.lane.b32.xlu1 %v1867_v38, %s7141_s19 }
 0x43a   : > { %v1733_v3 = vadd.f32 %v5599_v57, %v1708_v33  ;;  %1915 = vrot.lane.b32.xlu0 %v1868_v60, %s7141_s19  ;;  %v1820_v54 = vpop.permute.xlu1 %1819 }
 0x43b   : > { %v1748_v16 = vmax.f32 %v1732_v23, 0.0  ;;  %v1822_v51 = vpop.permute.xlu0 %1821 }
 0x43c   : > { %v1749_v21 = vmax.f32 %v1733_v3, 0.0 }
 0x43d   : > { %v1853_v11 = vadd.f32 %v1820_v54, %v1748_v16 }
 0x43e   : > { %v1854_v5 = vadd.f32 %v1822_v51, %v1749_v21 }
 0x43f   : > { %v1869_v0 = vmax.f32 %v1853_v11, 0.0 }
 0x440   : > { %v1870_v1 = vmax.f32 %v1854_v5, 0.0 }
 0x441   : > { %1917 = vrot.lane.b32.xlu1 %v1869_v0, %s7141_s19 }
 0x442   : > { %1919 = vrot.lane.b32.xlu0 %v1870_v1, %s7141_s19 }
 0x477   : > { %v1892_v19 = vpop.permute.xlu0 %1891 }
 0x478   : > { %v1890_v18 = vpop.permute.xlu1 %1889 }
 0x479   : > { %4784 = vmatprep.mubr.msk.f32.mxu0 %vm598_vm0, %v1890_v18 }
 0x47a   : > { %4785 = vmatmul.mubr.msk.f32.vlgmr.msra.gmra.mxu0 %vm598_vm0, %v1892_v19 }
 0x481   : > { %v1894_v57 = vpop.permute.xlu1 %1893 }
 0x482   : > { %4787 = vmatprep.mubr.msk.f32.mxu0 %vm598_vm0, %v1894_v57 }
 0x484   : > { %v1896_v9 = vpop.permute.xlu0 %1895 }
 0x485   : > { %4788 = vmatmul.mubr.msk.f32.gmra.mxu0 %vm598_vm0, %v1896_v9 }
 0x489   : > { %v1898_v13 = vpop.permute.xlu1 %1897 }
 0x48a   : > { %4790 = vmatprep.mubr.msk.f32.mxu0 %vm598_vm0, %v1898_v13 }
 0x48c   : > { %v1900_v34 = vpop.permute.xlu0 %1899 }
 0x48d   : > { %4791 = vmatmul.mubr.msk.f32.gmra.mxu0 %vm598_vm0, %v1900_v34 }
 0x493   : > { %v1902_v25 = vpop.permute.xlu1 %1901 }
 0x494   : > { %4793 = vmatprep.mubr.msk.f32.mxu0 %vm598_vm0, %v1902_v25  ;;  %v1904_v14 = vpop.permute.xlu0 %1903 }
 0x495   : > { %4794 = vmatmul.mubr.msk.f32.gmra.mxu0 %vm598_vm0, %v1904_v14 }
 0x49b   : > { %v1906_v41 = vpop.permute.xlu1 %1905 }
 0x49c   : > { %4796 = vmatprep.mubr.msk.f32.mxu0 %vm598_vm0, %v1906_v41  ;;  %v1908_v47 = vpop.permute.xlu0 %1907 }
 0x49d   : > { %4797 = vmatmul.mubr.msk.f32.gmra.mxu0 %vm598_vm0, %v1908_v47 }
 0x4a3   : > { %v1910_v59 = vpop.permute.xlu1 %1909 }
 0x4a4   : > { %4799 = vmatprep.mubr.msk.f32.mxu0 %vm598_vm0, %v1910_v59  ;;  %v1912_v37 = vpop.permute.xlu0 %1911 }
 0x4a5   : > { %4800 = vmatmul.mubr.msk.f32.gmra.mxu0 %vm598_vm0, %v1912_v37 }
 0x4ab   : > { %v1914_v61 = vpop.permute.xlu1 %1913 }
 0x4ac   : > { %4802 = vmatprep.mubr.msk.f32.mxu0 %vm598_vm0, %v1914_v61  ;;  %v1916_v4 = vpop.permute.xlu0 %1915 }
 0x4ad   : > { %4803 = vmatmul.mubr.msk.f32.gmra.mxu0 %vm598_vm0, %v1916_v4 }
 0x4b3   : > { %v1918_v15 = vpop.permute.xlu1 %1917 }
 0x4b4   : > { %4805 = vmatprep.mubr.msk.f32.mxu0 %vm598_vm0, %v1918_v15  ;;  %v1920_v8 = vpop.permute.xlu0 %1919 }
 0x4b5   : > { %4806 = vmatmul.mubr.msk.f32.gmra.mxu0 %vm598_vm0, %v1920_v8 }
 0x53a   : > { %v5843_v53 = vpop.f32.mrf.mxu0 }
 0x53b   : > { %2247 = vrot.lane.b32.xlu0 %v5843_v53, %s7141_s19  ;;  %v2106_v43 = vrot.slane %v5843_v53, 4 }
 0x53c   : > { %v5847_v17 = vpop.f32.mrf.mxu0 }
 0x53d   : > { %2245 = vrot.lane.b32.xlu1 %v5847_v17, %s7141_s19  ;;  %v2098_v22 = vrot.slane %v5847_v17, 4 }
 0x53f   : > { %v2123_v12 = vsel %vm2114_vm5, %v2106_v43, %v2098_v22  ;;  %v2115_v50 = vsel %vm2114_vm5, %v2098_v22, %v2106_v43 }
 0x540   : > { %v2133_v2 = vsel %vm2131_vm6, %v2123_v12, 0.0 }
 0x545   : > { %v5851_v28 = vpop.f32.mrf.mxu0 }
 0x546   : > { %2251 = vrot.lane.b32.xlu0 %v5851_v28, %s7141_s19  ;;  %v2107_v24 = vrot.slane %v5851_v28, 4 }
 0x547   : > { %v5855_v40 = vpop.f32.mrf.mxu0 }
 0x548   : > { %2249 = vrot.lane.b32.xlu1 %v5855_v40, %s7141_s19  ;;  %v2099_v10 = vrot.slane %v5855_v40, 4 }
 0x54a   : > { %v2124_v39 = vsel %vm2114_vm5, %v2107_v24, %v2099_v10  ;;  %v2116_v3 = vsel %vm2114_vm5, %v2099_v10, %v2107_v24 }
 0x54b   : > { %v2135_v38 = vsel %vm2131_vm6, %v2124_v39, 0.0 }
 0x54d   : > { %v5859_v29 = vpop.f32.mrf.mxu0 }
 0x54e   : > { %2255 = vrot.lane.b32.xlu0 %v5859_v29, %s7141_s19  ;;  %v2108_v16 = vrot.slane %v5859_v29, 4 }
 0x54f   : > { %v5863_v6 = vpop.f32.mrf.mxu0 }
 0x550   : > { %2253 = vrot.lane.b32.xlu1 %v5863_v6, %s7141_s19  ;;  %v2100_v60 = vrot.slane %v5863_v6, 4 }
 0x552   : > { %v2125_v51 = vsel %vm2114_vm5, %v2108_v16, %v2100_v60  ;;  %v2117_v9 = vsel %vm2114_vm5, %v2100_v60, %v2108_v16 }
 0x553   : > { %v2137_v1 = vsel %vm2131_vm6, %v2125_v51, 0.0 }
 0x555   : > { %v5867_v20 = vpop.f32.mrf.mxu0 }
 0x556   : > { %2259 = vrot.lane.b32.xlu0 %v5867_v20, %s7141_s19  ;;  %v2109_v13 = vrot.slane %v5867_v20, 4 }
 0x557   : > { %v5871_v26 = vpop.f32.mrf.mxu0 }
 0x558   : > { %2257 = vrot.lane.b32.xlu1 %v5871_v26, %s7141_s19  ;;  %v2101_v18 = vrot.slane %v5871_v26, 4 }
 0x55a   : > { %v2126_v41 = vsel %vm2114_vm5, %v2109_v13, %v2101_v18  ;;  %v2118_v8 = vsel %vm2114_vm5, %v2101_v18, %v2109_v13 }
 0x55b   : > { %v2139_v37 = vsel %vm2131_vm6, %v2126_v41, 0.0 }
 0x55d   : > { %v5875_v45 = vpop.f32.mrf.mxu0 }
 0x55e   : > { %2263 = vrot.lane.b32.xlu0 %v5875_v45, %s7141_s19  ;;  %v2110_v22 = vrot.slane %v5875_v45, 4 }
 0x55f   : > { %v5879_v62 = vpop.f32.mrf.mxu0 }
 0x560   : > { %2261 = vrot.lane.b32.xlu1 %v5879_v62, %s7141_s19  ;;  %v2102_v61 = vrot.slane %v5879_v62, 4 }
 0x565   : > { %v5883_v30 = vpop.f32.mrf.mxu0 }
 0x566   : > { %2267 = vrot.lane.b32.xlu0 %v5883_v30, %s7141_s19 }
 0x567   : > { %v5887_v42 = vpop.f32.mrf.mxu0 }
 0x568   : > { %2265 = vrot.lane.b32.xlu1 %v5887_v42, %s7141_s19 }
 0x56d   : > { %v5893_v31 = vpop.f32.mrf.mxu0 }
 0x56e   : > { %2271 = vrot.lane.b32.xlu0 %v5893_v31, %s7141_s19 }
 0x56f   : > { %v5898_v44 = vpop.f32.mrf.mxu0 }
 0x570   : > { %2269 = vrot.lane.b32.xlu1 %v5898_v44, %s7141_s19 }
 0x574   : > { %2165 = vrot.lane.b32.xlu1 %v2133_v2, %s7143_s29 }
 0x575   : > { %v5908_v7 = vpop.f32.mrf.mxu0 }
 0x576   : > { %2275 = vrot.lane.b32.xlu0 %v5908_v7, %s7141_s19 }
 0x577   : > { %v5912_v46 = vpop.f32.mrf.mxu0 }
 0x578   : > { %2273 = vrot.lane.b32.xlu1 %v5912_v46, %s7141_s19 }
 0x57a   : > { %2167 = vrot.lane.b32.xlu0 %v2115_v50, %s7143_s29  ;;  %v2127_v50 = vsel %vm2114_vm5, %v2110_v22, %v2102_v61 }
 0x5ad   : > { %v2248_v55 = vpop.permute.xlu0 %2247 }
 0x5ae   : > { %v2301_v49 = vrot.slane %v2248_v55, 6 }
 0x5af   : > { %v2246_v35 = vpop.permute.xlu1 %2245 }
 0x5b0   : > { %v2293_v36 = vrot.slane %v2246_v35, 6  ;;  %v2141_v35 = vsel %vm2131_vm6, %v2127_v50, 0.0 }
 0x5b2   : > { %v2309_v48 = vsel %vm810_vm1, %v2293_v36, %v2301_v49  ;;  %v2317_v27 = vsel %vm810_vm1, %v2301_v49, %v2293_v36  ;;  %v2103_v49 = vrot.slane %v5887_v42, 4 }
 0x5b3   : > { %2359 = vrot.lane.b32.xlu0 %v2309_v48, %s7143_s29  ;;  %v2325_v56 = vsel %vm828_vm2, %v2317_v27, 0.0  ;;  %v2119_v48 = vsel %vm2114_vm5, %v2102_v61, %v2110_v22  ;;  %v2111_v27 = vrot.slane %v5883_v30, 4 }
 0x5b4   : > { %2357 = vrot.lane.b32.xlu1 %v2325_v56, %s7143_s29 }
 0x5b5   : > { %v2120_v16 = vsel %vm2114_vm5, %v2103_v49, %v2111_v27 }
 0x5b7   : > { %2169 = vrot.lane.b32.xlu0 %v2135_v38, %s7143_s29  ;;  %v2128_v38 = vsel %vm2114_vm5, %v2111_v27, %v2103_v49 }
 0x5b8   : > { %2427 = vrot.lane.b32.xlu1 %v4546_v58, %s7143_s29  ;;  %v2252_v52 = vpop.permute.xlu0 %2251  ;;  %v2143_v60 = vsel %vm2131_vm6, %v2128_v38, 0.0 }
 0x5b9   : > { %v2302_v33 = vrot.slane %v2252_v52, 6 }
 0x5ba   : > { %v2250_v63 = vpop.permute.xlu1 %2249 }
 0x5bb   : > { %v2294_v23 = vrot.slane %v2250_v63, 6 }
 0x5bc   : > { %2171 = vrot.lane.b32.xlu1 %v2116_v3, %s7143_s29 }
 0x5bd   : > { %v2318_v54 = vsel %vm810_vm1, %v2302_v33, %v2294_v23  ;;  %v2310_v11 = vsel %vm810_vm1, %v2294_v23, %v2302_v33  ;;  %v2104_v33 = vrot.slane %v5898_v44, 4 }
 0x5be   : > { %v2327_v21 = vsel %vm828_vm2, %v2318_v54, 0.0  ;;  %v2112_v54 = vrot.slane %v5893_v31, 4 }
 0x5bf   : > { %2361 = vrot.lane.b32.xlu0 %v2327_v21, %s7143_s29 }
 0x5c0   : > { %2363 = vrot.lane.b32.xlu1 %v2310_v11, %s7143_s29  ;;  %v2256_v5 = vpop.permute.xlu0 %2255  ;;  %v2121_v13 = vsel %vm2114_vm5, %v2104_v33, %v2112_v54 }
 0x5c1   : > { %v2303_v19 = vrot.slane %v2256_v5, 6  ;;  %v2129_v5 = vsel %vm2114_vm5, %v2112_v54, %v2104_v33 }
 0x5c2   : > { %v2254_v0 = vpop.permute.xlu1 %2253  ;;  %v2145_v18 = vsel %vm2131_vm6, %v2129_v5, 0.0 }
 0x5c3   : > { %v2295_v57 = vrot.slane %v2254_v0, 6  ;;  %2173 = vrot.lane.b32.xlu0 %v2137_v1, %s7143_s29 }
 0x5c4   : > { %2175 = vrot.lane.b32.xlu1 %v2117_v9, %s7143_s29 }
 0x5c5   : > { %v2319_v34 = vsel %vm810_vm1, %v2303_v19, %v2295_v57  ;;  %v2311_v14 = vsel %vm810_vm1, %v2295_v57, %v2303_v19  ;;  %v2105_v19 = vrot.slane %v5912_v46, 4 }
 0x5c6   : > { %v2329_v25 = vsel %vm828_vm2, %v2319_v34, 0.0  ;;  %v2113_v34 = vrot.slane %v5908_v7, 4 }
 0x5c7   : > { %2365 = vrot.lane.b32.xlu0 %v2329_v25, %s7143_s29 }
 0x5c8   : > { %2367 = vrot.lane.b32.xlu1 %v2311_v14, %s7143_s29  ;;  %v2260_v47 = vpop.permute.xlu0 %2259  ;;  %v2122_v22 = vsel %vm2114_vm5, %v2105_v19, %v2113_v34 }
 0x5c9   : > { %v2304_v4 = vrot.slane %v2260_v47, 6 }
 0x5ca   : > { %v2258_v59 = vpop.permute.xlu1 %2257 }
 0x5cb   : > { %v2296_v15 = vrot.slane %v2258_v59, 6  ;;  %2177 = vrot.lane.b32.xlu0 %v2139_v37, %s7143_s29  ;;  %v2130_v59 = vsel %vm2114_vm5, %v2113_v34, %v2105_v19 }
 0x5cc   : > { %2179 = vrot.lane.b32.xlu1 %v2118_v8, %s7143_s29 }
 0x5cd   : > { %v2320_v43 = vsel %vm810_vm1, %v2304_v4, %v2296_v15  ;;  %v2312_v2 = vsel %vm810_vm1, %v2296_v15, %v2304_v4  ;;  %v2147_v4 = vsel %vm2131_vm6, %v2130_v59, 0.0 }
 0x5ce   : > { %v2331_v12 = vsel %vm828_vm2, %v2320_v43, 0.0  ;;  %v2465_v43 = vld [vmem:[%s7127_s9 + $0x18] sm:$0xff] }
 0x5cf   : > { %2369 = vrot.lane.b32.xlu0 %v2331_v12, %s7143_s29  ;;  %v2464_v12 = vld [vmem:[%s7127_s9 + $0x10] sm:$0xff]  ;;  %4808 = vmatprep.subr.mxu1 %v2465_v43 }
 0x5d0   : > { %2371 = vrot.lane.b32.xlu1 %v2312_v2, %s7143_s29  ;;  %v2264_v55 = vpop.permute.xlu0 %2263  ;;  %4809 = vmatpush3.msra.mxu1 %v2465_v43 }
 0x5d1   : > { %v2305_v36 = vrot.slane %v2264_v55, 6  ;;  %v2463_v55 = vld [vmem:[%s7127_s9 + $0x8] sm:$0xff]  ;;  %4810 = vmatprep.subr.mxu1 %v2464_v12 }
 0x5d2   : > { %v2262_v10 = vpop.permute.xlu1 %2261  ;;  %4811 = vmatpush3.msra.mxu1 %v2464_v12 }
 0x5d3   : > { %v2297_v24 = vrot.slane %v2262_v10, 6  ;;  %2181 = vrot.lane.b32.xlu0 %v2141_v35, %s7143_s29  ;;  %v2462_v35 = vld [vmem:[%s7127_s9] sm:$0xff]  ;;  %4812 = vmatprep.subr.mxu1 %v2463_v55 }
 0x5d4   : > { %2183 = vrot.lane.b32.xlu1 %v2119_v48, %s7143_s29  ;;  %4813 = vmatpush3.msra.mxu1 %v2463_v55 }
 0x5d5   : > { %v2321_v56 = vsel %vm810_vm1, %v2305_v36, %v2297_v24  ;;  %v2313_v58 = vsel %vm810_vm1, %v2297_v24, %v2305_v36  ;;  %4814 = vmatprep.subr.mxu1 %v2462_v35 }
 0x5d6   : > { %v2333_v39 = vsel %vm828_vm2, %v2321_v56, 0.0  ;;  %4815 = vmatpush3.msra.mxu1 %v2462_v35 }
 0x5d7   : > { %2373 = vrot.lane.b32.xlu0 %v2333_v39, %s7143_s29 }
 0x5d8   : > { %2375 = vrot.lane.b32.xlu1 %v2313_v58, %s7143_s29  ;;  %v2268_v52 = vpop.permute.xlu0 %2267 }
 0x5d9   : > { %v2306_v23 = vrot.slane %v2268_v52, 6 }
 0x5da   : > { %v2266_v63 = vpop.permute.xlu1 %2265 }
 0x5db   : > { %v2298_v3 = vrot.slane %v2266_v63, 6  ;;  %2185 = vrot.lane.b32.xlu0 %v2143_v60, %s7143_s29 }
 0x5dc   : > { %2187 = vrot.lane.b32.xlu1 %v2120_v16, %s7143_s29 }
 0x5dd   : > { %v2322_v21 = vsel %vm810_vm1, %v2306_v23, %v2298_v3  ;;  %v2314_v51 = vsel %vm810_vm1, %v2298_v3, %v2306_v23 }
 0x5de   : > { %v2335_v11 = vsel %vm828_vm2, %v2322_v21, 0.0 }
 0x5df   : > { %2377 = vrot.lane.b32.xlu0 %v2335_v11, %s7143_s29 }
 0x5e0   : > { %2379 = vrot.lane.b32.xlu1 %v2314_v51, %s7143_s29  ;;  %v2272_v0 = vpop.permute.xlu0 %2271 }
 0x5e1   : > { %v2307_v57 = vrot.slane %v2272_v0, 6 }
 0x5e2   : > { %v2270_v1 = vpop.permute.xlu1 %2269 }
 0x5e3   : > { %v2299_v9 = vrot.slane %v2270_v1, 6  ;;  %2189 = vrot.lane.b32.xlu0 %v2145_v18, %s7143_s29 }
 0x5e4   : > { %2191 = vrot.lane.b32.xlu1 %v2121_v13, %s7143_s29 }
 0x5e5   : > { %v2323_v25 = vsel %vm810_vm1, %v2307_v57, %v2299_v9  ;;  %v2315_v47 = vsel %vm810_vm1, %v2299_v9, %v2307_v57 }
 0x5e6   : > { %v2166_v14 = vpop.permute.xlu1 %2165  ;;  %v2337_v41 = vsel %vm828_vm2, %v2323_v25, 0.0 }
 0x5e7   : > { %2381 = vrot.lane.b32.xlu0 %v2337_v41, %s7143_s29  ;;  %v2213_v48 = vadd.f32 %v2166_v14, %v5847_v17 }
 0x5e8   : > { %2383 = vrot.lane.b32.xlu1 %v2315_v47, %s7143_s29  ;;  %v2276_v37 = vpop.permute.xlu0 %2275 }
 0x5e9   : > { %v2308_v15 = vrot.slane %v2276_v37, 6 }
 0x5ea   : > { %v2274_v61 = vpop.permute.xlu1 %2273 }
 0x5eb   : > { %v2300_v8 = vrot.slane %v2274_v61, 6  ;;  %2193 = vrot.lane.b32.xlu0 %v2147_v4, %s7143_s29 }
 0x5ec   : > { %2195 = vrot.lane.b32.xlu1 %v2122_v22, %s7143_s29  ;;  %v2168_v49 = vpop.permute.xlu0 %2167 }
 0x5ed   : > { %v2324_v2 = vsel %vm810_vm1, %v2308_v15, %v2300_v8  ;;  %v2316_v10 = vsel %vm810_vm1, %v2300_v8, %v2308_v15  ;;  %v2214_v27 = vadd.f32 %v5843_v53, %v2168_v49 }
 0x5ee   : > { %v2339_v50 = vsel %vm828_vm2, %v2324_v2, 0.0 }
 0x5ef   : > { %2385 = vrot.lane.b32.xlu0 %v2339_v50, %s7143_s29 }
 0x5f0   : > { %2387 = vrot.lane.b32.xlu1 %v2316_v10, %s7143_s29 }
 0x625   : > { %v2360_v36 = vpop.permute.xlu0 %2359 }
 0x626   : > { %v2358_v24 = vpop.permute.xlu1 %2357  ;;  %v2406_v56 = vadd.f32 %v2360_v36, %v2214_v27 }
 0x627   : > { %v2405_v39 = vadd.f32 %v2358_v24, %v2213_v48 }
 0x629   : > { %v2170_v63 = vpop.permute.xlu0 %2169 }
 0x62a   : > { %v6071_v58 = vpop.permute.xlu1 %2427  ;;  %v2215_v3 = vadd.f32 %v2170_v63, %v5855_v40 }
 0x62b   : > { %v2430_v38 = vadd.f32 %v6071_v58, %v2405_v39  ;;  %v2431_v52 = vadd.f32 %v6071_v58, %v2406_v56 }
 0x62d   : > { %v2446_v60 = vmax.f32 %v2430_v38, 0.0  ;;  %v2447_v33 = vmax.f32 %v2431_v52, 0.0 }
 0x62e   : > { %v2172_v23 = vpop.permute.xlu1 %2171 }
 0x62f   : > { %2482 = vrot.lane.b32.xlu0 %v2446_v60, %s7143_s29  ;;  %2484 = vrot.lane.b32.xlu1 %v2447_v33, %s7143_s29  ;;  %v2216_v16 = vadd.f32 %v5851_v28, %v2172_v23 }
 0x631   : > { %v2362_v54 = vpop.permute.xlu0 %2361 }
 0x632   : > { %v2407_v21 = vadd.f32 %v2362_v54, %v2215_v3  ;;  %v2364_v11 = vpop.permute.xlu1 %2363 }
 0x633   : > { %v2408_v51 = vadd.f32 %v2364_v11, %v2216_v16 }
 0x634   : > { %v2432_v5 = vadd.f32 %v6071_v58, %v2407_v21 }
 0x635   : > { %v2433_v0 = vadd.f32 %v6071_v58, %v2408_v51  ;;  %v2174_v1 = vpop.permute.xlu0 %2173 }
 0x636   : > { %v2448_v18 = vmax.f32 %v2432_v5, 0.0  ;;  %v2176_v19 = vpop.permute.xlu1 %2175  ;;  %v2217_v9 = vadd.f32 %v2174_v1, %v5863_v6 }
 0x637   : > { %v2449_v57 = vmax.f32 %v2433_v0, 0.0  ;;  %v2218_v13 = vadd.f32 %v5859_v29, %v2176_v19 }
 0x638   : > { %2486 = vrot.lane.b32.xlu0 %v2448_v18, %s7143_s29 }
 0x639   : > { %2488 = vrot.lane.b32.xlu1 %v2449_v57, %s7143_s29  ;;  %v2366_v34 = vpop.permute.xlu0 %2365 }
 0x63a   : > { %v2409_v25 = vadd.f32 %v2366_v34, %v2217_v9  ;;  %v2368_v14 = vpop.permute.xlu1 %2367 }
 0x63b   : > { %v2410_v41 = vadd.f32 %v2368_v14, %v2218_v13 }
 0x63c   : > { %v2434_v47 = vadd.f32 %v6071_v58, %v2409_v25 }
 0x63d   : > { %v2435_v59 = vadd.f32 %v6071_v58, %v2410_v41  ;;  %v2178_v37 = vpop.permute.xlu0 %2177 }
 0x63e   : > { %v2450_v61 = vmax.f32 %v2434_v47, 0.0  ;;  %v2180_v4 = vpop.permute.xlu1 %2179  ;;  %v2219_v8 = vadd.f32 %v2178_v37, %v5871_v26 }
 0x63f   : > { %v2451_v15 = vmax.f32 %v2435_v59, 0.0  ;;  %v2220_v22 = vadd.f32 %v5867_v20, %v2180_v4 }
 0x640   : > { %2490 = vrot.lane.b32.xlu0 %v2450_v61, %s7143_s29 }
 0x641   : > { %2492 = vrot.lane.b32.xlu1 %v2451_v15, %s7143_s29  ;;  %v2370_v43 = vpop.permute.xlu0 %2369 }
 0x642   : > { %v2411_v12 = vadd.f32 %v2370_v43, %v2219_v8  ;;  %v2372_v2 = vpop.permute.xlu1 %2371 }
 0x643   : > { %v2412_v50 = vadd.f32 %v2372_v2, %v2220_v22 }
 0x644   : > { %v2436_v55 = vadd.f32 %v6071_v58, %v2411_v12 }
 0x645   : > { %v2437_v10 = vadd.f32 %v6071_v58, %v2412_v50  ;;  %v2182_v35 = vpop.permute.xlu0 %2181 }
 0x646   : > { %v2452_v49 = vmax.f32 %v2436_v55, 0.0  ;;  %v2184_v36 = vpop.permute.xlu1 %2183  ;;  %v2221_v48 = vadd.f32 %v2182_v35, %v5879_v62 }
 0x647   : > { %v2453_v24 = vmax.f32 %v2437_v10, 0.0  ;;  %v2222_v27 = vadd.f32 %v5875_v45, %v2184_v36 }
 0x648   : > { %2494 = vrot.lane.b32.xlu0 %v2452_v49, %s7143_s29 }
 0x649   : > { %2496 = vrot.lane.b32.xlu1 %v2453_v24, %s7143_s29  ;;  %v2374_v56 = vpop.permute.xlu0 %2373 }
 0x64a   : > { %v2413_v39 = vadd.f32 %v2374_v56, %v2221_v48  ;;  %v2376_v38 = vpop.permute.xlu1 %2375  ;;  %v4564_v48 = vld [vmem:[%s7126_s8] ss:$0 sm:$0xff] }
 0x64b   : > { %v2414_v52 = vadd.f32 %v2376_v38, %v2222_v27 }
 0x64c   : > { %v2438_v63 = vadd.f32 %v6071_v58, %v2413_v39 }
 0x64d   : > { %v2439_v60 = vadd.f32 %v6071_v58, %v2414_v52  ;;  %v2186_v33 = vpop.permute.xlu0 %2185 }
 0x64e   : > { %v2454_v23 = vmax.f32 %v2438_v63, 0.0  ;;  %v2188_v3 = vpop.permute.xlu1 %2187  ;;  %v2223_v54 = vadd.f32 %v2186_v33, %v5887_v42 }
 0x64f   : > { %v2455_v16 = vmax.f32 %v2439_v60, 0.0  ;;  %v2224_v21 = vadd.f32 %v5883_v30, %v2188_v3 }
 0x650   : > { %2498 = vrot.lane.b32.xlu0 %v2454_v23, %s7143_s29 }
 0x651   : > { %2500 = vrot.lane.b32.xlu1 %v2455_v16, %s7143_s29  ;;  %v2378_v11 = vpop.permute.xlu0 %2377 }
 0x652   : > { %v2415_v51 = vadd.f32 %v2378_v11, %v2223_v54  ;;  %v2380_v5 = vpop.permute.xlu1 %2379 }
 0x653   : > { %v2416_v0 = vadd.f32 %v2380_v5, %v2224_v21 }
 0x654   : > { %v2440_v1 = vadd.f32 %v6071_v58, %v2415_v51 }
 0x655   : > { %v2441_v18 = vadd.f32 %v6071_v58, %v2416_v0  ;;  %v2190_v19 = vpop.permute.xlu0 %2189 }
 0x656   : > { %v2456_v57 = vmax.f32 %v2440_v1, 0.0  ;;  %v2192_v9 = vpop.permute.xlu1 %2191  ;;  %v2225_v34 = vadd.f32 %v2190_v19, %v5898_v44  ;;  %v4563_v1 = vld [vmem:[%s7128_s10] ss:$0 sm:$0xff] }
 0x657   : > { %v2457_v13 = vmax.f32 %v2441_v18, 0.0  ;;  %v2226_v25 = vadd.f32 %v5893_v31, %v2192_v9 }
 0x658   : > { %2502 = vrot.lane.b32.xlu0 %v2456_v57, %s7143_s29 }
 0x659   : > { %2504 = vrot.lane.b32.xlu1 %v2457_v13, %s7143_s29  ;;  %v2382_v14 = vpop.permute.xlu0 %2381 }
 0x65a   : > { %v2417_v41 = vadd.f32 %v2382_v14, %v2225_v34  ;;  %v2384_v47 = vpop.permute.xlu1 %2383 }
 0x65b   : > { %v2418_v59 = vadd.f32 %v2384_v47, %v2226_v25 }
 0x65c   : > { %v2442_v37 = vadd.f32 %v6071_v58, %v2417_v41 }
 0x65d   : > { %v2443_v61 = vadd.f32 %v6071_v58, %v2418_v59  ;;  %v2194_v4 = vpop.permute.xlu0 %2193 }
 0x65e   : > { %v2458_v15 = vmax.f32 %v2442_v37, 0.0  ;;  %v2196_v8 = vpop.permute.xlu1 %2195  ;;  %v2227_v43 = vadd.f32 %v2194_v4, %v5912_v46 }
 0x65f   : > { %v2459_v22 = vmax.f32 %v2443_v61, 0.0  ;;  %v2228_v12 = vadd.f32 %v5908_v7, %v2196_v8 }
 0x660   : > { %2506 = vrot.lane.b32.xlu0 %v2458_v15, %s7143_s29 }
 0x661   : > { %2508 = vrot.lane.b32.xlu1 %v2459_v22, %s7143_s29  ;;  %v2386_v2 = vpop.permute.xlu0 %2385 }
 0x662   : > { %v2419_v50 = vadd.f32 %v2386_v2, %v2227_v43  ;;  %v2388_v55 = vpop.permute.xlu1 %2387 }
 0x663   : > { %v2420_v10 = vadd.f32 %v2388_v55, %v2228_v12 }
 0x664   : > { %v2444_v35 = vadd.f32 %v6071_v58, %v2419_v50 }
 0x665   : > { %v2445_v49 = vadd.f32 %v6071_v58, %v2420_v10 }
 0x666   : > { %v2460_v36 = vmax.f32 %v2444_v35, 0.0 }
 0x667   : > { %v2461_v24 = vmax.f32 %v2445_v49, 0.0 }
 0x668   : > { %2510 = vrot.lane.b32.xlu0 %v2460_v36, %s7143_s29 }
 0x669   : > { %2512 = vrot.lane.b32.xlu1 %v2461_v24, %s7143_s29 }
 0x66c   : > { %3059 = vrot.lane.b32.xlu0 %v4564_v48, %s7141_s19 }
 0x6a1   : > { %v2485_v27 = vpop.permute.xlu1 %2484  ;;  %v2483_v56 = vpop.permute.xlu0 %2482 }
 0x6a2   : > { %4816 = vmatprep.mubr.msk.f32.mxu1 %vm2514_vm7, %v2483_v56 }
 0x6a3   : > { %4817 = vmatmul.mubr.msk.f32.vlgmr.msra.gmra.mxu1 %vm2514_vm7, %v2485_v27 }
 0x6aa   : > { %v2487_v58 = vpop.permute.xlu0 %2486 }
 0x6ab   : > { %v2489_v39 = vpop.permute.xlu1 %2488  ;;  %4819 = vmatprep.mubr.msk.f32.mxu1 %vm2514_vm7, %v2487_v58 }
 0x6ac   : > { %4820 = vmatmul.mubr.msk.f32.gmra.mxu1 %vm2514_vm7, %v2489_v39 }
 0x6b2   : > { %v2491_v38 = vpop.permute.xlu0 %2490 }
 0x6b3   : > { %v2493_v52 = vpop.permute.xlu1 %2492  ;;  %4822 = vmatprep.mubr.msk.f32.mxu1 %vm2514_vm7, %v2491_v38 }
 0x6b4   : > { %4823 = vmatmul.mubr.msk.f32.gmra.mxu1 %vm2514_vm7, %v2493_v52 }
 0x6ba   : > { %v2495_v63 = vpop.permute.xlu0 %2494 }
 0x6bb   : > { %v2497_v60 = vpop.permute.xlu1 %2496  ;;  %4825 = vmatprep.mubr.msk.f32.mxu1 %vm2514_vm7, %v2495_v63 }
 0x6bc   : > { %4826 = vmatmul.mubr.msk.f32.gmra.mxu1 %vm2514_vm7, %v2497_v60 }
 0x6c2   : > { %v2499_v33 = vpop.permute.xlu0 %2498 }
 0x6c3   : > { %v2501_v23 = vpop.permute.xlu1 %2500  ;;  %4828 = vmatprep.mubr.msk.f32.mxu1 %vm2514_vm7, %v2499_v33 }
 0x6c4   : > { %4829 = vmatmul.mubr.msk.f32.gmra.mxu1 %vm2514_vm7, %v2501_v23 }
 0x6ca   : > { %v2503_v3 = vpop.permute.xlu0 %2502 }
 0x6cb   : > { %v2505_v16 = vpop.permute.xlu1 %2504  ;;  %4831 = vmatprep.mubr.msk.f32.mxu1 %vm2514_vm7, %v2503_v3 }
 0x6cc   : > { %4832 = vmatmul.mubr.msk.f32.gmra.mxu1 %vm2514_vm7, %v2505_v16 }
 0x6d2   : > { %v2507_v54 = vpop.permute.xlu0 %2506 }
 0x6d3   : > { %v2509_v21 = vpop.permute.xlu1 %2508  ;;  %4834 = vmatprep.mubr.msk.f32.mxu1 %vm2514_vm7, %v2507_v54 }
 0x6d4   : > { %4835 = vmatmul.mubr.msk.f32.gmra.mxu1 %vm2514_vm7, %v2509_v21 }
 0x6da   : > { %v2511_v11 = vpop.permute.xlu0 %2510 }
 0x6db   : > { %v2513_v51 = vpop.permute.xlu1 %2512  ;;  %4837 = vmatprep.mubr.msk.f32.mxu1 %vm2514_vm7, %v2511_v11 }
 0x6dc   : > { %4838 = vmatmul.mubr.msk.f32.gmra.mxu1 %vm2514_vm7, %v2513_v51 }
 0x6de   : > { %v6177_v37 = vpop.permute.xlu0 %3059 }
 0x6df   : > { %v3062_v15 = vadd.f32 %v6177_v37, %v5847_v17  ;;  %v3063_v12 = vadd.f32 %v5843_v53, %v6177_v37  ;;  %v3064_v35 = vadd.f32 %v6177_v37, %v5855_v40  ;;  %v3065_v48 = vadd.f32 %v5851_v28, %v6177_v37 }
 0x6e0   : > { %v3066_v38 = vadd.f32 %v6177_v37, %v5863_v6  ;;  %v3067_v63 = vadd.f32 %v5859_v29, %v6177_v37 }
 0x763   : > { %v6139_v5 = vpop.f32.mrf.mxu1 }
 0x764   : > { %2838 = vrot.lane.b32.xlu1 %v6139_v5, %s7141_s19  ;;  %v2700_v57 = vrot.slane %v6139_v5, 4 }
 0x765   : > { %v6143_v0 = vpop.f32.mrf.mxu1 }
 0x766   : > { %2836 = vrot.lane.b32.xlu0 %v6143_v0, %s7141_s19  ;;  %v2692_v18 = vrot.slane %v6143_v0, 4 }
 0x768   : > { %v2708_v13 = vsel %vm2114_vm5, %v2692_v18, %v2700_v57  ;;  %v2716_v25 = vsel %vm2114_vm5, %v2700_v57, %v2692_v18  ;;  %v3068_v57 = vadd.f32 %v6177_v37, %v5871_v26 }
 0x769   : > { %v2724_v47 = vsel %vm2131_vm6, %v2716_v25, 0.0 }
 0x76a   : > { %3018 = vrot.lane.b32.xlu0 %v4563_v1, %s7143_s29 }
 0x76c   : > { %v6152_v19 = vpop.f32.mrf.mxu1 }
 0x76d   : > { %2842 = vrot.lane.b32.xlu1 %v6152_v19, %s7141_s19  ;;  %v2701_v14 = vrot.slane %v6152_v19, 4 }
 0x76e   : > { %v6157_v9 = vpop.f32.mrf.mxu1 }
 0x76f   : > { %2840 = vrot.lane.b32.xlu0 %v6157_v9, %s7141_s19  ;;  %v2693_v34 = vrot.slane %v6157_v9, 4 }
 0x771   : > { %2758 = vrot.lane.b32.xlu1 %v2708_v13, %s7143_s29  ;;  %v2717_v59 = vsel %vm2114_vm5, %v2701_v14, %v2693_v34  ;;  %v2709_v10 = vsel %vm2114_vm5, %v2693_v34, %v2701_v14 }
 0x772   : > { %v2726_v4 = vsel %vm2131_vm6, %v2717_v59, 0.0 }
 0x774   : > { %v6168_v41 = vpop.f32.mrf.mxu1 }
 0x775   : > { %2756 = vrot.lane.b32.xlu1 %v2724_v47, %s7143_s29  ;;  %2846 = vrot.lane.b32.xlu0 %v6168_v41, %s7141_s19  ;;  %v2702_v43 = vrot.slane %v6168_v41, 4 }
 0x776   : > { %v6179_v61 = vpop.f32.mrf.mxu1 }
 0x777   : > { %v2694_v22 = vrot.slane %v6179_v61, 4 }
 0x779   : > { %2760 = vrot.lane.b32.xlu0 %v2726_v4, %s7143_s29  ;;  %2844 = vrot.lane.b32.xlu1 %v6179_v61, %s7141_s19  ;;  %v2718_v17 = vsel %vm2114_vm5, %v2702_v43, %v2694_v22  ;;  %v2710_v39 = vsel %vm2114_vm5, %v2694_v22, %v2702_v43 }
 0x77a   : > { %v2728_v55 = vsel %vm2131_vm6, %v2718_v17, 0.0  ;;  %v3069_v17 = vadd.f32 %v5867_v20, %v6177_v37 }
 0x77c   : > { %v6188_v8 = vpop.f32.mrf.mxu1 }
 0x77d   : > { %2850 = vrot.lane.b32.xlu0 %v6188_v8, %s7141_s19  ;;  %3094 = vrot.lane.b32.xlu1 %v3062_v15, %s7141_s19  ;;  %v2703_v24 = vrot.slane %v6188_v8, 4 }
 0x77e   : > { %v6197_v2 = vpop.f32.mrf.mxu1 }
 0x77f   : > { %v2695_v36 = vrot.slane %v6197_v2, 4 }
 0x781   : > { %3096 = vrot.lane.b32.xlu0 %v3063_v12, %s7141_s19  ;;  %2848 = vrot.lane.b32.xlu1 %v6197_v2, %s7141_s19  ;;  %v2719_v40 = vsel %vm2114_vm5, %v2703_v24, %v2695_v36  ;;  %v2711_v6 = vsel %vm2114_vm5, %v2695_v36, %v2703_v24 }
 0x782   : > { %v2730_v58 = vsel %vm2131_vm6, %v2719_v40, 0.0 }
 0x784   : > { %v6204_v50 = vpop.f32.mrf.mxu1 }
 0x785   : > { %2764 = vrot.lane.b32.xlu0 %v2728_v55, %s7143_s29  ;;  %2762 = vrot.lane.b32.xlu1 %v2709_v10, %s7143_s29  ;;  %v2704_v29 = vrot.slane %v6204_v50, 4 }
 0x786   : > { %v6212_v53 = vpop.f32.mrf.mxu1 }
 0x787   : > { %v2696_v3 = vrot.slane %v6212_v53, 4 }
 0x789   : > { %2854 = vrot.lane.b32.xlu0 %v6204_v50, %s7141_s19  ;;  %2852 = vrot.lane.b32.xlu1 %v6212_v53, %s7141_s19  ;;  %v2720_v18 = vsel %vm2114_vm5, %v2704_v29, %v2696_v3  ;;  %v2712_v4 = vsel %vm2114_vm5, %v2696_v3, %v2704_v29 }
 0x78a   : > { %v2732_v34 = vsel %vm2131_vm6, %v2720_v18, 0.0 }
 0x78c   : > { %v6220_v49 = vpop.f32.mrf.mxu1 }
 0x78d   : > { %2858 = vrot.lane.b32.xlu0 %v6220_v49, %s7141_s19  ;;  %3098 = vrot.lane.b32.xlu1 %v3064_v35, %s7141_s19 }
 0x78e   : > { %v6229_v27 = vpop.f32.mrf.mxu1 }
 0x78f   : > { %v2697_v35 = vrot.slane %v6229_v27, 4 }
 0x791   : > { %3100 = vrot.lane.b32.xlu0 %v3065_v48, %s7141_s19  ;;  %2856 = vrot.lane.b32.xlu1 %v6229_v27, %s7141_s19  ;;  %v2705_v48 = vrot.slane %v6220_v49, 4 }
 0x793   : > { %v2713_v29 = vsel %vm2114_vm5, %v2697_v35, %v2705_v48 }
 0x794   : > { %v6236_v56 = vpop.f32.mrf.mxu1 }
 0x795   : > { %2768 = vrot.lane.b32.xlu0 %v2730_v58, %s7143_s29  ;;  %2766 = vrot.lane.b32.xlu1 %v2710_v39, %s7143_s29 }
 0x796   : > { %v6244_v28 = vpop.f32.mrf.mxu1 }
 0x799   : > { %2862 = vrot.lane.b32.xlu0 %v6236_v56, %s7141_s19  ;;  %2860 = vrot.lane.b32.xlu1 %v6244_v28, %s7141_s19 }
 0x79c   : > { %v6252_v52 = vpop.f32.mrf.mxu1 }
 0x79d   : > { %2866 = vrot.lane.b32.xlu0 %v6252_v52, %s7141_s19  ;;  %3102 = vrot.lane.b32.xlu1 %v3066_v38, %s7141_s19 }
 0x79e   : > { %v6259_v60 = vpop.f32.mrf.mxu1 }
 0x7a1   : > { %3104 = vrot.lane.b32.xlu0 %v3067_v63, %s7141_s19  ;;  %2864 = vrot.lane.b32.xlu1 %v6259_v60, %s7141_s19  ;;  %v2721_v63 = vsel %vm2114_vm5, %v2705_v48, %v2697_v35 }
 0x7a2   : > { %v2734_v3 = vsel %vm2131_vm6, %v2721_v63, 0.0 }
 0x7a5   : > { %2770 = vrot.lane.b32.xlu1 %v2711_v6, %s7143_s29  ;;  %v3070_v6 = vadd.f32 %v6177_v37, %v5879_v62 }
 0x7d6   : > { %v2839_v33 = vpop.permute.xlu1 %2838 }
 0x7d7   : > { %v2892_v16 = vrot.slane %v2839_v33, 6 }
 0x7d8   : > { %v2837_v23 = vpop.permute.xlu0 %2836 }
 0x7d9   : > { %v2884_v54 = vrot.slane %v2837_v23, 6 }
 0x7db   : > { %v2900_v21 = vsel %vm810_vm1, %v2884_v54, %v2892_v16  ;;  %v2908_v11 = vsel %vm810_vm1, %v2892_v16, %v2884_v54 }
 0x7dc   : > { %2950 = vrot.lane.b32.xlu1 %v2900_v21, %s7143_s29  ;;  %v2916_v51 = vsel %vm828_vm2, %v2908_v11, 0.0  ;;  %v6276_v1 = vpop.permute.xlu0 %3018 }
 0x7dd   : > { %2948 = vrot.lane.b32.xlu0 %v2916_v51, %s7143_s29 }
 0x7df   : > { %v2843_v13 = vpop.permute.xlu1 %2842 }
 0x7e0   : > { %3106 = vrot.lane.b32.xlu1 %v3068_v57, %s7141_s19  ;;  %v2893_v14 = vrot.slane %v2843_v13, 6  ;;  %v3071_v57 = vadd.f32 %v5875_v45, %v6177_v37 }
 0x7e1   : > { %2772 = vrot.lane.b32.xlu0 %v2732_v34, %s7143_s29  ;;  %v2841_v25 = vpop.permute.xlu0 %2840 }
 0x7e2   : > { %v2885_v47 = vrot.slane %v2841_v25, 6  ;;  %v2698_v25 = vrot.slane %v6244_v28, 4 }
 0x7e3   : > { %v6287_v59 = vpop.permute.xlu1 %2758 }
 0x7e4   : > { %2774 = vrot.lane.b32.xlu1 %v2712_v4, %s7143_s29  ;;  %v2909_v26 = vsel %vm810_vm1, %v2893_v14, %v2885_v47  ;;  %v2901_v12 = vsel %vm810_vm1, %v2885_v47, %v2893_v14  ;;  %v2706_v4 = vrot.slane %v6236_v56, 4 }
 0x7e5   : > { %v2918_v15 = vsel %vm828_vm2, %v2909_v26, 0.0 }
 0x7e6   : > { %2952 = vrot.lane.b32.xlu0 %v2918_v15, %s7143_s29 }
 0x7e7   : > { %v6297_v22 = vpop.permute.xlu1 %2756  ;;  %v2847_v43 = vpop.permute.xlu0 %2846 }
 0x7e8   : > { %2954 = vrot.lane.b32.xlu1 %v2901_v12, %s7143_s29  ;;  %v2894_v36 = vrot.slane %v2847_v43, 6 }
 0x7ea   : > { %3108 = vrot.lane.b32.xlu0 %v3069_v17, %s7141_s19  ;;  %v2722_v17 = vsel %vm2114_vm5, %v2706_v4, %v2698_v25 }
 0x7eb   : > { %v2845_v55 = vpop.permute.xlu1 %2844  ;;  %v6305_v10 = vpop.permute.xlu0 %2760 }
 0x7ec   : > { %v2886_v24 = vrot.slane %v2845_v55, 6  ;;  %v3072_v55 = vadd.f32 %v6177_v37, %v5887_v42 }
 0x7ee   : > { %v2902_v40 = vsel %vm810_vm1, %v2886_v24, %v2894_v36  ;;  %v2910_v58 = vsel %vm810_vm1, %v2894_v36, %v2886_v24  ;;  %v2736_v24 = vsel %vm2131_vm6, %v2722_v17, 0.0  ;;  %v3181_v17 = vld [vmem:[%s7129_s11 + $0x38] sm:$0xff] }
 0x7ef   : > { %v6313_v39 = vpop.permute.xlu1 %3094  ;;  %2958 = vrot.lane.b32.xlu1 %v2902_v40, %s7143_s29  ;;  %v2851_v20 = vpop.permute.xlu0 %2850  ;;  %v2920_v38 = vsel %vm828_vm2, %v2910_v58, 0.0  ;;  %v2714_v58 = vsel %vm2114_vm5, %v2698_v25, %v2706_v4  ;;  %3286 = vmatprep.subr.mxu0 %v3181_v17 }
 0x7f0   : > { %2956 = vrot.lane.b32.xlu0 %v2920_v38, %s7143_s29  ;;  %v2895_v16 = vrot.slane %v2851_v20, 6 }
 0x7f3   : > { %v2849_v33 = vpop.permute.xlu1 %2848  ;;  %3110 = vrot.lane.b32.xlu1 %v3070_v6, %s7141_s19  ;;  %v6324_v23 = vpop.permute.xlu0 %3096 }
 0x7f4   : > { %v2887_v54 = vrot.slane %v2849_v33, 6  ;;  %2776 = vrot.lane.b32.xlu0 %v2734_v3, %s7143_s29  ;;  %v3073_v33 = vadd.f32 %v5883_v30, %v6177_v37 }
 0x7f6   : > { %v2911_v21 = vsel %vm810_vm1, %v2895_v16, %v2887_v54  ;;  %v2903_v18 = vsel %vm810_vm1, %v2887_v54, %v2895_v16  ;;  %v2699_v54 = vrot.slane %v6259_v60, 4 }
 0x7f7   : > { %v6333_v11 = vpop.permute.xlu1 %2762  ;;  %2778 = vrot.lane.b32.xlu1 %v2713_v29, %s7143_s29  ;;  %v6336_v62 = vpop.permute.xlu0 %2764  ;;  %v2922_v51 = vsel %vm828_vm2, %v2911_v21, 0.0 }
 0x7f8   : > { %2960 = vrot.lane.b32.xlu0 %v2922_v51, %s7143_s29  ;;  %v2707_v51 = vrot.slane %v6252_v52, 4 }
 0x7fb   : > { %v2853_v13 = vpop.permute.xlu1 %2852  ;;  %2962 = vrot.lane.b32.xlu1 %v2903_v18, %s7143_s29  ;;  %v2855_v34 = vpop.permute.xlu0 %2854 }
 0x7fc   : > { %v2888_v14 = vrot.slane %v2853_v13, 6  ;;  %v2896_v47 = vrot.slane %v2855_v34, 6  ;;  %3112 = vrot.lane.b32.xlu0 %v3071_v57, %s7141_s19  ;;  %v2723_v34 = vsel %vm2114_vm5, %v2707_v51, %v2699_v54 }
 0x7fd   : > { %v2738_v4 = vsel %vm2131_vm6, %v2723_v34, 0.0 }
 0x7fe   : > { %v2904_v26 = vsel %vm810_vm1, %v2888_v14, %v2896_v47  ;;  %v2912_v15 = vsel %vm810_vm1, %v2896_v47, %v2888_v14  ;;  %v3074_v14 = vadd.f32 %v6177_v37, %v5898_v44 }
 0x7ff   : > { %v6353_v43 = vpop.permute.xlu1 %3098  ;;  %2966 = vrot.lane.b32.xlu1 %v2904_v26, %s7143_s29  ;;  %v2859_v45 = vpop.permute.xlu0 %2858  ;;  %v2924_v12 = vsel %vm828_vm2, %v2912_v15, 0.0 }
 0x800   : > { %2964 = vrot.lane.b32.xlu0 %v2924_v12, %s7143_s29  ;;  %v2897_v48 = vrot.slane %v2859_v45, 6  ;;  %v2715_v45 = vsel %vm2114_vm5, %v2699_v54, %v2707_v51  ;;  %v4998_v54 = vmov 0.0  }
 0x801   : > { %3326 = vmatprep.mubr.f32.mxu0 %v4998_v54  ;;  %3753 = vmatprep.mubr.f32.mxu1 %v4998_v54 }
 0x803   : > { %v2857_v35 = vpop.permute.xlu1 %2856  ;;  %3114 = vrot.lane.b32.xlu1 %v3072_v55, %s7141_s19  ;;  %v6364_v36 = vpop.permute.xlu0 %3100  ;;  %v3180_v55 = vld [vmem:[%s7129_s11 + $0x30] sm:$0xff] }
 0x804   : > { %v2889_v40 = vrot.slane %v2857_v35, 6  ;;  %2780 = vrot.lane.b32.xlu0 %v2736_v24, %s7143_s29  ;;  %v3179_v35 = vld [vmem:[%s7129_s11 + $0x28] sm:$0xff]  ;;  %v3178_v24 = vld [vmem:[%s7129_s11 + $0x20] sm:$0xff]  ;;  %3287 = vmatpush1.msra.mxu0 %v3180_v55 }
 0x805   : > { %3288 = vmatprep.subr.mxu0 %v3179_v35 }
 0x806   : > { %v2913_v20 = vsel %vm810_vm1, %v2897_v48, %v2889_v40  ;;  %v2905_v6 = vsel %vm810_vm1, %v2889_v40, %v2897_v48  ;;  %v3075_v40 = vadd.f32 %v5893_v31, %v6177_v37  ;;  %3289 = vmatpush1.msra.mxu0 %v3178_v24  ;;  %v3077_v31 = vadd.f32 %v5908_v7, %v6177_v37 }
 0x807   : > { %v6373_v38 = vpop.permute.xlu1 %2766  ;;  %2782 = vrot.lane.b32.xlu1 %v2714_v58, %s7143_s29  ;;  %v6376_v42 = vpop.permute.xlu0 %2768  ;;  %v2926_v63 = vsel %vm828_vm2, %v2913_v20, 0.0  ;;  %v3177_v58 = vld [vmem:[%s7129_s11 + $0x18] sm:$0xff]  ;;  %v3176_v20 = vld [vmem:[%s7129_s11 + $0x10] sm:$0xff]  ;;  %v2805_v7 = vadd.f32 %v6139_v5, %v6287_v59 }
 0x808   : > { %2968 = vrot.lane.b32.xlu0 %v2926_v63, %s7143_s29  ;;  %v3175_v63 = vld [vmem:[%s7129_s11 + $0x8] sm:$0xff]  ;;  %3290 = vmatprep.subr.mxu0 %v3177_v58  ;;  %v2809_v35 = vadd.f32 %v6168_v41, %v6373_v38 }
 0x809   : > { %3291 = vmatpush1.msra.mxu0 %v3176_v20 }
 0x80a   : > { %3292 = vmatprep.subr.mxu0 %v3175_v63 }
 0x80b   : > { %v2861_v3 = vpop.permute.xlu1 %2860  ;;  %2970 = vrot.lane.b32.xlu1 %v2905_v6, %s7143_s29  ;;  %v2863_v16 = vpop.permute.xlu0 %2862  ;;  %v3174_v6 = vld [vmem:[%s7129_s11] sm:$0xff] }
 0x80c   : > { %v2890_v29 = vrot.slane %v2861_v3, 6  ;;  %v2898_v21 = vrot.slane %v2863_v16, 6  ;;  %3116 = vrot.lane.b32.xlu0 %v3073_v33, %s7141_s19  ;;  %v3076_v33 = vadd.f32 %v6177_v37, %v5912_v46  ;;  %3293 = vmatpush1.msra.mxu0 %v3174_v6  ;;  %v2804_v46 = vadd.f32 %v6297_v22, %v6143_v0 }
 0x80d   : > { %v2806_v0 = vadd.f32 %v6305_v10, %v6157_v9 }
 0x80e   : > { %v2906_v18 = vsel %vm810_vm1, %v2890_v29, %v2898_v21  ;;  %v2914_v57 = vsel %vm810_vm1, %v2898_v21, %v2890_v29 }
 0x80f   : > { %v6393_v13 = vpop.permute.xlu1 %3102  ;;  %2974 = vrot.lane.b32.xlu1 %v2906_v18, %s7143_s29  ;;  %v2928_v30 = vsel %vm828_vm2, %v2914_v57, 0.0  ;;  %v2867_v25 = vpop.permute.xlu0 %2866 }
 0x810   : > { %2972 = vrot.lane.b32.xlu0 %v2928_v30, %s7143_s29  ;;  %v2899_v26 = vrot.slane %v2867_v25, 6 }
 0x813   : > { %v2865_v47 = vpop.permute.xlu1 %2864  ;;  %3118 = vrot.lane.b32.xlu1 %v3074_v14, %s7141_s19  ;;  %v3105_v16 = vpop.permute.xlu0 %3104 }
 0x814   : > { %v2891_v15 = vrot.slane %v2865_v47, 6  ;;  %2784 = vrot.lane.b32.xlu0 %v2738_v4, %s7143_s29 }
 0x816   : > { %v2915_v12 = vsel %vm810_vm1, %v2899_v26, %v2891_v15  ;;  %v2907_v48 = vsel %vm810_vm1, %v2891_v15, %v2899_v26  ;;  %v2807_v15 = vadd.f32 %v6152_v19, %v6333_v11  ;;  %v2808_v19 = vadd.f32 %v6336_v62, %v6179_v61 }
 0x817   : > { %2786 = vrot.lane.b32.xlu1 %v2715_v45, %s7143_s29  ;;  %v2930_v44 = vsel %vm828_vm2, %v2915_v12, 0.0  ;;  %v2771_v3 = vpop.permute.xlu1 %2770 }
 0x818   : > { %2976 = vrot.lane.b32.xlu0 %v2930_v44, %s7143_s29 }
 0x81b   : > { %2978 = vrot.lane.b32.xlu1 %v2907_v48, %s7143_s29 }
 0x81c   : > { %3120 = vrot.lane.b32.xlu0 %v3075_v40, %s7162_s3 }
 0x81f   : > { %3124 = vrot.lane.b32.xlu1 %v3077_v31, %s7162_s3 }
 0x820   : > { %3122 = vrot.lane.b32.xlu0 %v3076_v33, %s7162_s3 }
 0x84e   : > { %v2951_v37 = vpop.permute.xlu1 %2950 }
 0x84f   : > { %v2997_v29 = vadd.f32 %v2951_v37, %v2805_v7  ;;  %v2949_v21 = vpop.permute.xlu0 %2948 }
 0x850   : > { %v2996_v51 = vadd.f32 %v2949_v21, %v2804_v46 }
 0x851   : > { %v3022_v18 = vadd.f32 %v6276_v1, %v2997_v29 }
 0x852   : > { %v3021_v57 = vadd.f32 %v6276_v1, %v2996_v51  ;;  %v3107_v30 = vpop.permute.xlu1 %3106  ;;  %v2811_v51 = vadd.f32 %v6188_v8, %v2771_v3 }
 0x853   : > { %v3038_v34 = vmax.f32 %v3022_v18, 0.0  ;;  %v2773_v25 = vpop.permute.xlu0 %2772 }
 0x854   : > { %v3037_v14 = vmax.f32 %v3021_v57, 0.0 }
 0x855   : > { %v3143_v47 = vadd.f32 %v6324_v23, %v3038_v34 }
 0x856   : > { %v3142_v4 = vadd.f32 %v6313_v39, %v3037_v14  ;;  %v2775_v5 = vpop.permute.xlu1 %2774 }
 0x857   : > { %v3159_v59 = vmax.f32 %v3143_v47, 0.0 }
 0x858   : > { %v3158_v22 = vmax.f32 %v3142_v4, 0.0  ;;  %v2953_v26 = vpop.permute.xlu0 %2952 }
 0x859   : > { %v2998_v45 = vadd.f32 %v2953_v26, %v2806_v0  ;;  %3200 = vrot.lane.b32.xlu1 %v3159_v59, %s7143_s29 }
 0x85a   : > { %v2955_v12 = vpop.permute.xlu1 %2954  ;;  %3198 = vrot.lane.b32.xlu0 %v3158_v22, %s7143_s29 }
 0x85b   : > { %v3023_v23 = vadd.f32 %v6276_v1, %v2998_v45  ;;  %v2999_v44 = vadd.f32 %v2955_v12, %v2807_v15 }
 0x85c   : > { %v3109_v55 = vpop.permute.xlu0 %3108 }
 0x85d   : > { %v3039_v39 = vmax.f32 %v3023_v23, 0.0  ;;  %v3024_v17 = vadd.f32 %v6276_v1, %v2999_v44 }
 0x85f   : > { %v3144_v9 = vadd.f32 %v6353_v43, %v3039_v39  ;;  %v3040_v10 = vmax.f32 %v3024_v17, 0.0 }
 0x861   : > { %v3160_v11 = vmax.f32 %v3144_v9, 0.0  ;;  %v3145_v24 = vadd.f32 %v6364_v36, %v3040_v10  ;;  %v2959_v48 = vpop.permute.xlu1 %2958  ;;  %v2810_v36 = vadd.f32 %v6376_v42, %v6197_v2  ;;  %v2813_v2 = vadd.f32 %v6204_v50, %v2775_v5 }
 0x862   : > { %v3001_v40 = vadd.f32 %v2959_v48, %v2809_v35  ;;  %v2957_v58 = vpop.permute.xlu0 %2956 }
 0x863   : > { %v3161_v20 = vmax.f32 %v3145_v24, 0.0  ;;  %v3000_v63 = vadd.f32 %v2957_v58, %v2808_v19  ;;  %3202 = vrot.lane.b32.xlu0 %v3160_v11, %s7143_s29 }
 0x864   : > { %v3026_v31 = vadd.f32 %v6276_v1, %v3001_v40 }
 0x865   : > { %v3025_v43 = vadd.f32 %v6276_v1, %v3000_v63  ;;  %v3111_v6 = vpop.permute.xlu1 %3110  ;;  %3204 = vrot.lane.b32.xlu1 %v3161_v20, %s7143_s29 }
 0x866   : > { %v3042_v41 = vmax.f32 %v3026_v31, 0.0  ;;  %v2777_v38 = vpop.permute.xlu0 %2776 }
 0x867   : > { %v3041_v61 = vmax.f32 %v3025_v43, 0.0 }
 0x868   : > { %v3147_v62 = vadd.f32 %v3105_v16, %v3042_v41 }
 0x869   : > { %v3146_v33 = vadd.f32 %v6393_v13, %v3041_v61  ;;  %v2779_v7 = vpop.permute.xlu1 %2778  ;;  %v2812_v13 = vadd.f32 %v2773_v25, %v6212_v53 }
 0x86a   : > { %v3163_v46 = vmax.f32 %v3147_v62, 0.0  ;;  %v2961_v37 = vpop.permute.xlu0 %2960  ;;  %v2815_v35 = vadd.f32 %v6220_v49, %v2779_v7 }
 0x86b   : > { %v3162_v29 = vmax.f32 %v3146_v33, 0.0  ;;  %v3002_v21 = vadd.f32 %v2961_v37, %v2810_v36 }
 0x86c   : > { %3208 = vrot.lane.b32.xlu1 %v3163_v46, %s7143_s29 }
 0x86d   : > { %v3027_v18 = vadd.f32 %v6276_v1, %v3002_v21  ;;  %v2963_v57 = vpop.permute.xlu1 %2962  ;;  %3206 = vrot.lane.b32.xlu0 %v3162_v29, %s7143_s29 }
 0x86e   : > { %v3003_v16 = vadd.f32 %v2963_v57, %v2811_v51  ;;  %v3113_v34 = vpop.permute.xlu0 %3112 }
 0x86f   : > { %v3043_v14 = vmax.f32 %v3027_v18, 0.0 }
 0x870   : > { %v3028_v42 = vadd.f32 %v6276_v1, %v3003_v16 }
 0x871   : > { %v3148_v47 = vadd.f32 %v3107_v30, %v3043_v14  ;;  %v2967_v4 = vpop.permute.xlu1 %2966  ;;  %v2814_v30 = vadd.f32 %v2777_v38, %v6229_v27 }
 0x872   : > { %v3044_v0 = vmax.f32 %v3028_v42, 0.0  ;;  %v3005_v8 = vadd.f32 %v2967_v4, %v2813_v2  ;;  %v2965_v3 = vpop.permute.xlu0 %2964 }
 0x873   : > { %v3164_v59 = vmax.f32 %v3148_v47, 0.0  ;;  %v3004_v22 = vadd.f32 %v2965_v3, %v2812_v13 }
 0x874   : > { %v3149_v26 = vadd.f32 %v3109_v55, %v3044_v0  ;;  %v3030_v15 = vadd.f32 %v6276_v1, %v3005_v8 }
 0x875   : > { %v3029_v45 = vadd.f32 %v6276_v1, %v3004_v22  ;;  %v3115_v12 = vpop.permute.xlu1 %3114  ;;  %3210 = vrot.lane.b32.xlu0 %v3164_v59, %s7143_s29 }
 0x876   : > { %v3165_v50 = vmax.f32 %v3149_v26, 0.0  ;;  %v3046_v5 = vmax.f32 %v3030_v15, 0.0  ;;  %v2781_v23 = vpop.permute.xlu0 %2780 }
 0x877   : > { %v3045_v44 = vmax.f32 %v3029_v45, 0.0  ;;  %v2816_v58 = vadd.f32 %v2781_v23, %v6244_v28 }
 0x878   : > { %v3151_v53 = vadd.f32 %v3113_v34, %v3046_v5  ;;  %3212 = vrot.lane.b32.xlu1 %v3165_v50, %s7143_s29 }
 0x879   : > { %v3150_v25 = vadd.f32 %v3111_v6, %v3045_v44  ;;  %v2783_v39 = vpop.permute.xlu1 %2782 }
 0x87a   : > { %v3167_v17 = vmax.f32 %v3151_v53, 0.0  ;;  %v2969_v55 = vpop.permute.xlu0 %2968  ;;  %v2817_v49 = vadd.f32 %v6236_v56, %v2783_v39 }
 0x87b   : > { %v3166_v9 = vmax.f32 %v3150_v25, 0.0  ;;  %v3006_v10 = vadd.f32 %v2969_v55, %v2814_v30 }
 0x87c   : > { %3216 = vrot.lane.b32.xlu1 %v3167_v17, %s7143_s29 }
 0x87d   : > { %v3031_v19 = vadd.f32 %v6276_v1, %v3006_v10  ;;  %v2971_v11 = vpop.permute.xlu1 %2970  ;;  %3214 = vrot.lane.b32.xlu0 %v3166_v9, %s7143_s29 }
 0x87e   : > { %v3007_v24 = vadd.f32 %v2971_v11, %v2815_v35  ;;  %v3117_v48 = vpop.permute.xlu0 %3116  ;;  %v3639_v35 = vld [vmem:[%s7132_s14 + $0x78] sm:$0xff]  ;;  %v3637_v11 = vld [vmem:[%s7132_s14 + $0x68] sm:$0xff] }
 0x87f   : > { %v3047_v40 = vmax.f32 %v3031_v19, 0.0  ;;  %v3638_v19 = vld [vmem:[%s7132_s14 + $0x70] sm:$0xff]  ;;  %3705 = vmatprep.subr.mxu1 %v3639_v35 }
 0x880   : > { %v3032_v27 = vadd.f32 %v6276_v1, %v3007_v24  ;;  %v3636_v24 = vld [vmem:[%s7132_s14 + $0x60] sm:$0xff]  ;;  %3706 = vmatpush1.msra.mxu1 %v3638_v19 }
 0x881   : > { %v3152_v20 = vadd.f32 %v3115_v12, %v3047_v40  ;;  %v2975_v63 = vpop.permute.xlu1 %2974  ;;  %3707 = vmatprep.subr.mxu1 %v3637_v11  ;;  %v3634_v40 = vld [vmem:[%s7132_s14 + $0x50] sm:$0xff] }
 0x882   : > { %v3048_v31 = vmax.f32 %v3032_v27, 0.0  ;;  %v2973_v43 = vpop.permute.xlu0 %2972  ;;  %v3009_v61 = vadd.f32 %v2975_v63, %v2817_v49  ;;  %3708 = vmatpush1.msra.mxu1 %v3636_v24  ;;  %v3633_v27 = vld [vmem:[%s7132_s14 + $0x48] sm:$0xff]  ;;  %v3630_v63 = vld [vmem:[%s7132_s14 + $0x30] sm:$0xff] }
 0x883   : > { %v3168_v6 = vmax.f32 %v3152_v20, 0.0  ;;  %v3008_v41 = vadd.f32 %v2973_v43, %v2816_v58  ;;  %v3632_v58 = vld [vmem:[%s7132_s14 + $0x40] sm:$0xff]  ;;  %v3631_v20 = vld [vmem:[%s7132_s14 + $0x38] sm:$0xff] }
 0x884   : > { %v3153_v38 = vadd.f32 %v3117_v48, %v3048_v31  ;;  %v3034_v28 = vadd.f32 %v6276_v1, %v3009_v61  ;;  %v3635_v48 = vld [vmem:[%s7132_s14 + $0x58] sm:$0xff]  ;;  %v3629_v31 = vld [vmem:[%s7132_s14 + $0x28] sm:$0xff]  ;;  %v3628_v43 = vld [vmem:[%s7132_s14 + $0x20] sm:$0xff] }
 0x885   : > { %v3033_v62 = vadd.f32 %v6276_v1, %v3008_v41  ;;  %v3119_v36 = vpop.permute.xlu1 %3118  ;;  %3218 = vrot.lane.b32.xlu0 %v3168_v6, %s7143_s29  ;;  %3709 = vmatprep.subr.mxu1 %v3635_v48  ;;  %v3627_v6 = vld [vmem:[%s7132_s14 + $0x18] sm:$0xff]  ;;  %v3626_v41 = vld [vmem:[%s7132_s14 + $0x10] sm:$0xff] }
 0x886   : > { %v3169_v33 = vmax.f32 %v3153_v38, 0.0  ;;  %v2785_v7 = vpop.permute.xlu0 %2784  ;;  %v3050_v14 = vmax.f32 %v3034_v28, 0.0  ;;  %3710 = vmatpush1.msra.mxu1 %v3634_v40  ;;  %v3625_v38 = vld [vmem:[%s7132_s14 + $0x8] sm:$0xff] }
 0x887   : > { %v3049_v46 = vmax.f32 %v3033_v62, 0.0  ;;  %v2818_v29 = vadd.f32 %v2785_v7, %v6259_v60  ;;  %3711 = vmatprep.subr.mxu1 %v3633_v27  ;;  %v3624_v62 = vld [vmem:[%s7132_s14] sm:$0xff] }
 0x888   : > { %3220 = vrot.lane.b32.xlu1 %v3169_v33, %s7143_s29  ;;  %3712 = vmatpush1.msra.mxu1 %v3632_v58 }
 0x889   : > { %v3154_v37 = vadd.f32 %v3119_v36, %v3049_v46  ;;  %v2787_v56 = vpop.permute.xlu1 %2786  ;;  %3713 = vmatprep.subr.mxu1 %v3631_v20 }
 0x88a   : > { %v2977_v21 = vpop.permute.xlu0 %2976  ;;  %v2819_v57 = vadd.f32 %v6252_v52, %v2787_v56  ;;  %3714 = vmatpush1.msra.mxu1 %v3630_v63 }
 0x88b   : > { %v3170_v51 = vmax.f32 %v3154_v37, 0.0  ;;  %v3010_v18 = vadd.f32 %v2977_v21, %v2818_v29  ;;  %3715 = vmatprep.subr.mxu1 %v3629_v31 }
 0x88c   : > { %3716 = vmatpush1.msra.mxu1 %v3628_v43 }
 0x88d   : > { %v3035_v16 = vadd.f32 %v6276_v1, %v3010_v18  ;;  %v2979_v34 = vpop.permute.xlu1 %2978  ;;  %3222 = vrot.lane.b32.xlu0 %v3170_v51, %s7143_s29  ;;  %3717 = vmatprep.subr.mxu1 %v3627_v6 }
 0x88e   : > { %v3011_v2 = vadd.f32 %v2979_v34, %v2819_v57  ;;  %v3121_v42 = vpop.permute.xlu0 %3120  ;;  %3718 = vmatpush1.msra.mxu1 %v3626_v41 }
 0x88f   : > { %v3155_v13 = vadd.f32 %v3121_v42, %v3050_v14  ;;  %v3051_v0 = vmax.f32 %v3035_v16, 0.0  ;;  %3719 = vmatprep.subr.mxu1 %v3625_v38 }
 0x890   : > { %v3036_v47 = vadd.f32 %v6276_v1, %v3011_v2  ;;  %3720 = vmatpush1.msra.mxu1 %v3624_v62 }
 0x891   : > { %v3171_v4 = vmax.f32 %v3155_v13, 0.0  ;;  %v3125_v3 = vpop.permute.xlu1 %3124 }
 0x892   : > { %v3052_v60 = vmax.f32 %v3036_v47, 0.0  ;;  %v3123_v8 = vpop.permute.xlu0 %3122 }
 0x893   : > { %v3156_v59 = vadd.f32 %v3123_v8, %v3051_v0  ;;  %3224 = vrot.lane.b32.xlu1 %v3171_v4, %s7143_s29 }
 0x894   : > { %v3157_v52 = vadd.f32 %v3125_v3, %v3052_v60 }
 0x895   : > { %v3172_v22 = vmax.f32 %v3156_v59, 0.0 }
 0x896   : > { %v3173_v26 = vmax.f32 %v3157_v52, 0.0 }
 0x897   : > { %3226 = vrot.lane.b32.xlu0 %v3172_v22, %s7143_s29 }
 0x898   : > { %3228 = vrot.lane.b32.xlu1 %v3173_v26, %s7143_s29  ;;  %s4491_s29 = sshll.u32 %s569_s4, 7 }
 0x899   : > { %s7033_s24 = scalar_lea.vmem [#allocation2], %s4491_s29 }
 0x89a   : > { %s4425_s3 = sshll.u32 %s7033_s24, 4  ;;  %s7070_s3 = int_to_ptr.vmem [resolvable:$true] %s4425_s3 }
 0x89b   : > { %s4931_s29 = scalar_lea.vmem %s7070_s3, 2048  ;;  %p4938_p0 = scmp.lt.s32.totalorder %s7070_s3, %s4936_s20 }
 0x89c   : > { %p4932_p11 = scmp.ne.s32.totalorder %s7070_s3, %s4931_s29  ;;  %p4939_p1 = scmp.lt.s32.totalorder %s4937_s25, %s4931_s29 }
 0x89e   : > { %p4933_p12 = pnand %p4932_p11, %p5135_p5  ;;  %p4940_p2 = por %p4939_p1, %p4938_p0 }
 0x8a0   : > { %p4934_p13 = pneg %p4933_p12 }
 0x8a2   : > { %p4941_p3 = pnand %p4940_p2, %p4934_p13 }
 0x8cb   : > { %v3201_v1 = vpop.permute.xlu1 %3200 }
 0x8cc   : > { %v3199_v15 = vpop.permute.xlu0 %3198 }
 0x8cd   : > { %4565 = vmatmul.mubr.msk.f32.vlgmr.msra.gmra.mxu0 %vm2514_vm7, %v3199_v15  ;;  %v4599_v15 = vld [vmem:[%s7131_s13] ss:$0 sm:$0xff] }
 0x8ce   : > { %3332 = vmatprep.mubr.f32.mxu0 %v4998_v54 }
 0x8d1   : > { %4566 = vmatmul.mubr.msk.f32.gmra.mxu0 %vm2514_vm7, %v3201_v1 }
 0x8d2   : > { %3338 = vmatprep.mubr.f32.mxu0 %v4998_v54 }
 0x8d5   : > { %v3203_v45 = vpop.permute.xlu0 %3202 }
 0x8d6   : > { %4567 = vmatmul.mubr.msk.f32.gmra.mxu0 %vm2514_vm7, %v3203_v45 }
 0x8d7   : > { %3344 = vmatprep.mubr.f32.mxu0 %v4998_v54  ;;  %v3205_v12 = vpop.permute.xlu1 %3204 }
 0x8da   : > { %4568 = vmatmul.mubr.msk.f32.gmra.mxu0 %vm2514_vm7, %v3205_v12 }
 0x8db   : > { %3350 = vmatprep.mubr.f32.mxu0 %v4998_v54 }
 0x8de   : > { %v3209_v5 = vpop.permute.xlu1 %3208 }
 0x8df   : > { %v3207_v50 = vpop.permute.xlu0 %3206 }
 0x8e0   : > { %4569 = vmatmul.mubr.msk.f32.gmra.mxu0 %vm2514_vm7, %v3207_v50 }
 0x8e1   : > { %3356 = vmatprep.mubr.f32.mxu0 %v4998_v54 }
 0x8e4   : > { %4570 = vmatmul.mubr.msk.f32.gmra.mxu0 %vm2514_vm7, %v3209_v5 }
 0x8e5   : > { %3362 = vmatprep.mubr.f32.mxu0 %v4998_v54 }
 0x8e7   : > { %v3211_v23 = vpop.permute.xlu0 %3210 }
 0x8e8   : > { %4571 = vmatmul.mubr.msk.f32.gmra.mxu0 %vm2514_vm7, %v3211_v23 }
 0x8e9   : > { %3368 = vmatprep.mubr.f32.mxu0 %v4998_v54 }
 0x8ea   : > { %v3213_v44 = vpop.permute.xlu1 %3212 }
 0x8ec   : > { %4572 = vmatmul.mubr.msk.f32.gmra.mxu0 %vm2514_vm7, %v3213_v44 }
 0x8ed   : > { %3374 = vmatprep.mubr.f32.mxu0 %v4998_v54 }
 0x8ee   : > { %v3217_v30 = vpop.permute.xlu1 %3216 }
 0x8ef   : > { %v3215_v53 = vpop.permute.xlu0 %3214 }
 0x8f0   : > { %4573 = vmatmul.mubr.msk.f32.gmra.mxu0 %vm2514_vm7, %v3215_v53 }
 0x8f1   : > { %3380 = vmatprep.mubr.f32.mxu0 %v4998_v54 }
 0x8f4   : > { %4574 = vmatmul.mubr.msk.f32.gmra.mxu0 %vm2514_vm7, %v3217_v30  ;;  %v6671_v30 = vld [vmem:[%s7130_s12] ss:$0 sm:$0xff] }
 0x8f5   : > { %3386 = vmatprep.mubr.f32.mxu0 %v4998_v54 }
 0x8f7   : > { %v3219_v25 = vpop.permute.xlu0 %3218 }
 0x8f8   : > { %4575 = vmatmul.mubr.msk.f32.gmra.mxu0 %vm2514_vm7, %v3219_v25 }
 0x8f9   : > { %3392 = vmatprep.mubr.f32.mxu0 %v4998_v54 }
 0x8fa   : > { %v3221_v39 = vpop.permute.xlu1 %3220 }
 0x8fc   : > { %4576 = vmatmul.mubr.msk.f32.gmra.mxu0 %vm2514_vm7, %v3221_v39 }
 0x8fd   : > { %3398 = vmatprep.mubr.f32.mxu0 %v4998_v54 }
 0x8ff   : > { %v3223_v17 = vpop.permute.xlu0 %3222 }
 0x900   : > { %4577 = vmatmul.mubr.msk.f32.gmra.mxu0 %vm2514_vm7, %v3223_v17 }
 0x901   : > { %3404 = vmatprep.mubr.f32.mxu0 %v4998_v54 }
 0x905   : > { %v3225_v55 = vpop.permute.xlu1 %3224 }
 0x906   : > { %4578 = vmatmul.mubr.msk.f32.gmra.mxu0 %vm2514_vm7, %v3225_v55 }
 0x907   : > { %3410 = vmatprep.mubr.f32.mxu0 %v4998_v54 }
 0x909   : > { %v3227_v9 = vpop.permute.xlu0 %3226 }
 0x90a   : > { %4579 = vmatmul.mubr.msk.f32.gmra.mxu0 %vm2514_vm7, %v3227_v9  ;;  %v3229_v10 = vpop.permute.xlu1 %3228 }
 0x90b   : > { %3416 = vmatprep.mubr.f32.mxu0 %v4998_v54 }
 0x90e   : > { %4580 = vmatmul.mubr.msk.f32.gmra.mxu0 %vm2514_vm7, %v3229_v10 }
 0x98d   : > { %v3328_v49 = vpop.f32.mrf.mxu0 }
 0x98e   : > { %3473 = vrot.lane.b32.xlu0 %v3328_v49, %s7163_s21 }
 0x98f   : > { %v6590_v61 = vpop.f32.mrf.mxu0 }
 0x991   : > { %v3334_v36 = vpop.f32.mrf.mxu0 }
 0x992   : > { %3475 = vrot.lane.b32.xlu1 %v3334_v36, %s7163_s21 }
 0x993   : > { %v6596_v33 = vpop.f32.mrf.mxu0 }
 0x994   : > { %v3442_v23 = vadd.f32 %v6596_v33, %v3328_v49 }
 0x996   : > { %v6598_v7 = vpop.f32.mrf.mxu0 }
 0x997   : > { %3477 = vrot.lane.b32.xlu0 %v6598_v7, %s7163_s21 }
 0x998   : > { %v6602_v46 = vpop.f32.mrf.mxu0 }
 0x99a   : > { %v3346_v28 = vpop.f32.mrf.mxu0 }
 0x99b   : > { %3479 = vrot.lane.b32.xlu1 %v3346_v28, %s7163_s21 }
 0x99c   : > { %v6605_v37 = vpop.f32.mrf.mxu0 }
 0x99d   : > { %v3444_v48 = vadd.f32 %v6605_v37, %v6598_v7 }
 0x9a0   : > { %v6607_v29 = vpop.f32.mrf.mxu0 }
 0x9a1   : > { %3481 = vrot.lane.b32.xlu0 %v6607_v29, %s7163_s21 }
 0x9a2   : > { %v6611_v56 = vpop.f32.mrf.mxu0 }
 0x9a4   : > { %v3358_v21 = vpop.f32.mrf.mxu0 }
 0x9a5   : > { %3483 = vrot.lane.b32.xlu1 %v3358_v21, %s7163_s21 }
 0x9a6   : > { %v6614_v51 = vpop.f32.mrf.mxu0 }
 0x9a7   : > { %v3446_v7 = vadd.f32 %v6614_v51, %v6607_v29 }
 0x9a8   : > { %v6616_v18 = vpop.f32.mrf.mxu0 }
 0x9a9   : > { %3485 = vrot.lane.b32.xlu0 %v6616_v18, %s7163_s21 }
 0x9aa   : > { %v6620_v57 = vpop.f32.mrf.mxu0 }
 0x9ac   : > { %v3370_v16 = vpop.f32.mrf.mxu0 }
 0x9ad   : > { %3487 = vrot.lane.b32.xlu1 %v3370_v16, %s7163_s21 }
 0x9ae   : > { %v6623_v34 = vpop.f32.mrf.mxu0 }
 0x9b0   : > { %v6625_v14 = vpop.f32.mrf.mxu0 }
 0x9b1   : > { %3489 = vrot.lane.b32.xlu0 %v6625_v14, %s7163_s21 }
 0x9b2   : > { %v6629_v2 = vpop.f32.mrf.mxu0 }
 0x9b4   : > { %v3382_v42 = vpop.f32.mrf.mxu0 }
 0x9b5   : > { %3491 = vrot.lane.b32.xlu1 %v3382_v42, %s7163_s21 }
 0x9b6   : > { %v6632_v13 = vpop.f32.mrf.mxu0 }
 0x9b8   : > { %v6634_v47 = vpop.f32.mrf.mxu0 }
 0x9b9   : > { %3493 = vrot.lane.b32.xlu0 %v6634_v47, %s7163_s21 }
 0x9ba   : > { %v6638_v4 = vpop.f32.mrf.mxu0 }
 0x9bc   : > { %v3394_v0 = vpop.f32.mrf.mxu0 }
 0x9bd   : > { %3495 = vrot.lane.b32.xlu1 %v3394_v0, %s7163_s21 }
 0x9be   : > { %v6641_v60 = vpop.f32.mrf.mxu0 }
 0x9c0   : > { %v6643_v8 = vpop.f32.mrf.mxu0 }
 0x9c1   : > { %3497 = vrot.lane.b32.xlu0 %v6643_v8, %s7163_s21 }
 0x9c2   : > { %v6647_v3 = vpop.f32.mrf.mxu0 }
 0x9c6   : > { %v3406_v59 = vpop.f32.mrf.mxu0 }
 0x9c7   : > { %3499 = vrot.lane.b32.xlu1 %v3406_v59, %s7163_s21 }
 0x9c8   : > { %v6650_v52 = vpop.f32.mrf.mxu0 }
 0x9ca   : > { %v6652_v22 = vpop.f32.mrf.mxu0 }
 0x9cb   : > { %3501 = vrot.lane.b32.xlu0 %v6652_v22, %s7163_s21 }
 0x9cc   : > { %v6656_v26 = vpop.f32.mrf.mxu0 }
 0x9ce   : > { %v3418_v1 = vpop.f32.mrf.mxu0 }
 0x9cf   : > { %4055 = vrot.lane.b32.xlu0 %v4599_v15, %s7163_s21  ;;  %3503 = vrot.lane.b32.xlu1 %v3418_v1, %s7163_s21 }
 0xa00   : > { %v3474_v45 = vpop.permute.xlu0 %3473 }
 0xa01   : > { %v3521_v50 = vrot.slane %v3474_v45, 4 }
 0xa04   : > { %v3476_v12 = vpop.permute.xlu1 %3475 }
 0xa05   : > { %v3529_v5 = vrot.slane %v3476_v12, 4 }
 0xa07   : > { %v3537_v44 = vsel %vm2114_vm5, %v3521_v50, %v3529_v5  ;;  %v3545_v53 = vsel %vm2114_vm5, %v3529_v5, %v3521_v50 }
 0xa08   : > { %v3553_v25 = vsel %vm2131_vm6, %v3545_v53, 0.0  ;;  %v3570_v17 = vadd.f32 %v3537_v44, %v3442_v23  ;;  %v3448_v23 = vadd.f32 %v6623_v34, %v6616_v18 }
 0xa09   : > { %v3569_v39 = vadd.f32 %v3553_v25, %v6590_v61  ;;  %v3478_v9 = vpop.permute.xlu0 %3477 }
 0xa0a   : > { %v3593_v19 = vadd.f32 %v6671_v30, %v3570_v17  ;;  %v3522_v11 = vrot.slane %v3478_v9, 4 }
 0xa0b   : > { %v3592_v55 = vadd.f32 %v6671_v30, %v3569_v39 }
 0xa0c   : > { %v3609_v20 = vmax.f32 %v3593_v19, 0.0 }
 0xa0d   : > { %v3608_v10 = vmax.f32 %v3592_v55, 0.0  ;;  %v3480_v35 = vpop.permute.xlu1 %3479 }
 0xa0e   : > { %v3530_v24 = vrot.slane %v3480_v35, 4 }
 0xa0f   : > { %4582 = vmatmul.mubr.msk.f32.vlgmr.msra.gmra.mxu1 %vm3640_vm8, %v3608_v10 }
 0xa10   : > { %v3538_v40 = vsel %vm2114_vm5, %v3522_v11, %v3530_v24  ;;  %v3546_v27 = vsel %vm2114_vm5, %v3530_v24, %v3522_v11  ;;  %3759 = vmatprep.mubr.f32.mxu1 %v4998_v54 }
 0xa11   : > { %v3555_v58 = vsel %vm2131_vm6, %v3546_v27, 0.0  ;;  %v3572_v31 = vadd.f32 %v3538_v40, %v3444_v48  ;;  %v3450_v48 = vadd.f32 %v6632_v13, %v6625_v14 }
 0xa12   : > { %v3571_v63 = vadd.f32 %v3555_v58, %v6602_v46 }
 0xa13   : > { %4583 = vmatmul.mubr.msk.f32.gmra.mxu1 %vm3640_vm8, %v3609_v20  ;;  %v3482_v49 = vpop.permute.xlu0 %3481  ;;  %v3595_v41 = vadd.f32 %v6671_v30, %v3572_v31 }
 0xa14   : > { %3765 = vmatprep.mubr.f32.mxu1 %v4998_v54  ;;  %v3594_v43 = vadd.f32 %v6671_v30, %v3571_v63  ;;  %v3523_v62 = vrot.slane %v3482_v49, 4 }
 0xa15   : > { %v3611_v16 = vmax.f32 %v3595_v41, 0.0 }
 0xa16   : > { %v3610_v6 = vmax.f32 %v3594_v43, 0.0 }
 0xa17   : > { %v3484_v38 = vpop.permute.xlu1 %3483 }
 0xa18   : > { %v3531_v36 = vrot.slane %v3484_v38, 4  ;;  %4584 = vmatmul.mubr.msk.f32.gmra.mxu1 %vm3640_vm8, %v3610_v6 }
 0xa19   : > { %3771 = vmatprep.mubr.f32.mxu1 %v4998_v54 }
 0xa1a   : > { %v3539_v28 = vsel %vm2114_vm5, %v3523_v62, %v3531_v36  ;;  %v3547_v21 = vsel %vm2114_vm5, %v3531_v36, %v3523_v62  ;;  %v3452_v36 = vadd.f32 %v6641_v60, %v6634_v47 }
 0xa1b   : > { %v3557_v42 = vsel %vm2131_vm6, %v3547_v21, 0.0  ;;  %v3574_v59 = vadd.f32 %v3539_v28, %v3446_v7  ;;  %v3486_v15 = vpop.permute.xlu0 %3485 }
 0xa1c   : > { %v3573_v0 = vadd.f32 %v3557_v42, %v6611_v56  ;;  %4585 = vmatmul.mubr.msk.f32.gmra.mxu1 %vm3640_vm8, %v3611_v16  ;;  %v3524_v45 = vrot.slane %v3486_v15, 4 }
 0xa1d   : > { %3777 = vmatprep.mubr.f32.mxu1 %v4998_v54  ;;  %v3597_v5 = vadd.f32 %v6671_v30, %v3574_v59 }
 0xa1e   : > { %v3596_v29 = vadd.f32 %v6671_v30, %v3573_v0 }
 0xa1f   : > { %v3488_v1 = vpop.permute.xlu1 %3487  ;;  %v3613_v55 = vmax.f32 %v3597_v5, 0.0 }
 0xa20   : > { %v3532_v12 = vrot.slane %v3488_v1, 4  ;;  %v3612_v50 = vmax.f32 %v3596_v29, 0.0 }
 0xa22   : > { %v3540_v44 = vsel %vm2114_vm5, %v3524_v45, %v3532_v12  ;;  %v3548_v53 = vsel %vm2114_vm5, %v3532_v12, %v3524_v45  ;;  %4586 = vmatmul.mubr.msk.f32.gmra.mxu1 %vm3640_vm8, %v3612_v50  ;;  %v3454_v50 = vadd.f32 %v6650_v52, %v6643_v8  ;;  %v6766_v8 = vpop.f32.mrf.mxu0 }
 0xa23   : > { %v3559_v25 = vsel %vm2131_vm6, %v3548_v53, 0.0  ;;  %3783 = vmatprep.mubr.f32.mxu1 %v4998_v54  ;;  %v3576_v17 = vadd.f32 %v3540_v44, %v3448_v23  ;;  %v3490_v9 = vpop.permute.xlu0 %3489 }
 0xa24   : > { %v3575_v39 = vadd.f32 %v3559_v25, %v6620_v57  ;;  %v3525_v35 = vrot.slane %v3490_v9, 4 }
 0xa25   : > { %v3599_v24 = vadd.f32 %v6671_v30, %v3576_v17 }
 0xa26   : > { %4587 = vmatmul.mubr.msk.f32.gmra.mxu1 %vm3640_vm8, %v3613_v55  ;;  %v3598_v18 = vadd.f32 %v6671_v30, %v3575_v39 }
 0xa27   : > { %v3492_v10 = vpop.permute.xlu1 %3491  ;;  %3789 = vmatprep.mubr.f32.mxu1 %v4998_v54  ;;  %v3615_v31 = vmax.f32 %v3599_v24, 0.0 }
 0xa28   : > { %v3533_v19 = vrot.slane %v3492_v10, 4  ;;  %v3614_v11 = vmax.f32 %v3598_v18, 0.0 }
 0xa2a   : > { %v3541_v40 = vsel %vm2114_vm5, %v3525_v35, %v3533_v19  ;;  %v3549_v27 = vsel %vm2114_vm5, %v3533_v19, %v3525_v35  ;;  %4588 = vmatmul.mubr.msk.f32.gmra.mxu1 %vm3640_vm8, %v3614_v11 }
 0xa2b   : > { %v3561_v58 = vsel %vm2131_vm6, %v3549_v27, 0.0  ;;  %3795 = vmatprep.mubr.f32.mxu1 %v4998_v54  ;;  %v3578_v63 = vadd.f32 %v3541_v40, %v3450_v48  ;;  %v3494_v43 = vpop.permute.xlu0 %3493  ;;  %v3456_v40 = vadd.f32 %v6766_v8, %v6652_v22 }
 0xa2c   : > { %v3577_v20 = vadd.f32 %v3561_v58, %v6629_v2  ;;  %v3526_v6 = vrot.slane %v3494_v43, 4 }
 0xa2d   : > { %v3601_v62 = vadd.f32 %v6671_v30, %v3578_v63 }
 0xa2e   : > { %4589 = vmatmul.mubr.msk.f32.gmra.mxu1 %vm3640_vm8, %v3615_v31  ;;  %v3600_v14 = vadd.f32 %v6671_v30, %v3577_v20 }
 0xa2f   : > { %v3496_v49 = vpop.permute.xlu1 %3495  ;;  %3801 = vmatprep.mubr.f32.mxu1 %v4998_v54  ;;  %v3617_v0 = vmax.f32 %v3601_v62, 0.0  ;;  %v4173_v62 = vld [vmem:[%s7134_s16 + $0x18] sm:$0xff] }
 0xa30   : > { %v3534_v41 = vrot.slane %v3496_v49, 4  ;;  %v3616_v38 = vmax.f32 %v3600_v14, 0.0 }
 0xa32   : > { %v3542_v7 = vsel %vm2114_vm5, %v3526_v6, %v3534_v41  ;;  %v3550_v28 = vsel %vm2114_vm5, %v3534_v41, %v3526_v6  ;;  %4590 = vmatmul.mubr.msk.f32.gmra.mxu1 %vm3640_vm8, %v3616_v38  ;;  %v4174_v38 = vld [vmem:[%s7134_s16 + $0x20] sm:$0xff] }
 0xa33   : > { %v3563_v21 = vsel %vm2131_vm6, %v3550_v28, 0.0  ;;  %3807 = vmatprep.mubr.f32.mxu1 %v4998_v54  ;;  %v3580_v42 = vadd.f32 %v3542_v7, %v3452_v36  ;;  %v3498_v59 = vpop.permute.xlu0 %3497  ;;  %v4172_v28 = vld [vmem:[%s7134_s16 + $0x10] sm:$0xff] }
 0xa34   : > { %v3579_v16 = vadd.f32 %v3563_v21, %v6638_v4  ;;  %v3527_v45 = vrot.slane %v3498_v59, 4 }
 0xa35   : > { %v3603_v29 = vadd.f32 %v6671_v30, %v3580_v42 }
 0xa36   : > { %4591 = vmatmul.mubr.msk.f32.gmra.mxu1 %vm3640_vm8, %v3617_v0  ;;  %v3602_v47 = vadd.f32 %v6671_v30, %v3579_v16  ;;  %v4171_v16 = vld [vmem:[%s7134_s16 + $0x8] sm:$0xff]  ;;  %v4170_v0 = vld [vmem:[%s7134_s16] sm:$0xff] }
 0xa37   : > { %3813 = vmatprep.mubr.f32.mxu1 %v4998_v54  ;;  %v3619_v44 = vmax.f32 %v3603_v29, 0.0 }
 0xa38   : > { %v3618_v15 = vmax.f32 %v3602_v47, 0.0 }
 0xa39   : > { %v3500_v1 = vpop.permute.xlu1 %3499 }
 0xa3a   : > { %v3535_v12 = vrot.slane %v3500_v1, 4  ;;  %4592 = vmatmul.mubr.msk.f32.gmra.mxu1 %vm3640_vm8, %v3618_v15 }
 0xa3b   : > { %3819 = vmatprep.mubr.f32.mxu1 %v4998_v54 }
 0xa3c   : > { %v3543_v5 = vsel %vm2114_vm5, %v3527_v45, %v3535_v12  ;;  %v3551_v23 = vsel %vm2114_vm5, %v3535_v12, %v3527_v45 }
 0xa3d   : > { %v3565_v53 = vsel %vm2131_vm6, %v3551_v23, 0.0  ;;  %v3582_v25 = vadd.f32 %v3543_v5, %v3454_v50  ;;  %v3502_v39 = vpop.permute.xlu0 %3501 }
 0xa3e   : > { %v3581_v17 = vadd.f32 %v3565_v53, %v6647_v3  ;;  %4593 = vmatmul.mubr.msk.f32.gmra.mxu1 %vm3640_vm8, %v3619_v44  ;;  %v3528_v9 = vrot.slane %v3502_v39, 4 }
 0xa3f   : > { %3825 = vmatprep.mubr.f32.mxu1 %v4998_v54  ;;  %v3605_v35 = vadd.f32 %v6671_v30, %v3582_v25 }
 0xa40   : > { %v3604_v55 = vadd.f32 %v6671_v30, %v3581_v17 }
 0xa41   : > { %v3504_v18 = vpop.permute.xlu1 %3503  ;;  %v6769_v10 = vpop.permute.xlu0 %4055  ;;  %v3621_v22 = vmax.f32 %v3605_v35, 0.0 }
 0xa42   : > { %v3536_v19 = vrot.slane %v3504_v18, 4  ;;  %v3620_v11 = vmax.f32 %v3604_v55, 0.0  ;;  %v4059_v24 = vadd.f32 %v6769_v10, %v6596_v33  ;;  %v4058_v48 = vadd.f32 %v6769_v10, %v6590_v61 }
 0xa43   : > { %v4061_v63 = vadd.f32 %v6769_v10, %v6605_v37  ;;  %v4060_v31 = vadd.f32 %v6769_v10, %v6602_v46  ;;  %v4063_v6 = vadd.f32 %v6769_v10, %v6614_v51  ;;  %v4062_v37 = vadd.f32 %v6769_v10, %v6611_v56 }
 0xa44   : > { %v3544_v27 = vsel %vm2114_vm5, %v3528_v9, %v3536_v19  ;;  %v3552_v58 = vsel %vm2114_vm5, %v3536_v19, %v3528_v9  ;;  %4594 = vmatmul.mubr.msk.f32.gmra.mxu1 %vm3640_vm8, %v3620_v11  ;;  %4092 = vrot.lane.b32.xlu0 %v4059_v24, %s7163_s21  ;;  %v4064_v41 = vadd.f32 %v6769_v10, %v6620_v57  ;;  %v4176_v57 = vld [vmem:[%s7134_s16 + $0x30] sm:$0xff] }
 0xa45   : > { %v3567_v20 = vsel %vm2131_vm6, %v3552_v58, 0.0  ;;  %v3584_v33 = vadd.f32 %v3544_v27, %v3456_v40  ;;  %4090 = vrot.lane.b32.xlu1 %v4058_v48, %s7163_s21  ;;  %3831 = vmatprep.mubr.f32.mxu1 %v4998_v54  ;;  %v4067_v56 = vadd.f32 %v6769_v10, %v6632_v13  ;;  %v4066_v51 = vadd.f32 %v6769_v10, %v6629_v2  ;;  %v4175_v2 = vld [vmem:[%s7134_s16 + $0x28] sm:$0xff] }
 0xa46   : > { %v3583_v61 = vadd.f32 %v3567_v20, %v6656_v26 }
 0xa47   : > { %v3607_v43 = vadd.f32 %v6671_v30, %v3584_v33 }
 0xa48   : > { %4595 = vmatmul.mubr.msk.f32.gmra.mxu1 %vm3640_vm8, %v3621_v22  ;;  %4096 = vrot.lane.b32.xlu0 %v4061_v63, %s7163_s21  ;;  %v3606_v14 = vadd.f32 %v6671_v30, %v3583_v61  ;;  %v4065_v30 = vadd.f32 %v6769_v10, %v6623_v34 }
 0xa49   : > { %4094 = vrot.lane.b32.xlu1 %v4060_v31, %s7163_s21  ;;  %3837 = vmatprep.mubr.f32.mxu1 %v4998_v54  ;;  %v3623_v46 = vmax.f32 %v3607_v43, 0.0  ;;  %v4068_v31 = vadd.f32 %v6769_v10, %v6638_v4  ;;  %v4072_v4 = vadd.f32 %v6769_v10, %v6656_v26 }
 0xa4a   : > { %v3622_v49 = vmax.f32 %v3606_v14, 0.0  ;;  %v4069_v14 = vadd.f32 %v6769_v10, %v6641_v60  ;;  %v4073_v60 = vadd.f32 %v6769_v10, %v6766_v8 }
 0xa4c   : > { %4596 = vmatmul.mubr.msk.f32.gmra.mxu1 %vm3640_vm8, %v3622_v49  ;;  %4100 = vrot.lane.b32.xlu0 %v4063_v6, %s7163_s21  ;;  %v4070_v49 = vadd.f32 %v6769_v10, %v6647_v3  ;;  %v4071_v6 = vadd.f32 %v6769_v10, %v6650_v52 }
 0xa4d   : > { %4098 = vrot.lane.b32.xlu1 %v4062_v37, %s7163_s21  ;;  %3843 = vmatprep.mubr.f32.mxu1 %v4998_v54  ;;  %v4177_v54 = vld [vmem:[%s7134_s16 + $0x38] sm:$0xff] }
 0xa4e   : > { %4840 = vmatprep.subr.mxu0 %v4177_v54 }
 0xa4f   : > { %4841 = vmatpush3.msra.mxu0 %v4177_v54 }
 0xa50   : > { %4597 = vmatmul.mubr.msk.f32.gmra.mxu1 %vm3640_vm8, %v3623_v46  ;;  %4104 = vrot.lane.b32.xlu0 %v4065_v30, %s7163_s21 }
 0xa51   : > { %4102 = vrot.lane.b32.xlu1 %v4064_v41, %s7163_s21  ;;  %4842 = vmatprep.subr.mxu0 %v4176_v57 }
 0xa52   : > { %4843 = vmatpush3.msra.mxu0 %v4176_v57 }
 0xa53   : > { %4844 = vmatprep.subr.mxu0 %v4175_v2 }
 0xa54   : > { %4108 = vrot.lane.b32.xlu0 %v4067_v56, %s7163_s21  ;;  %4845 = vmatpush3.msra.mxu0 %v4175_v2  ;;  %v6924_v2 = vld [vmem:[%s7133_s15] ss:$0 sm:$0xff] }
 0xa55   : > { %4106 = vrot.lane.b32.xlu1 %v4066_v51, %s7163_s21  ;;  %4846 = vmatprep.subr.mxu0 %v4174_v38 }
 0xa56   : > { %4847 = vmatpush3.msra.mxu0 %v4174_v38 }
 0xa57   : > { %4848 = vmatprep.subr.mxu0 %v4173_v62 }
 0xa58   : > { %4849 = vmatpush3.msra.mxu0 %v4173_v62 }
 0xa59   : > { %4850 = vmatprep.subr.mxu0 %v4172_v28 }
 0xa5a   : > { %4851 = vmatpush3.msra.mxu0 %v4172_v28 }
 0xa5b   : > { %4852 = vmatprep.subr.mxu0 %v4171_v16 }
 0xa5c   : > { %4853 = vmatpush3.msra.mxu0 %v4171_v16 }
 0xa5d   : > { %4854 = vmatprep.subr.mxu0 %v4170_v0 }
 0xa5e   : > { %4855 = vmatpush3.msra.mxu0 %v4170_v0 }
 0xab6   : > { %v4093_v37 = vpop.permute.xlu0 %4092 }
 0xab7   : > { %v4091_v3 = vpop.permute.xlu1 %4090 }
 0xaba   : > { %v4097_v30 = vpop.permute.xlu0 %4096 }
 0xabb   : > { %v4095_v46 = vpop.permute.xlu1 %4094 }
 0xabe   : > { %v4101_v56 = vpop.permute.xlu0 %4100 }
 0xabf   : > { %v6911_v41 = vpop.permute.xlu1 %4098 }
 0xac2   : > { %v6915_v51 = vpop.permute.xlu0 %4104 }
 0xac3   : > { %v6913_v52 = vpop.permute.xlu1 %4102 }
 0xac6   : > { %v6919_v54 = vpop.permute.xlu0 %4108 }
 0xac7   : > { %v6917_v26 = vpop.permute.xlu1 %4106 }
 0xacf   : > { %v3755_v34 = vpop.f32.mrf.mxu1 }
 0xad0   : > { %3898 = vrot.lane.b32.xlu1 %v3755_v34, %s7163_s21 }
 0xad1   : > { %v6830_v13 = vpop.f32.mrf.mxu1 }
 0xad3   : > { %v3761_v36 = vpop.f32.mrf.mxu1 }
 0xad4   : > { %3900 = vrot.lane.b32.xlu0 %v3761_v36, %s7163_s21 }
 0xad5   : > { %v3763_v7 = vpop.f32.mrf.mxu1 }
 0xad6   : > { %v6842_v21 = vadd.f32 %v3763_v7, %v3755_v34 }
 0xad8   : > { %v3767_v42 = vpop.f32.mrf.mxu1 }
 0xad9   : > { %3902 = vrot.lane.b32.xlu1 %v3767_v42, %s7163_s21 }
 0xada   : > { %v6851_v47 = vpop.f32.mrf.mxu1 }
 0xadc   : > { %v3773_v59 = vpop.f32.mrf.mxu1 }
 0xadd   : > { %3904 = vrot.lane.b32.xlu0 %v3773_v59, %s7163_s21 }
 0xade   : > { %v3775_v15 = vpop.f32.mrf.mxu1 }
 0xadf   : > { %v6854_v29 = vadd.f32 %v3775_v15, %v3767_v42 }
 0xae2   : > { %v3779_v1 = vpop.f32.mrf.mxu1 }
 0xae3   : > { %3906 = vrot.lane.b32.xlu1 %v3779_v1, %s7163_s21 }
 0xae4   : > { %v6857_v45 = vpop.f32.mrf.mxu1 }
 0xae6   : > { %v3785_v12 = vpop.f32.mrf.mxu1 }
 0xae7   : > { %3908 = vrot.lane.b32.xlu0 %v3785_v12, %s7163_s21 }
 0xae8   : > { %v3787_v50 = vpop.f32.mrf.mxu1 }
 0xae9   : > { %v6860_v5 = vadd.f32 %v3787_v50, %v3779_v1 }
 0xaea   : > { %v3791_v23 = vpop.f32.mrf.mxu1 }
 0xaeb   : > { %3910 = vrot.lane.b32.xlu1 %v3791_v23, %s7163_s21 }
 0xaec   : > { %v6863_v44 = vpop.f32.mrf.mxu1 }
 0xaee   : > { %v3797_v53 = vpop.f32.mrf.mxu1 }
 0xaef   : > { %3912 = vrot.lane.b32.xlu0 %v3797_v53, %s7163_s21 }
 0xaf0   : > { %v3799_v25 = vpop.f32.mrf.mxu1 }
 0xaf1   : > { %v6866_v39 = vadd.f32 %v3799_v25, %v3791_v23 }
 0xaf2   : > { %v3803_v17 = vpop.f32.mrf.mxu1 }
 0xaf3   : > { %3914 = vrot.lane.b32.xlu1 %v3803_v17, %s7163_s21 }
 0xaf4   : > { %v6869_v55 = vpop.f32.mrf.mxu1 }
 0xaf6   : > { %v3809_v9 = vpop.f32.mrf.mxu1 }
 0xaf7   : > { %3916 = vrot.lane.b32.xlu0 %v3809_v9, %s7163_s21 }
 0xaf8   : > { %v3811_v18 = vpop.f32.mrf.mxu1 }
 0xaf9   : > { %v6872_v35 = vadd.f32 %v3811_v18, %v3803_v17 }
 0xafa   : > { %v3815_v19 = vpop.f32.mrf.mxu1 }
 0xafb   : > { %3918 = vrot.lane.b32.xlu1 %v3815_v19, %s7163_s21 }
 0xafc   : > { %v6875_v11 = vpop.f32.mrf.mxu1 }
 0xafe   : > { %v3821_v24 = vpop.f32.mrf.mxu1 }
 0xaff   : > { %3920 = vrot.lane.b32.xlu0 %v3821_v24, %s7163_s21 }
 0xb00   : > { %v3823_v48 = vpop.f32.mrf.mxu1 }
 0xb01   : > { %v6878_v40 = vadd.f32 %v3823_v48, %v3815_v19 }
 0xb04   : > { %v3827_v27 = vpop.f32.mrf.mxu1 }
 0xb05   : > { %3922 = vrot.lane.b32.xlu1 %v3827_v27, %s7163_s21 }
 0xb06   : > { %v6881_v58 = vpop.f32.mrf.mxu1 }
 0xb08   : > { %v3833_v20 = vpop.f32.mrf.mxu1 }
 0xb09   : > { %3924 = vrot.lane.b32.xlu0 %v3833_v20, %s7163_s21 }
 0xb0a   : > { %v3835_v33 = vpop.f32.mrf.mxu1 }
 0xb0b   : > { %v6884_v61 = vadd.f32 %v3835_v33, %v3827_v27 }
 0xb0c   : > { %v6886_v22 = vpop.f32.mrf.mxu1 }
 0xb0d   : > { %3926 = vrot.lane.b32.xlu1 %v6886_v22, %s7163_s21 }
 0xb0e   : > { %v6890_v63 = vpop.f32.mrf.mxu1 }
 0xb10   : > { %v3845_v43 = vpop.f32.mrf.mxu1 }
 0xb11   : > { %3928 = vrot.lane.b32.xlu0 %v3845_v43, %s7163_s21  ;;  %4110 = vrot.lane.b32.xlu1 %v4068_v31, %s7163_s21 }
 0xb15   : > { %4112 = vrot.lane.b32.xlu0 %v4069_v14, %s7163_s21  ;;  %4114 = vrot.lane.b32.xlu1 %v4070_v49, %s7163_s21 }
 0xb19   : > { %4116 = vrot.lane.b32.xlu0 %v4071_v6, %s7163_s21  ;;  %4118 = vrot.lane.b32.xlu1 %v4072_v4, %s7163_s21 }
 0xb1d   : > { %4120 = vrot.lane.b32.xlu0 %v4073_v60, %s7163_s21 }
 0xb42   : > { %v3899_v57 = vpop.permute.xlu1 %3898 }
 0xb43   : > { %v3946_v8 = vrot.slane %v3899_v57, 4 }
 0xb46   : > { %v3901_v34 = vpop.permute.xlu0 %3900 }
 0xb47   : > { %v3954_v10 = vrot.slane %v3901_v34, 4 }
 0xb49   : > { %v3962_v38 = vsel %vm2114_vm5, %v3946_v8, %v3954_v10  ;;  %v3970_v62 = vsel %vm2114_vm5, %v3954_v10, %v3946_v8 }
 0xb4a   : > { %v3978_v36 = vsel %vm2131_vm6, %v3970_v62, 0.0  ;;  %v3995_v7 = vadd.f32 %v3962_v38, %v6842_v21 }
 0xb4b   : > { %v3994_v28 = vadd.f32 %v3978_v36, %v6830_v13  ;;  %v3903_v0 = vpop.permute.xlu1 %3902 }
 0xb4c   : > { %v4018_v16 = vadd.f32 %v6924_v2, %v3995_v7  ;;  %v3947_v50 = vrot.slane %v3903_v0, 4 }
 0xb4d   : > { %v4017_v42 = vadd.f32 %v6924_v2, %v3994_v28 }
 0xb4e   : > { %v4034_v59 = vmax.f32 %v4018_v16, 0.0 }
 0xb4f   : > { %v4033_v15 = vmax.f32 %v4017_v42, 0.0  ;;  %v3905_v1 = vpop.permute.xlu0 %3904 }
 0xb50   : > { %v4139_v12 = vadd.f32 %v4093_v37, %v4034_v59  ;;  %v3955_v23 = vrot.slane %v3905_v1, 4 }
 0xb51   : > { %v4138_v53 = vadd.f32 %v4091_v3, %v4033_v15 }
 0xb52   : > { %v3963_v25 = vsel %vm2114_vm5, %v3947_v50, %v3955_v23  ;;  %v3971_v21 = vsel %vm2114_vm5, %v3955_v23, %v3947_v50  ;;  %v4155_v18 = vmax.f32 %v4139_v12, 0.0 }
 0xb53   : > { %v3980_v13 = vsel %vm2131_vm6, %v3971_v21, 0.0  ;;  %v3997_v17 = vadd.f32 %v3963_v25, %v6854_v29  ;;  %v4154_v9 = vmax.f32 %v4138_v53, 0.0 }
 0xb54   : > { %v3996_v19 = vadd.f32 %v3980_v13, %v6851_v47 }
 0xb55   : > { %v4020_v24 = vadd.f32 %v6924_v2, %v3997_v17  ;;  %4856 = vmatprep.mubr.msk.f32.mxu0 %vm3640_vm8, %v4154_v9  ;;  %v3907_v20 = vpop.permute.xlu1 %3906 }
 0xb56   : > { %v4019_v48 = vadd.f32 %v6924_v2, %v3996_v19  ;;  %4857 = vmatmul.mubr.msk.f32.vlgmr.msra.gmra.mxu0 %vm3640_vm8, %v4155_v18  ;;  %v3948_v14 = vrot.slane %v3907_v20, 4 }
 0xb57   : > { %v4036_v27 = vmax.f32 %v4020_v24, 0.0 }
 0xb58   : > { %v4035_v33 = vmax.f32 %v4019_v48, 0.0 }
 0xb59   : > { %v3909_v31 = vpop.permute.xlu0 %3908  ;;  %v4141_v43 = vadd.f32 %v4097_v30, %v4036_v27 }
 0xb5a   : > { %v3956_v49 = vrot.slane %v3909_v31, 4  ;;  %v4140_v29 = vadd.f32 %v4095_v46, %v4035_v33 }
 0xb5b   : > { %v4157_v37 = vmax.f32 %v4141_v43, 0.0 }
 0xb5c   : > { %v3964_v6 = vsel %vm2114_vm5, %v3948_v14, %v3956_v49  ;;  %v3972_v47 = vsel %vm2114_vm5, %v3956_v49, %v3948_v14  ;;  %v4156_v4 = vmax.f32 %v4140_v29, 0.0 }
 0xb5d   : > { %v3982_v60 = vsel %vm2131_vm6, %v3972_v47, 0.0  ;;  %v3999_v3 = vadd.f32 %v3964_v6, %v6860_v5  ;;  %v3911_v46 = vpop.permute.xlu1 %3910 }
 0xb5e   : > { %v3998_v57 = vadd.f32 %v3982_v60, %v6857_v45  ;;  %4859 = vmatprep.mubr.msk.f32.mxu0 %vm3640_vm8, %v4156_v4  ;;  %v3949_v62 = vrot.slane %v3911_v46, 4 }
 0xb5f   : > { %v4022_v30 = vadd.f32 %v6924_v2, %v3999_v3  ;;  %4860 = vmatmul.mubr.msk.f32.gmra.mxu0 %vm3640_vm8, %v4157_v37 }
 0xb60   : > { %v4021_v34 = vadd.f32 %v6924_v2, %v3998_v57 }
 0xb61   : > { %v4038_v8 = vmax.f32 %v4022_v30, 0.0  ;;  %v3913_v10 = vpop.permute.xlu0 %3912 }
 0xb62   : > { %v4037_v38 = vmax.f32 %v4021_v34, 0.0  ;;  %v3957_v36 = vrot.slane %v3913_v10, 4 }
 0xb63   : > { %v4143_v7 = vadd.f32 %v4101_v56, %v4038_v8 }
 0xb64   : > { %v3965_v5 = vsel %vm2114_vm5, %v3949_v62, %v3957_v36  ;;  %v3973_v45 = vsel %vm2114_vm5, %v3957_v36, %v3949_v62  ;;  %v4142_v28 = vadd.f32 %v6911_v41, %v4037_v38  ;;  %v3847_v62 = vpop.f32.mrf.mxu1 }
 0xb65   : > { %v3984_v16 = vsel %vm2131_vm6, %v3973_v45, 0.0  ;;  %v4001_v42 = vadd.f32 %v3965_v5, %v6866_v39  ;;  %v3915_v1 = vpop.permute.xlu1 %3914  ;;  %v4159_v56 = vmax.f32 %v4143_v7, 0.0 }
 0xb66   : > { %v4000_v0 = vadd.f32 %v3984_v16, %v6863_v44  ;;  %v4158_v59 = vmax.f32 %v4142_v28, 0.0  ;;  %v3950_v53 = vrot.slane %v3915_v1, 4 }
 0xb67   : > { %v4024_v15 = vadd.f32 %v6924_v2, %v4001_v42  ;;  %v3881_v42 = vadd.f32 %v3847_v62, %v6886_v22 }
 0xb68   : > { %v4023_v12 = vadd.f32 %v6924_v2, %v4000_v0  ;;  %4862 = vmatprep.mubr.msk.f32.mxu0 %vm3640_vm8, %v4158_v59 }
 0xb69   : > { %v4040_v50 = vmax.f32 %v4024_v15, 0.0  ;;  %v3917_v23 = vpop.permute.xlu0 %3916  ;;  %4863 = vmatmul.mubr.msk.f32.gmra.mxu0 %vm3640_vm8, %v4159_v56 }
 0xb6a   : > { %v4039_v41 = vmax.f32 %v4023_v12, 0.0  ;;  %v3958_v25 = vrot.slane %v3917_v23, 4 }
 0xb6b   : > { %v4145_v39 = vadd.f32 %v6915_v51, %v4040_v50 }
 0xb6c   : > { %v3966_v44 = vsel %vm2114_vm5, %v3950_v53, %v3958_v25  ;;  %v3974_v21 = vsel %vm2114_vm5, %v3958_v25, %v3950_v53  ;;  %v4144_v13 = vadd.f32 %v6913_v52, %v4039_v41 }
 0xb6d   : > { %v3986_v17 = vsel %vm2131_vm6, %v3974_v21, 0.0  ;;  %v4003_v9 = vadd.f32 %v3966_v44, %v6872_v35  ;;  %v3919_v48 = vpop.permute.xlu1 %3918  ;;  %v4161_v51 = vmax.f32 %v4145_v39, 0.0 }
 0xb6e   : > { %v4002_v18 = vadd.f32 %v3986_v17, %v6869_v55  ;;  %v4160_v19 = vmax.f32 %v4144_v13, 0.0  ;;  %v3951_v31 = vrot.slane %v3919_v48, 4 }
 0xb6f   : > { %v4026_v24 = vadd.f32 %v6924_v2, %v4003_v9 }
 0xb70   : > { %v4025_v27 = vadd.f32 %v6924_v2, %v4002_v18  ;;  %4865 = vmatprep.mubr.msk.f32.mxu0 %vm3640_vm8, %v4160_v19 }
 0xb71   : > { %v4042_v20 = vmax.f32 %v4026_v24, 0.0  ;;  %v3921_v33 = vpop.permute.xlu0 %3920  ;;  %4866 = vmatmul.mubr.msk.f32.gmra.mxu0 %vm3640_vm8, %v4161_v51 }
 0xb72   : > { %v4041_v52 = vmax.f32 %v4025_v27, 0.0  ;;  %v3959_v43 = vrot.slane %v3921_v33, 4 }
 0xb73   : > { %v4147_v35 = vadd.f32 %v6919_v54, %v4042_v20 }
 0xb74   : > { %v3975_v55 = vsel %vm2114_vm5, %v3959_v43, %v3951_v31  ;;  %v4146_v14 = vadd.f32 %v6917_v26, %v4041_v52  ;;  %v3967_v4 = vsel %vm2114_vm5, %v3951_v31, %v3959_v43 }
 0xb75   : > { %v4163_v29 = vmax.f32 %v4147_v35, 0.0  ;;  %v3988_v6 = vsel %vm2131_vm6, %v3975_v55, 0.0  ;;  %v4005_v26 = vadd.f32 %v3967_v4, %v6878_v40 }
 0xb76   : > { %v4162_v49 = vmax.f32 %v4146_v14, 0.0  ;;  %v4004_v54 = vadd.f32 %v3988_v6, %v6875_v11 }
 0xb77   : > { %v3923_v47 = vpop.permute.xlu1 %3922  ;;  %v4028_v11 = vadd.f32 %v6924_v2, %v4005_v26 }
 0xb78   : > { %4868 = vmatprep.mubr.msk.f32.mxu0 %vm3640_vm8, %v4162_v49  ;;  %v3952_v3 = vrot.slane %v3923_v47, 4  ;;  %v4027_v46 = vadd.f32 %v6924_v2, %v4004_v54 }
 0xb79   : > { %4869 = vmatmul.mubr.msk.f32.gmra.mxu0 %vm3640_vm8, %v4163_v29  ;;  %v4044_v0 = vmax.f32 %v4028_v11, 0.0 }
 0xb7a   : > { %v4043_v40 = vmax.f32 %v4027_v46, 0.0 }
 0xb7b   : > { %v3925_v60 = vpop.permute.xlu0 %3924 }
 0xb7c   : > { %v3960_v37 = vrot.slane %v3925_v60, 4 }
 0xb7e   : > { %v3968_v57 = vsel %vm2114_vm5, %v3952_v3, %v3960_v37  ;;  %v3976_v30 = vsel %vm2114_vm5, %v3960_v37, %v3952_v3 }
 0xb7f   : > { %v3927_v34 = vpop.permute.xlu1 %3926  ;;  %v3990_v8 = vsel %vm2131_vm6, %v3976_v30, 0.0  ;;  %v4007_v38 = vadd.f32 %v3968_v57, %v6884_v61 }
 0xb80   : > { %v4006_v10 = vadd.f32 %v3990_v8, %v6881_v58  ;;  %v3953_v45 = vrot.slane %v3927_v34, 4 }
 0xb81   : > { %v4030_v59 = vadd.f32 %v6924_v2, %v4007_v38 }
 0xb82   : > { %v4029_v36 = vadd.f32 %v6924_v2, %v4006_v10 }
 0xb83   : > { %v3929_v7 = vpop.permute.xlu0 %3928  ;;  %v4111_v5 = vpop.permute.xlu1 %4110  ;;  %v4046_v25 = vmax.f32 %v4030_v59, 0.0 }
 0xb84   : > { %v3961_v28 = vrot.slane %v3929_v7, 4  ;;  %v4148_v16 = vadd.f32 %v4111_v5, %v4043_v40  ;;  %v4045_v1 = vmax.f32 %v4029_v36, 0.0 }
 0xb86   : > { %v3969_v58 = vsel %vm2114_vm5, %v3953_v45, %v3961_v28  ;;  %v3977_v61 = vsel %vm2114_vm5, %v3961_v28, %v3953_v45  ;;  %v4164_v15 = vmax.f32 %v4148_v16, 0.0 }
 0xb87   : > { %v4113_v56 = vpop.permute.xlu0 %4112  ;;  %v4115_v12 = vpop.permute.xlu1 %4114  ;;  %v3992_v50 = vsel %vm2131_vm6, %v3977_v61, 0.0  ;;  %v4009_v23 = vadd.f32 %v3969_v58, %v3881_v42 }
 0xb88   : > { %v4149_v41 = vadd.f32 %v4113_v56, %v4044_v0  ;;  %v4150_v53 = vadd.f32 %v4115_v12, %v4045_v1  ;;  %4871 = vmatprep.mubr.msk.f32.mxu0 %vm3640_vm8, %v4164_v15  ;;  %v4008_v22 = vadd.f32 %v3992_v50, %v6890_v63 }
 0xb89   : > { %v4032_v13 = vadd.f32 %v6924_v2, %v4009_v23 }
 0xb8a   : > { %v4165_v39 = vmax.f32 %v4149_v41, 0.0  ;;  %v4166_v44 = vmax.f32 %v4150_v53, 0.0  ;;  %v4031_v21 = vadd.f32 %v6924_v2, %v4008_v22  ;;  %v4616_v2 = vld [vmem:[%s7135_s17] ss:$0 sm:$0xff] }
 0xb8b   : > { %v4117_v17 = vpop.permute.xlu0 %4116  ;;  %v4119_v18 = vpop.permute.xlu1 %4118  ;;  %v4048_v63 = vmax.f32 %v4032_v13, 0.0 }
 0xb8c   : > { %v4151_v9 = vadd.f32 %v4117_v17, %v4046_v25  ;;  %v4047_v32 = vmax.f32 %v4031_v21, 0.0  ;;  %4872 = vmatmul.mubr.msk.f32.gmra.mxu0 %vm3640_vm8, %v4165_v39 }
 0xb8d   : > { %4874 = vmatprep.mubr.msk.f32.mxu0 %vm3640_vm8, %v4166_v44 }
 0xb8e   : > { %v4167_v19 = vmax.f32 %v4151_v9, 0.0  ;;  %v4152_v24 = vadd.f32 %v4119_v18, %v4047_v32 }
 0xb8f   : > { %v4121_v48 = vpop.permute.xlu0 %4120 }
 0xb90   : > { %v4168_v51 = vmax.f32 %v4152_v24, 0.0  ;;  %v4153_v27 = vadd.f32 %v4121_v48, %v4048_v63  ;;  %4875 = vmatmul.mubr.msk.f32.gmra.mxu0 %vm3640_vm8, %v4167_v19 }
 0xb92   : > { %v4169_v20 = vmax.f32 %v4153_v27, 0.0  ;;  %4877 = vmatprep.mubr.msk.f32.mxu0 %vm3640_vm8, %v4168_v51 }
 0xb94   : > { %4878 = vmatmul.mubr.msk.f32.gmra.mxu0 %vm3640_vm8, %v4169_v20 }
 0xc16   : > { %v4858_v33 = vpop.f32.mrf.mxu0 }
 0xc17   : > { %v4379_v52 = vadd.f32 %v4858_v33, %v4616_v2 }
 0xc18   : > { %v4292_v31 = vpop.f32.mrf.mxu0 }
 0xc19   : > { %4395 = vst.msk [vmem:[%s7033_s24 + $0x8] sm:$0xff] %vm3640_vm8, %v4379_v52  ;;  %v4378_v43 = vadd.f32 %v4616_v2, %v4292_v31 }
 0xc1b   : > { %4394 = vst.msk [vmem:[%s7033_s24] sm:$0xff] %vm3640_vm8, %v4378_v43 }
 0xc1f   : > { %v4861_v35 = vpop.f32.mrf.mxu0 }
 0xc20   : > { %v4381_v55 = vadd.f32 %v4861_v35, %v4616_v2 }
 0xc21   : > { %v4302_v14 = vpop.f32.mrf.mxu0 }
 0xc22   : > { %4397 = vst.msk [vmem:[%s7033_s24 + $0x18] sm:$0xff] %vm3640_vm8, %v4381_v55  ;;  %v4380_v49 = vadd.f32 %v4616_v2, %v4302_v14 }
 0xc24   : > { %4396 = vst.msk [vmem:[%s7033_s24 + $0x10] sm:$0xff] %vm3640_vm8, %v4380_v49 }
 0xc29   : > { %v4864_v29 = vpop.f32.mrf.mxu0 }
 0xc2a   : > { %v4383_v6 = vadd.f32 %v4864_v29, %v4616_v2 }
 0xc2b   : > { %v4312_v47 = vpop.f32.mrf.mxu0 }
 0xc2c   : > { %4399 = vst.msk [vmem:[%s7033_s24 + $0x28] sm:$0xff] %vm3640_vm8, %v4383_v6  ;;  %v4382_v4 = vadd.f32 %v4616_v2, %v4312_v47 }
 0xc2e   : > { %4398 = vst.msk [vmem:[%s7033_s24 + $0x20] sm:$0xff] %vm3640_vm8, %v4382_v4 }
 0xc31   : > { %v4867_v54 = vpop.f32.mrf.mxu0 }
 0xc32   : > { %v4385_v60 = vadd.f32 %v4867_v54, %v4616_v2 }
 0xc33   : > { %v4322_v3 = vpop.f32.mrf.mxu0 }
 0xc34   : > { %4401 = vst.msk [vmem:[%s7033_s24 + $0x38] sm:$0xff] %vm3640_vm8, %v4385_v60  ;;  %v4384_v37 = vadd.f32 %v4616_v2, %v4322_v3 }
 0xc36   : > { %4400 = vst.msk [vmem:[%s7033_s24 + $0x30] sm:$0xff] %vm3640_vm8, %v4384_v37 }
 0xc39   : > { %v4870_v26 = vpop.f32.mrf.mxu0 }
 0xc3a   : > { %v4387_v57 = vadd.f32 %v4870_v26, %v4616_v2 }
 0xc3b   : > { %v4332_v30 = vpop.f32.mrf.mxu0 }
 0xc3c   : > { %4403 = vst.msk [vmem:[%s7033_s24 + $0x48] sm:$0xff] %vm3640_vm8, %v4387_v57  ;;  %v4386_v46 = vadd.f32 %v4616_v2, %v4332_v30 }
 0xc3e   : > { %4402 = vst.msk [vmem:[%s7033_s24 + $0x40] sm:$0xff] %vm3640_vm8, %v4386_v46 }
 0xc4c   : > { %v4873_v34 = vpop.f32.mrf.mxu0 }
 0xc4d   : > { %v4389_v8 = vadd.f32 %v4873_v34, %v4616_v2 }
 0xc4e   : > { %v4342_v10 = vpop.f32.mrf.mxu0 }
 0xc4f   : > { %4405 = vst.msk [vmem:[%s7033_s24 + $0x58] sm:$0xff] %vm3640_vm8, %v4389_v8  ;;  %v4388_v11 = vadd.f32 %v4616_v2, %v4342_v10 }
 0xc50   : > { %v4876_v38 = vpop.f32.mrf.mxu0 }
 0xc51   : > { %4404 = vst.msk [vmem:[%s7033_s24 + $0x50] sm:$0xff] %vm3640_vm8, %v4388_v11  ;;  %v4391_v62 = vadd.f32 %v4876_v38, %v4616_v2 }
 0xc52   : > { %v4352_v40 = vpop.f32.mrf.mxu0 }
 0xc53   : > { %4407 = vst.msk [vmem:[%s7033_s24 + $0x68] sm:$0xff] %vm3640_vm8, %v4391_v62  ;;  %v4390_v36 = vadd.f32 %v4616_v2, %v4352_v40 }
 0xc54   : > { %v4879_v7 = vpop.f32.mrf.mxu0 }
 0xc55   : > { %4406 = vst.msk [vmem:[%s7033_s24 + $0x60] sm:$0xff] %vm3640_vm8, %v4390_v36  ;;  %v4393_v5 = vadd.f32 %v4879_v7, %v4616_v2 }
 0xc56   : > { %v4362_v45 = vpop.f32.mrf.mxu0 }
 0xc57   : > { %4409 = vst.msk [vmem:[%s7033_s24 + $0x78] sm:$0xff] %vm3640_vm8, %v4393_v5  ;;  %v4392_v28 = vadd.f32 %v4616_v2, %v4362_v45 }
 0xc59   : > { %4408 = vst.msk [vmem:[%s7033_s24 + $0x70] sm:$0xff] %vm3640_vm8, %v4392_v28 }
 0xc5a   : > { %4944 = shalt.err (!%p4941_p3)
}
 0xc5b   : > { %s4945_s4 = scalar_lea.hbm %s7068_s1, 2048  ;;  %s4949_s21 = scalar_lea.hbm %s7136_s18, 4096 }
 0xc5c   : > { %p4946_p4 = scmp.ne.s32.totalorder %s7068_s1, %s4945_s4  ;;  %p4950_p9 = scmp.lt.s32.totalorder %s7068_s1, %s7136_s18 }
 0xc5d   : > { %p4951_p10 = scmp.lt.s32.totalorder %s4949_s21, %s4945_s4 }
 0xc5e   : > { %p4947_p7 = pnand %p4946_p4, %p5135_p5 }
 0xc5f   : > { %p4952_p11 = por %p4951_p10, %p4950_p9 }
 0xc60   : > { %p4948_p8 = pneg %p4947_p7 }
 0xc62   : > { %p4953_p12 = pnand %p4952_p11, %p4948_p8 }
 0xc64   : > { %4956 = shalt.err (!%p4953_p12)
}
 0xc65   : > { %s5000_s29 = smov 128   ;;  %s5001_s20 = smov 8  }
 0xc66   : > { %4884 = dma.vmem_to_hbm [thread:$0]  (%p5135_p5), %s7070_s3, 2048, %s7068_s1, %s7078_s0, %s5000_s29, %s5000_s29, %s5001_s20  }
 0xc67 PF: > { %p4890_p13 = scmp.ge.s32.totalorder %s4991_s30, 2  ;;  %s4440_s25 = sand.u32 1, %s4979_s27  }
 0xc68   : > { %s4441_s5 = scalar_lea.sflag [#allocation3], %s4440_s25 }
 0xc69   : > { %p4887_p0 = pnand %p4890_p13, %p5139_p6 }
 0xc6b   : > { %p4888_p1 = pneg %p4887_p0 }
 0xc6d   : > { %4974 = dma.done.wait (%p4888_p1), %s4441_s5, 2048  }
 0xc6e   : > { %4976 = vsyncadd (%p4888_p1), %s4441_s5, 4294965248  ;;  %s7164_s30 = sld [smem:[#allocation6_spill]]  ;;  %s7167_s27 = smov %s4983_s28 }
 0xc6f   : > { %s7165_s4 = sld [smem:[#allocation5_spill]] }
 0xc70   : > { %s7166_s29 = sld [smem:[#allocation7_spill]] }
 0xc74   : > { %p28_p2 = scmp.ge.s32.totalorder %s7164_s30, 4  }
 0xc75   : > { %s7168_s28 = smov %s7165_s4 }
 0xc76   :  { %30 = sbr.rel (!%p28_p2) target bundleno = 10 (0xa), region = 127 }
 0xc7b   :  { %4446 = vsyncpa [#allocation3], 1 }
 0xc7c   :  { %4448 = vsyncpa [#allocation3 + $0x1], 1 }

</bundles_post_ra>
